<compile_context>
chip_gen: v5e
topology: v5e:2x2
jax: 0.10.0
libtpu: 0.0.40
codegen_flags: <defaults>
</compile_context>

<pallas_src>
import functools
import math

import jax
import jax.numpy as jnp
from jax.experimental import pallas as pl
from jax.experimental.pallas import tpu as pltpu


# ----------------------------------------------------------------------------
# Fused kernel factory
# ----------------------------------------------------------------------------
def make_combined_kernel(T, B, D, H, num_layers, num_dirs, C_ner, C_sa):
    """Build the fused forward kernel for static shapes / config.

    Ref layout (inputs, outputs, scratch):
      x_ref                       : (T*B, D)  time-major flattened input, f32
      per layer:
        wih_ref (in_dim, dirs*4H) bf16   packed [W_ih_f^T | W_ih_b^T]
        whh_ref (dirs*H, dirs*4H) bf16   blockdiag(W_hh_f^T, W_hh_b^T)
        b_ref   (1, dirs*4H)      f32    packed (b_ih + b_hh) per direction
      ner_w (dirs*H, C_ner) bf16, ner_b (1, C_ner) f32
      sa_w  (dirs*H, C_sa)  bf16, sa_b  (1, C_sa)  f32
      outputs: ner_out (T*B, C_ner) f32, sa_out (B, C_sa) f32
      scratch: slab_a, slab_b (T*B, dirs*H) f32, gx_slab (T*B, dirs*4H) f32
    """
    G = 4 * H

    def kernel(*refs):
        idx = 0
        x_ref = refs[idx]; idx += 1
        layer_refs = []
        for _ in range(num_layers):
            layer_refs.append((refs[idx], refs[idx + 1], refs[idx + 2]))
            idx += 3
        ner_w_ref, ner_b_ref = refs[idx], refs[idx + 1]; idx += 2
        sa_w_ref, sa_b_ref = refs[idx], refs[idx + 1]; idx += 2
        ner_out_ref, sa_out_ref = refs[idx], refs[idx + 1]; idx += 2
        slab_a, slab_b, gx_slab = refs[idx], refs[idx + 1], refs[idx + 2]

        slabs = [slab_a, slab_b]
        h_cat_final = None   # last layer's final hidden(s) -> SA head

        for layer in range(num_layers):
            wih_ref, whh_ref, b_ref = layer_refs[layer]
            out_slab = slabs[layer % 2]

            # ---- hoisted input projection: one big bf16 MXU matmul ----------
            if layer == 0:
                xs = x_ref[...].astype(jnp.bfloat16)                  # (T*B, D)
            else:
                xs = slabs[(layer - 1) % 2][...].astype(jnp.bfloat16)  # (T*B, dirs*H)
            gx_slab[...] = (
                jnp.dot(xs, wih_ref[...], preferred_element_type=jnp.float32)
                + b_ref[...]
            )                                             # (T*B, dirs*4H), f32

            whh = whh_ref[...]            # bf16, resident in vregs for the loop

            if num_dirs == 2:
                # Fused fwd+bwd recurrence: one packed MXU push per step.
                h_cat = jnp.zeros((B, 2 * H), jnp.float32)   # [h_f | h_b]
                c_f = jnp.zeros((B, H), jnp.float32)
                c_b = jnp.zeros((B, H), jnp.float32)
                for s in range(T):
                    tf = s            # forward direction time index
                    tb = T - 1 - s    # backward direction time index
                    rec = jnp.dot(h_cat.astype(jnp.bfloat16), whh,
                                  preferred_element_type=jnp.float32)  # (B, 8H)
                    gates_f = gx_slab[tf * B:(tf + 1) * B, 0:G] + rec[:, 0:G]
                    gates_b = gx_slab[tb * B:(tb + 1) * B, G:2 * G] + rec[:, G:2 * G]

                    # forward dir: whole-block sigmoid/tanh (2 EUP pushes)
                    sg = jax.nn.sigmoid(gates_f)
                    th = jnp.tanh(gates_f)
                    c_f = sg[:, H:2 * H] * c_f + sg[:, 0:H] * th[:, 2 * H:3 * H]
                    h_f = sg[:, 3 * H:4 * H] * jnp.tanh(c_f)

                    # backward dir
                    sg = jax.nn.sigmoid(gates_b)
                    th = jnp.tanh(gates_b)
                    c_b = sg[:, H:2 * H] * c_b + sg[:, 0:H] * th[:, 2 * H:3 * H]
                    h_b = sg[:, 3 * H:4 * H] * jnp.tanh(c_b)

                    # store at true time positions; lanes packed [h_f | h_b]
                    out_slab[tf * B:(tf + 1) * B, 0:H] = h_f
                    out_slab[tb * B:(tb + 1) * B, H:2 * H] = h_b
                    h_cat = jnp.concatenate([h_f, h_b], axis=-1)
                # after the last step: h_f is h_n(fwd, t=T-1), h_b is h_n(bwd, t=0)
                h_cat_final = h_cat
            else:
                h = jnp.zeros((B, H), jnp.float32)
                c = jnp.zeros((B, H), jnp.float32)
                for s in range(T):
                    rec = jnp.dot(h.astype(jnp.bfloat16), whh,
                                  preferred_element_type=jnp.float32)  # (B, 4H)
                    gates = gx_slab[s * B:(s + 1) * B, 0:G] + rec
                    sg = jax.nn.sigmoid(gates)
                    th = jnp.tanh(gates)
                    c = sg[:, H:2 * H] * c + sg[:, 0:H] * th[:, 2 * H:3 * H]
                    h = sg[:, 3 * H:4 * H] * jnp.tanh(c)
                    out_slab[s * B:(s + 1) * B, 0:H] = h
                h_cat_final = h

        # ---- fused heads (lane-dense NER output: (T*B, C_ner)) --------------
        feat = slabs[(num_layers - 1) % 2][...].astype(jnp.bfloat16)  # (T*B, dirs*H)
        ner_out_ref[...] = (
            jnp.dot(feat, ner_w_ref[...], preferred_element_type=jnp.float32)
            + ner_b_ref[...]
        )
        sa_out_ref[...] = (
            jnp.dot(h_cat_final.astype(jnp.bfloat16), sa_w_ref[...],
                    preferred_element_type=jnp.float32)
            + sa_b_ref[...]
        )

    return kernel


# ----------------------------------------------------------------------------
# Parameter construction (deterministic, PyTorch-style uniform init),
# already packed into the kernel's layout.
# ----------------------------------------------------------------------------
def init_params(key, input_dim, hidden_dim, num_layers, num_ner_classes,
                sentiment_classes, num_directions):
    H = hidden_dim
    k = 1.0 / math.sqrt(H)

    def uniform(key, shape):
        return jax.random.uniform(key, shape, jnp.float32, -k, k)

    params = {"lstm": []}
    for layer in range(num_layers):
        in_dim = input_dim if layer == 0 else H * num_directions
        wih_cols, whh_blocks, b_cols = [], [], []
        for d in range(num_directions):
            key, k1, k2, k3, k4 = jax.random.split(key, 5)
            w_ih = uniform(k1, (4 * H, in_dim))     # torch layout (4H, in)
            w_hh = uniform(k2, (4 * H, H))          # torch layout (4H, H)
            b_ih = uniform(k3, (4 * H,))
            b_hh = uniform(k4, (4 * H,))
            wih_cols.append(w_ih.T)                 # (in, 4H)
            whh_blocks.append(w_hh.T)               # (H, 4H)
            b_cols.append(b_ih + b_hh)              # (4H,)
        wih_packed = jnp.concatenate(wih_cols, axis=1)        # (in, dirs*4H)
        if num_directions == 2:
            whh_packed = jnp.zeros((2 * H, 8 * H), jnp.float32)
            whh_packed = whh_packed.at[:H, :4 * H].set(whh_blocks[0])
            whh_packed = whh_packed.at[H:, 4 * H:].set(whh_blocks[1])
        else:
            whh_packed = whh_blocks[0]
        b_packed = jnp.concatenate(b_cols).reshape(1, num_directions * 4 * H)
        params["lstm"].append((wih_packed.astype(jnp.bfloat16),
                               whh_packed.astype(jnp.bfloat16),
                               b_packed))

    enc_out = H * num_directions
    kn = 1.0 / math.sqrt(enc_out)
    key, k1, k2, k3, k4 = jax.random.split(key, 5)
    params["ner_w"] = jax.random.uniform(
        k1, (num_ner_classes, enc_out), jnp.float32, -kn, kn).T.astype(jnp.bfloat16)
    params["ner_b"] = jax.random.uniform(
        k2, (num_ner_classes,), jnp.float32, -kn, kn).reshape(1, num_ner_classes)
    params["sa_w"] = jax.random.uniform(
        k3, (sentiment_classes, enc_out), jnp.float32, -kn, kn).T.astype(jnp.bfloat16)
    params["sa_b"] = jax.random.uniform(
        k4, (sentiment_classes,), jnp.float32, -kn, kn).reshape(1, sentiment_classes)
    return params


# ----------------------------------------------------------------------------
# Full model forward (matches CombinedModel.forward), one pallas_call total
# ----------------------------------------------------------------------------
@functools.partial(jax.jit, static_argnames=("num_layers", "bidirectional"))
def combined_model_forward(embeddings, params, *, num_layers, bidirectional):
    # embeddings: (B, T, D) batch-first like the PyTorch module (or (B, D)).
    if embeddings.ndim == 2:
        embeddings = embeddings[:, None, :]
    B, T, D = embeddings.shape
    num_dirs = 2 if bidirectional else 1
    H = params["lstm"][0][1].shape[0] // num_dirs   # whh_packed: (dirs*H, dirs*4H)
    C_ner = params["ner_w"].shape[1]
    C_sa = params["sa_w"].shape[1]

    # time-major flatten: row (t*B + b) = x[b, t, :]
    x_flat = jnp.transpose(embeddings, (1, 0, 2)).reshape(T * B, D).astype(jnp.float32)

    args = [x_flat]
    for layer in range(num_layers):
        args += list(params["lstm"][layer])
    args += [params["ner_w"], params["ner_b"], params["sa_w"], params["sa_b"]]

    kernel = make_combined_kernel(T, B, D, H, num_layers, num_dirs, C_ner, C_sa)
    ner_flat, sa_logits = pl.pallas_call(
        kernel,
        out_shape=(
            jax.ShapeDtypeStruct((T * B, C_ner), jnp.float32),
            jax.ShapeDtypeStruct((B, C_sa), jnp.float32),
        ),
        scratch_shapes=[
            pltpu.VMEM((T * B, num_dirs * H), jnp.float32),      # slab_a
            pltpu.VMEM((T * B, num_dirs * H), jnp.float32),      # slab_b
            pltpu.VMEM((T * B, num_dirs * 4 * H), jnp.float32),  # gx stage
        ],
        # No grid: single invocation, all operands resident in VMEM.
        compiler_params=pltpu.CompilerParams(
            vmem_limit_bytes=32 * 1024 * 1024),
    )(*args)

    # lane-dense kernel output -> (B, T, C_ner) layout plumbing in XLA
    ner_logits = jnp.transpose(ner_flat.reshape(T, B, C_ner), (1, 0, 2))
    return ner_logits, sa_logits


# ----------------------------------------------------------------------------
if __name__ == "__main__":
    batch, seq_len = 2, 8
    input_dim, hidden_dim = 16, 32
    num_layers = 2
    num_ner_classes = 5
    sentiment_classes = 3
    bidirectional = True
    num_directions = 2 if bidirectional else 1

    key = jax.random.PRNGKey(0)
    key, pkey, xkey = jax.random.split(key, 3)
    params = init_params(pkey, input_dim, hidden_dim, num_layers,
                         num_ner_classes, sentiment_classes, num_directions)
    x = jax.random.normal(xkey, (batch, seq_len, input_dim), jnp.float32)

    ner_logits, sa_logits = combined_model_forward(
        x, params, num_layers=num_layers, bidirectional=bidirectional)
    jax.block_until_ready((ner_logits, sa_logits))

    assert ner_logits.shape == (batch, seq_len, num_ner_classes)
    assert sa_logits.shape == (batch, sentiment_classes)
    assert bool(jnp.all(jnp.isfinite(ner_logits)))
    assert bool(jnp.all(jnp.isfinite(sa_logits)))
    print("KERNEL_OK")
</pallas_src>

<mosaic_0001>
module attributes {stable_mosaic.version = 11 : i64} {
  func.func @kernel(%arg0: memref<16x16xf32, #tpu.memory_space<vmem>>, %arg1: memref<16x256xbf16, #tpu.memory_space<vmem>>, %arg2: memref<64x256xbf16, #tpu.memory_space<vmem>>, %arg3: memref<1x256xf32, #tpu.memory_space<vmem>>, %arg4: memref<64x256xbf16, #tpu.memory_space<vmem>>, %arg5: memref<64x256xbf16, #tpu.memory_space<vmem>>, %arg6: memref<1x256xf32, #tpu.memory_space<vmem>>, %arg7: memref<64x5xbf16, #tpu.memory_space<vmem>>, %arg8: memref<1x5xf32, #tpu.memory_space<vmem>>, %arg9: memref<64x3xbf16, #tpu.memory_space<vmem>>, %arg10: memref<1x3xf32, #tpu.memory_space<vmem>>, %arg11: memref<16x5xf32, #tpu.memory_space<vmem>>, %arg12: memref<2x3xf32, #tpu.memory_space<vmem>>, %arg13: memref<16x64xf32, #tpu.memory_space<vmem>>, %arg14: memref<16x64xf32, #tpu.memory_space<vmem>>, %arg15: memref<16x256xf32, #tpu.memory_space<vmem>>) attributes {dimension_semantics = [], scalar_prefetch = 0 : i64, scratch_operands = 3 : i64, tpu.core_type = #tpu.core_type<tc>} {
    %c0 = arith.constant 0 : index
    %c0_0 = arith.constant 0 : index
    %0 = vector.load %arg0[%c0, %c0_0] : memref<16x16xf32, #tpu.memory_space<vmem>>, vector<16x16xf32>
    %1 = arith.truncf %0 : vector<16x16xf32> to vector<16x16xbf16>
    %c0_1 = arith.constant 0 : index
    %c0_2 = arith.constant 0 : index
    %2 = vector.load %arg1[%c0_1, %c0_2] : memref<16x256xbf16, #tpu.memory_space<vmem>>, vector<16x256xbf16>
    %cst = arith.constant dense<0.000000e+00> : vector<16x256xf32>
    %3 = tpu.matmul %1, %2, %cst {dimension_numbers = #tpu.dot_dimension_numbers<[1], [0], [0], [1], [0, 0, 1, 1], [], []>} : vector<16x16xbf16>, vector<16x256xbf16>, vector<16x256xf32> -> vector<16x256xf32>
    %c0_3 = arith.constant 0 : index
    %c0_4 = arith.constant 0 : index
    %4 = vector.load %arg3[%c0_3, %c0_4] : memref<1x256xf32, #tpu.memory_space<vmem>>, vector<1x256xf32>
    %5 = vector.broadcast %4 : vector<1x256xf32> to vector<16x256xf32>
    %6 = arith.addf %3, %5 : vector<16x256xf32>
    %c0_5 = arith.constant 0 : index
    %c0_6 = arith.constant 0 : index
    %7 = vector.load %arg15[%c0_5, %c0_6] : memref<16x256xf32, #tpu.memory_space<vmem>>, vector<16x256xf32>
    tpu.vector_store %arg15[%c0_5, %c0_6], %6 {strides = array<i32>} : memref<16x256xf32, #tpu.memory_space<vmem>>, vector<16x256xf32>,
    %c0_7 = arith.constant 0 : index
    %c0_8 = arith.constant 0 : index
    %8 = vector.load %arg2[%c0_7, %c0_8] : memref<64x256xbf16, #tpu.memory_space<vmem>>, vector<64x256xbf16>
    %cst_9 = arith.constant 0.000000e+00 : f32
    %9 = vector.broadcast %cst_9 : f32 to vector<2x64xf32>
    %cst_10 = arith.constant 0.000000e+00 : f32
    %10 = vector.broadcast %cst_10 : f32 to vector<2x32xf32>
    %cst_11 = arith.constant 0.000000e+00 : f32
    %11 = vector.broadcast %cst_11 : f32 to vector<2x32xf32>
    %12 = arith.truncf %9 : vector<2x64xf32> to vector<2x64xbf16>
    %cst_12 = arith.constant dense<0.000000e+00> : vector<2x256xf32>
    %13 = tpu.matmul %12, %8, %cst_12 {dimension_numbers = #tpu.dot_dimension_numbers<[1], [0], [0], [1], [0, 0, 1, 1], [], []>} : vector<2x64xbf16>, vector<64x256xbf16>, vector<2x256xf32> -> vector<2x256xf32>
    %c0_13 = arith.constant 0 : index
    %c0_14 = arith.constant 0 : index
    %14 = vector.load %arg15[%c0_13, %c0_14] : memref<16x256xf32, #tpu.memory_space<vmem>>, vector<2x128xf32>
    %15 = vector.extract_strided_slice %13 {offsets = [0, 0], sizes = [2, 128], strides = [1, 1]} : vector<2x256xf32> to vector<2x128xf32>
    %16 = arith.addf %14, %15 : vector<2x128xf32>
    %c14 = arith.constant 14 : index
    %c128 = arith.constant 128 : index
    %17 = vector.load %arg15[%c14, %c128] : memref<16x256xf32, #tpu.memory_space<vmem>>, vector<2x128xf32>
    %18 = vector.extract_strided_slice %13 {offsets = [0, 128], sizes = [2, 128], strides = [1, 1]} : vector<2x256xf32> to vector<2x128xf32>
    %19 = arith.addf %17, %18 : vector<2x128xf32>
    %20 = arith.negf %16 : vector<2x128xf32>
    %21 = math.exp %20 : vector<2x128xf32>
    %cst_15 = arith.constant 1.000000e+00 : f32
    %22 = vector.broadcast %cst_15 : f32 to vector<2x128xf32>
    %23 = arith.addf %22, %21 : vector<2x128xf32>
    %24 = arith.divf %22, %23 : vector<2x128xf32>
    %25 = math.tanh %16 : vector<2x128xf32>
    %26 = vector.extract_strided_slice %24 {offsets = [0, 32], sizes = [2, 32], strides = [1, 1]} : vector<2x128xf32> to vector<2x32xf32>
    %27 = arith.mulf %26, %10 : vector<2x32xf32>
    %28 = vector.extract_strided_slice %24 {offsets = [0, 0], sizes = [2, 32], strides = [1, 1]} : vector<2x128xf32> to vector<2x32xf32>
    %29 = vector.extract_strided_slice %25 {offsets = [0, 64], sizes = [2, 32], strides = [1, 1]} : vector<2x128xf32> to vector<2x32xf32>
    %30 = arith.mulf %28, %29 : vector<2x32xf32>
    %31 = arith.addf %27, %30 : vector<2x32xf32>
    %32 = vector.extract_strided_slice %24 {offsets = [0, 96], sizes = [2, 32], strides = [1, 1]} : vector<2x128xf32> to vector<2x32xf32>
    %33 = math.tanh %31 : vector<2x32xf32>
    %34 = arith.mulf %32, %33 : vector<2x32xf32>
    %35 = arith.negf %19 : vector<2x128xf32>
    %36 = math.exp %35 : vector<2x128xf32>
    %cst_16 = arith.constant 1.000000e+00 : f32
    %37 = vector.broadcast %cst_16 : f32 to vector<2x128xf32>
    %38 = arith.addf %37, %36 : vector<2x128xf32>
    %39 = arith.divf %37, %38 : vector<2x128xf32>
    %40 = math.tanh %19 : vector<2x128xf32>
    %41 = vector.extract_strided_slice %39 {offsets = [0, 32], sizes = [2, 32], strides = [1, 1]} : vector<2x128xf32> to vector<2x32xf32>
    %42 = arith.mulf %41, %11 : vector<2x32xf32>
    %43 = vector.extract_strided_slice %39 {offsets = [0, 0], sizes = [2, 32], strides = [1, 1]} : vector<2x128xf32> to vector<2x32xf32>
    %44 = vector.extract_strided_slice %40 {offsets = [0, 64], sizes = [2, 32], strides = [1, 1]} : vector<2x128xf32> to vector<2x32xf32>
    %45 = arith.mulf %43, %44 : vector<2x32xf32>
    %46 = arith.addf %42, %45 : vector<2x32xf32>
    %47 = vector.extract_strided_slice %39 {offsets = [0, 96], sizes = [2, 32], strides = [1, 1]} : vector<2x128xf32> to vector<2x32xf32>
    %48 = math.tanh %46 : vector<2x32xf32>
    %49 = arith.mulf %47, %48 : vector<2x32xf32>
    %c0_17 = arith.constant 0 : index
    %c0_18 = arith.constant 0 : index
    %50 = vector.load %arg13[%c0_17, %c0_18] : memref<16x64xf32, #tpu.memory_space<vmem>>, vector<2x32xf32>
    tpu.vector_store %arg13[%c0_17, %c0_18], %34 {strides = array<i32>} : memref<16x64xf32, #tpu.memory_space<vmem>>, vector<2x32xf32>,
    %c14_19 = arith.constant 14 : index
    %c32 = arith.constant 32 : index
    %51 = vector.load %arg13[%c14_19, %c32] : memref<16x64xf32, #tpu.memory_space<vmem>>, vector<2x32xf32>
    tpu.vector_store %arg13[%c14_19, %c32], %49 {strides = array<i32>} : memref<16x64xf32, #tpu.memory_space<vmem>>, vector<2x32xf32>,
    %52 = tpu.concatenate %34, %49 in 1 : vector<2x32xf32>, vector<2x32xf32> -> vector<2x64xf32>
    %53 = arith.truncf %52 : vector<2x64xf32> to vector<2x64xbf16>
    %cst_20 = arith.constant dense<0.000000e+00> : vector<2x256xf32>
    %54 = tpu.matmul %53, %8, %cst_20 {dimension_numbers = #tpu.dot_dimension_numbers<[1], [0], [0], [1], [0, 0, 1, 1], [], []>} : vector<2x64xbf16>, vector<64x256xbf16>, vector<2x256xf32> -> vector<2x256xf32>
    %c2 = arith.constant 2 : index
    %c0_21 = arith.constant 0 : index
    %55 = vector.load %arg15[%c2, %c0_21] : memref<16x256xf32, #tpu.memory_space<vmem>>, vector<2x128xf32>
    %56 = vector.extract_strided_slice %54 {offsets = [0, 0], sizes = [2, 128], strides = [1, 1]} : vector<2x256xf32> to vector<2x128xf32>
    %57 = arith.addf %55, %56 : vector<2x128xf32>
    %c12 = arith.constant 12 : index
    %c128_22 = arith.constant 128 : index
    %58 = vector.load %arg15[%c12, %c128_22] : memref<16x256xf32, #tpu.memory_space<vmem>>, vector<2x128xf32>
    %59 = vector.extract_strided_slice %54 {offsets = [0, 128], sizes = [2, 128], strides = [1, 1]} : vector<2x256xf32> to vector<2x128xf32>
    %60 = arith.addf %58, %59 : vector<2x128xf32>
    %61 = arith.negf %57 : vector<2x128xf32>
    %62 = math.exp %61 : vector<2x128xf32>
    %cst_23 = arith.constant 1.000000e+00 : f32
    %63 = vector.broadcast %cst_23 : f32 to vector<2x128xf32>
    %64 = arith.addf %63, %62 : vector<2x128xf32>
    %65 = arith.divf %63, %64 : vector<2x128xf32>
    %66 = math.tanh %57 : vector<2x128xf32>
    %67 = vector.extract_strided_slice %65 {offsets = [0, 32], sizes = [2, 32], strides = [1, 1]} : vector<2x128xf32> to vector<2x32xf32>
    %68 = arith.mulf %67, %31 : vector<2x32xf32>
    %69 = vector.extract_strided_slice %65 {offsets = [0, 0], sizes = [2, 32], strides = [1, 1]} : vector<2x128xf32> to vector<2x32xf32>
    %70 = vector.extract_strided_slice %66 {offsets = [0, 64], sizes = [2, 32], strides = [1, 1]} : vector<2x128xf32> to vector<2x32xf32>
    %71 = arith.mulf %69, %70 : vector<2x32xf32>
    %72 = arith.addf %68, %71 : vector<2x32xf32>
    %73 = vector.extract_strided_slice %65 {offsets = [0, 96], sizes = [2, 32], strides = [1, 1]} : vector<2x128xf32> to vector<2x32xf32>
    %74 = math.tanh %72 : vector<2x32xf32>
    %75 = arith.mulf %73, %74 : vector<2x32xf32>
    %76 = arith.negf %60 : vector<2x128xf32>
    %77 = math.exp %76 : vector<2x128xf32>
    %cst_24 = arith.constant 1.000000e+00 : f32
    %78 = vector.broadcast %cst_24 : f32 to vector<2x128xf32>
    %79 = arith.addf %78, %77 : vector<2x128xf32>
    %80 = arith.divf %78, %79 : vector<2x128xf32>
    %81 = math.tanh %60 : vector<2x128xf32>
    %82 = vector.extract_strided_slice %80 {offsets = [0, 32], sizes = [2, 32], strides = [1, 1]} : vector<2x128xf32> to vector<2x32xf32>
    %83 = arith.mulf %82, %46 : vector<2x32xf32>
    %84 = vector.extract_strided_slice %80 {offsets = [0, 0], sizes = [2, 32], strides = [1, 1]} : vector<2x128xf32> to vector<2x32xf32>
    %85 = vector.extract_strided_slice %81 {offsets = [0, 64], sizes = [2, 32], strides = [1, 1]} : vector<2x128xf32> to vector<2x32xf32>
    %86 = arith.mulf %84, %85 : vector<2x32xf32>
    %87 = arith.addf %83, %86 : vector<2x32xf32>
    %88 = vector.extract_strided_slice %80 {offsets = [0, 96], sizes = [2, 32], strides = [1, 1]} : vector<2x128xf32> to vector<2x32xf32>
    %89 = math.tanh %87 : vector<2x32xf32>
    %90 = arith.mulf %88, %89 : vector<2x32xf32>
    %c2_25 = arith.constant 2 : index
    %c0_26 = arith.constant 0 : index
    %91 = vector.load %arg13[%c2_25, %c0_26] : memref<16x64xf32, #tpu.memory_space<vmem>>, vector<2x32xf32>
    tpu.vector_store %arg13[%c2_25, %c0_26], %75 {strides = array<i32>} : memref<16x64xf32, #tpu.memory_space<vmem>>, vector<2x32xf32>,
    %c12_27 = arith.constant 12 : index
    %c32_28 = arith.constant 32 : index
    %92 = vector.load %arg13[%c12_27, %c32_28] : memref<16x64xf32, #tpu.memory_space<vmem>>, vector<2x32xf32>
    tpu.vector_store %arg13[%c12_27, %c32_28], %90 {strides = array<i32>} : memref<16x64xf32, #tpu.memory_space<vmem>>, vector<2x32xf32>,
    %93 = tpu.concatenate %75, %90 in 1 : vector<2x32xf32>, vector<2x32xf32> -> vector<2x64xf32>
    %94 = arith.truncf %93 : vector<2x64xf32> to vector<2x64xbf16>
    %cst_29 = arith.constant dense<0.000000e+00> : vector<2x256xf32>
    %95 = tpu.matmul %94, %8, %cst_29 {dimension_numbers = #tpu.dot_dimension_numbers<[1], [0], [0], [1], [0, 0, 1, 1], [], []>} : vector<2x64xbf16>, vector<64x256xbf16>, vector<2x256xf32> -> vector<2x256xf32>
    %c4 = arith.constant 4 : index
    %c0_30 = arith.constant 0 : index
    %96 = vector.load %arg15[%c4, %c0_30] : memref<16x256xf32, #tpu.memory_space<vmem>>, vector<2x128xf32>
    %97 = vector.extract_strided_slice %95 {offsets = [0, 0], sizes = [2, 128], strides = [1, 1]} : vector<2x256xf32> to vector<2x128xf32>
    %98 = arith.addf %96, %97 : vector<2x128xf32>
    %c10 = arith.constant 10 : index
    %c128_31 = arith.constant 128 : index
    %99 = vector.load %arg15[%c10, %c128_31] : memref<16x256xf32, #tpu.memory_space<vmem>>, vector<2x128xf32>
    %100 = vector.extract_strided_slice %95 {offsets = [0, 128], sizes = [2, 128], strides = [1, 1]} : vector<2x256xf32> to vector<2x128xf32>
    %101 = arith.addf %99, %100 : vector<2x128xf32>
    %102 = arith.negf %98 : vector<2x128xf32>
    %103 = math.exp %102 : vector<2x128xf32>
    %cst_32 = arith.constant 1.000000e+00 : f32
    %104 = vector.broadcast %cst_32 : f32 to vector<2x128xf32>
    %105 = arith.addf %104, %103 : vector<2x128xf32>
    %106 = arith.divf %104, %105 : vector<2x128xf32>
    %107 = math.tanh %98 : vector<2x128xf32>
    %108 = vector.extract_strided_slice %106 {offsets = [0, 32], sizes = [2, 32], strides = [1, 1]} : vector<2x128xf32> to vector<2x32xf32>
    %109 = arith.mulf %108, %72 : vector<2x32xf32>
    %110 = vector.extract_strided_slice %106 {offsets = [0, 0], sizes = [2, 32], strides = [1, 1]} : vector<2x128xf32> to vector<2x32xf32>
    %111 = vector.extract_strided_slice %107 {offsets = [0, 64], sizes = [2, 32], strides = [1, 1]} : vector<2x128xf32> to vector<2x32xf32>
    %112 = arith.mulf %110, %111 : vector<2x32xf32>
    %113 = arith.addf %109, %112 : vector<2x32xf32>
    %114 = vector.extract_strided_slice %106 {offsets = [0, 96], sizes = [2, 32], strides = [1, 1]} : vector<2x128xf32> to vector<2x32xf32>
    %115 = math.tanh %113 : vector<2x32xf32>
    %116 = arith.mulf %114, %115 : vector<2x32xf32>
    %117 = arith.negf %101 : vector<2x128xf32>
    %118 = math.exp %117 : vector<2x128xf32>
    %cst_33 = arith.constant 1.000000e+00 : f32
    %119 = vector.broadcast %cst_33 : f32 to vector<2x128xf32>
    %120 = arith.addf %119, %118 : vector<2x128xf32>
    %121 = arith.divf %119, %120 : vector<2x128xf32>
    %122 = math.tanh %101 : vector<2x128xf32>
    %123 = vector.extract_strided_slice %121 {offsets = [0, 32], sizes = [2, 32], strides = [1, 1]} : vector<2x128xf32> to vector<2x32xf32>
    %124 = arith.mulf %123, %87 : vector<2x32xf32>
    %125 = vector.extract_strided_slice %121 {offsets = [0, 0], sizes = [2, 32], strides = [1, 1]} : vector<2x128xf32> to vector<2x32xf32>
    %126 = vector.extract_strided_slice %122 {offsets = [0, 64], sizes = [2, 32], strides = [1, 1]} : vector<2x128xf32> to vector<2x32xf32>
    %127 = arith.mulf %125, %126 : vector<2x32xf32>
    %128 = arith.addf %124, %127 : vector<2x32xf32>
    %129 = vector.extract_strided_slice %121 {offsets = [0, 96], sizes = [2, 32], strides = [1, 1]} : vector<2x128xf32> to vector<2x32xf32>
    %130 = math.tanh %128 : vector<2x32xf32>
    %131 = arith.mulf %129, %130 : vector<2x32xf32>
    %c4_34 = arith.constant 4 : index
    %c0_35 = arith.constant 0 : index
    %132 = vector.load %arg13[%c4_34, %c0_35] : memref<16x64xf32, #tpu.memory_space<vmem>>, vector<2x32xf32>
    tpu.vector_store %arg13[%c4_34, %c0_35], %116 {strides = array<i32>} : memref<16x64xf32, #tpu.memory_space<vmem>>, vector<2x32xf32>,
    %c10_36 = arith.constant 10 : index
    %c32_37 = arith.constant 32 : index
    %133 = vector.load %arg13[%c10_36, %c32_37] : memref<16x64xf32, #tpu.memory_space<vmem>>, vector<2x32xf32>
    tpu.vector_store %arg13[%c10_36, %c32_37], %131 {strides = array<i32>} : memref<16x64xf32, #tpu.memory_space<vmem>>, vector<2x32xf32>,
    %134 = tpu.concatenate %116, %131 in 1 : vector<2x32xf32>, vector<2x32xf32> -> vector<2x64xf32>
    %135 = arith.truncf %134 : vector<2x64xf32> to vector<2x64xbf16>
    %cst_38 = arith.constant dense<0.000000e+00> : vector<2x256xf32>
    %136 = tpu.matmul %135, %8, %cst_38 {dimension_numbers = #tpu.dot_dimension_numbers<[1], [0], [0], [1], [0, 0, 1, 1], [], []>} : vector<2x64xbf16>, vector<64x256xbf16>, vector<2x256xf32> -> vector<2x256xf32>
    %c6 = arith.constant 6 : index
    %c0_39 = arith.constant 0 : index
    %137 = vector.load %arg15[%c6, %c0_39] : memref<16x256xf32, #tpu.memory_space<vmem>>, vector<2x128xf32>
    %138 = vector.extract_strided_slice %136 {offsets = [0, 0], sizes = [2, 128], strides = [1, 1]} : vector<2x256xf32> to vector<2x128xf32>
    %139 = arith.addf %137, %138 : vector<2x128xf32>
    %c8 = arith.constant 8 : index
    %c128_40 = arith.constant 128 : index
    %140 = vector.load %arg15[%c8, %c128_40] : memref<16x256xf32, #tpu.memory_space<vmem>>, vector<2x128xf32>
    %141 = vector.extract_strided_slice %136 {offsets = [0, 128], sizes = [2, 128], strides = [1, 1]} : vector<2x256xf32> to vector<2x128xf32>
    %142 = arith.addf %140, %141 : vector<2x128xf32>
    %143 = arith.negf %139 : vector<2x128xf32>
    %144 = math.exp %143 : vector<2x128xf32>
    %cst_41 = arith.constant 1.000000e+00 : f32
    %145 = vector.broadcast %cst_41 : f32 to vector<2x128xf32>
    %146 = arith.addf %145, %144 : vector<2x128xf32>
    %147 = arith.divf %145, %146 : vector<2x128xf32>
    %148 = math.tanh %139 : vector<2x128xf32>
    %149 = vector.extract_strided_slice %147 {offsets = [0, 32], sizes = [2, 32], strides = [1, 1]} : vector<2x128xf32> to vector<2x32xf32>
    %150 = arith.mulf %149, %113 : vector<2x32xf32>
    %151 = vector.extract_strided_slice %147 {offsets = [0, 0], sizes = [2, 32], strides = [1, 1]} : vector<2x128xf32> to vector<2x32xf32>
    %152 = vector.extract_strided_slice %148 {offsets = [0, 64], sizes = [2, 32], strides = [1, 1]} : vector<2x128xf32> to vector<2x32xf32>
    %153 = arith.mulf %151, %152 : vector<2x32xf32>
    %154 = arith.addf %150, %153 : vector<2x32xf32>
    %155 = vector.extract_strided_slice %147 {offsets = [0, 96], sizes = [2, 32], strides = [1, 1]} : vector<2x128xf32> to vector<2x32xf32>
    %156 = math.tanh %154 : vector<2x32xf32>
    %157 = arith.mulf %155, %156 : vector<2x32xf32>
    %158 = arith.negf %142 : vector<2x128xf32>
    %159 = math.exp %158 : vector<2x128xf32>
    %cst_42 = arith.constant 1.000000e+00 : f32
    %160 = vector.broadcast %cst_42 : f32 to vector<2x128xf32>
    %161 = arith.addf %160, %159 : vector<2x128xf32>
    %162 = arith.divf %160, %161 : vector<2x128xf32>
    %163 = math.tanh %142 : vector<2x128xf32>
    %164 = vector.extract_strided_slice %162 {offsets = [0, 32], sizes = [2, 32], strides = [1, 1]} : vector<2x128xf32> to vector<2x32xf32>
    %165 = arith.mulf %164, %128 : vector<2x32xf32>
    %166 = vector.extract_strided_slice %162 {offsets = [0, 0], sizes = [2, 32], strides = [1, 1]} : vector<2x128xf32> to vector<2x32xf32>
    %167 = vector.extract_strided_slice %163 {offsets = [0, 64], sizes = [2, 32], strides = [1, 1]} : vector<2x128xf32> to vector<2x32xf32>
    %168 = arith.mulf %166, %167 : vector<2x32xf32>
    %169 = arith.addf %165, %168 : vector<2x32xf32>
    %170 = vector.extract_strided_slice %162 {offsets = [0, 96], sizes = [2, 32], strides = [1, 1]} : vector<2x128xf32> to vector<2x32xf32>
    %171 = math.tanh %169 : vector<2x32xf32>
    %172 = arith.mulf %170, %171 : vector<2x32xf32>
    %c6_43 = arith.constant 6 : index
    %c0_44 = arith.constant 0 : index
    %173 = vector.load %arg13[%c6_43, %c0_44] : memref<16x64xf32, #tpu.memory_space<vmem>>, vector<2x32xf32>
    tpu.vector_store %arg13[%c6_43, %c0_44], %157 {strides = array<i32>} : memref<16x64xf32, #tpu.memory_space<vmem>>, vector<2x32xf32>,
    %c8_45 = arith.constant 8 : index
    %c32_46 = arith.constant 32 : index
    %174 = vector.load %arg13[%c8_45, %c32_46] : memref<16x64xf32, #tpu.memory_space<vmem>>, vector<2x32xf32>
    tpu.vector_store %arg13[%c8_45, %c32_46], %172 {strides = array<i32>} : memref<16x64xf32, #tpu.memory_space<vmem>>, vector<2x32xf32>,
    %175 = tpu.concatenate %157, %172 in 1 : vector<2x32xf32>, vector<2x32xf32> -> vector<2x64xf32>
    %176 = arith.truncf %175 : vector<2x64xf32> to vector<2x64xbf16>
    %cst_47 = arith.constant dense<0.000000e+00> : vector<2x256xf32>
    %177 = tpu.matmul %176, %8, %cst_47 {dimension_numbers = #tpu.dot_dimension_numbers<[1], [0], [0], [1], [0, 0, 1, 1], [], []>} : vector<2x64xbf16>, vector<64x256xbf16>, vector<2x256xf32> -> vector<2x256xf32>
    %c8_48 = arith.constant 8 : index
    %c0_49 = arith.constant 0 : index
    %178 = vector.load %arg15[%c8_48, %c0_49] : memref<16x256xf32, #tpu.memory_space<vmem>>, vector<2x128xf32>
    %179 = vector.extract_strided_slice %177 {offsets = [0, 0], sizes = [2, 128], strides = [1, 1]} : vector<2x256xf32> to vector<2x128xf32>
    %180 = arith.addf %178, %179 : vector<2x128xf32>
    %c6_50 = arith.constant 6 : index
    %c128_51 = arith.constant 128 : index
    %181 = vector.load %arg15[%c6_50, %c128_51] : memref<16x256xf32, #tpu.memory_space<vmem>>, vector<2x128xf32>
    %182 = vector.extract_strided_slice %177 {offsets = [0, 128], sizes = [2, 128], strides = [1, 1]} : vector<2x256xf32> to vector<2x128xf32>
    %183 = arith.addf %181, %182 : vector<2x128xf32>
    %184 = arith.negf %180 : vector<2x128xf32>
    %185 = math.exp %184 : vector<2x128xf32>
    %cst_52 = arith.constant 1.000000e+00 : f32
    %186 = vector.broadcast %cst_52 : f32 to vector<2x128xf32>
    %187 = arith.addf %186, %185 : vector<2x128xf32>
    %188 = arith.divf %186, %187 : vector<2x128xf32>
    %189 = math.tanh %180 : vector<2x128xf32>
    %190 = vector.extract_strided_slice %188 {offsets = [0, 32], sizes = [2, 32], strides = [1, 1]} : vector<2x128xf32> to vector<2x32xf32>
    %191 = arith.mulf %190, %154 : vector<2x32xf32>
    %192 = vector.extract_strided_slice %188 {offsets = [0, 0], sizes = [2, 32], strides = [1, 1]} : vector<2x128xf32> to vector<2x32xf32>
    %193 = vector.extract_strided_slice %189 {offsets = [0, 64], sizes = [2, 32], strides = [1, 1]} : vector<2x128xf32> to vector<2x32xf32>
    %194 = arith.mulf %192, %193 : vector<2x32xf32>
    %195 = arith.addf %191, %194 : vector<2x32xf32>
    %196 = vector.extract_strided_slice %188 {offsets = [0, 96], sizes = [2, 32], strides = [1, 1]} : vector<2x128xf32> to vector<2x32xf32>
    %197 = math.tanh %195 : vector<2x32xf32>
    %198 = arith.mulf %196, %197 : vector<2x32xf32>
    %199 = arith.negf %183 : vector<2x128xf32>
    %200 = math.exp %199 : vector<2x128xf32>
    %cst_53 = arith.constant 1.000000e+00 : f32
    %201 = vector.broadcast %cst_53 : f32 to vector<2x128xf32>
    %202 = arith.addf %201, %200 : vector<2x128xf32>
    %203 = arith.divf %201, %202 : vector<2x128xf32>
    %204 = math.tanh %183 : vector<2x128xf32>
    %205 = vector.extract_strided_slice %203 {offsets = [0, 32], sizes = [2, 32], strides = [1, 1]} : vector<2x128xf32> to vector<2x32xf32>
    %206 = arith.mulf %205, %169 : vector<2x32xf32>
    %207 = vector.extract_strided_slice %203 {offsets = [0, 0], sizes = [2, 32], strides = [1, 1]} : vector<2x128xf32> to vector<2x32xf32>
    %208 = vector.extract_strided_slice %204 {offsets = [0, 64], sizes = [2, 32], strides = [1, 1]} : vector<2x128xf32> to vector<2x32xf32>
    %209 = arith.mulf %207, %208 : vector<2x32xf32>
    %210 = arith.addf %206, %209 : vector<2x32xf32>
    %211 = vector.extract_strided_slice %203 {offsets = [0, 96], sizes = [2, 32], strides = [1, 1]} : vector<2x128xf32> to vector<2x32xf32>
    %212 = math.tanh %210 : vector<2x32xf32>
    %213 = arith.mulf %211, %212 : vector<2x32xf32>
    %c8_54 = arith.constant 8 : index
    %c0_55 = arith.constant 0 : index
    %214 = vector.load %arg13[%c8_54, %c0_55] : memref<16x64xf32, #tpu.memory_space<vmem>>, vector<2x32xf32>
    tpu.vector_store %arg13[%c8_54, %c0_55], %198 {strides = array<i32>} : memref<16x64xf32, #tpu.memory_space<vmem>>, vector<2x32xf32>,
    %c6_56 = arith.constant 6 : index
    %c32_57 = arith.constant 32 : index
    %215 = vector.load %arg13[%c6_56, %c32_57] : memref<16x64xf32, #tpu.memory_space<vmem>>, vector<2x32xf32>
    tpu.vector_store %arg13[%c6_56, %c32_57], %213 {strides = array<i32>} : memref<16x64xf32, #tpu.memory_space<vmem>>, vector<2x32xf32>,
    %216 = tpu.concatenate %198, %213 in 1 : vector<2x32xf32>, vector<2x32xf32> -> vector<2x64xf32>
    %217 = arith.truncf %216 : vector<2x64xf32> to vector<2x64xbf16>
    %cst_58 = arith.constant dense<0.000000e+00> : vector<2x256xf32>
    %218 = tpu.matmul %217, %8, %cst_58 {dimension_numbers = #tpu.dot_dimension_numbers<[1], [0], [0], [1], [0, 0, 1, 1], [], []>} : vector<2x64xbf16>, vector<64x256xbf16>, vector<2x256xf32> -> vector<2x256xf32>
    %c10_59 = arith.constant 10 : index
    %c0_60 = arith.constant 0 : index
    %219 = vector.load %arg15[%c10_59, %c0_60] : memref<16x256xf32, #tpu.memory_space<vmem>>, vector<2x128xf32>
    %220 = vector.extract_strided_slice %218 {offsets = [0, 0], sizes = [2, 128], strides = [1, 1]} : vector<2x256xf32> to vector<2x128xf32>
    %221 = arith.addf %219, %220 : vector<2x128xf32>
    %c4_61 = arith.constant 4 : index
    %c128_62 = arith.constant 128 : index
    %222 = vector.load %arg15[%c4_61, %c128_62] : memref<16x256xf32, #tpu.memory_space<vmem>>, vector<2x128xf32>
    %223 = vector.extract_strided_slice %218 {offsets = [0, 128], sizes = [2, 128], strides = [1, 1]} : vector<2x256xf32> to vector<2x128xf32>
    %224 = arith.addf %222, %223 : vector<2x128xf32>
    %225 = arith.negf %221 : vector<2x128xf32>
    %226 = math.exp %225 : vector<2x128xf32>
    %cst_63 = arith.constant 1.000000e+00 : f32
    %227 = vector.broadcast %cst_63 : f32 to vector<2x128xf32>
    %228 = arith.addf %227, %226 : vector<2x128xf32>
    %229 = arith.divf %227, %228 : vector<2x128xf32>
    %230 = math.tanh %221 : vector<2x128xf32>
    %231 = vector.extract_strided_slice %229 {offsets = [0, 32], sizes = [2, 32], strides = [1, 1]} : vector<2x128xf32> to vector<2x32xf32>
    %232 = arith.mulf %231, %195 : vector<2x32xf32>
    %233 = vector.extract_strided_slice %229 {offsets = [0, 0], sizes = [2, 32], strides = [1, 1]} : vector<2x128xf32> to vector<2x32xf32>
    %234 = vector.extract_strided_slice %230 {offsets = [0, 64], sizes = [2, 32], strides = [1, 1]} : vector<2x128xf32> to vector<2x32xf32>
    %235 = arith.mulf %233, %234 : vector<2x32xf32>
    %236 = arith.addf %232, %235 : vector<2x32xf32>
    %237 = vector.extract_strided_slice %229 {offsets = [0, 96], sizes = [2, 32], strides = [1, 1]} : vector<2x128xf32> to vector<2x32xf32>
    %238 = math.tanh %236 : vector<2x32xf32>
    %239 = arith.mulf %237, %238 : vector<2x32xf32>
    %240 = arith.negf %224 : vector<2x128xf32>
    %241 = math.exp %240 : vector<2x128xf32>
    %cst_64 = arith.constant 1.000000e+00 : f32
    %242 = vector.broadcast %cst_64 : f32 to vector<2x128xf32>
    %243 = arith.addf %242, %241 : vector<2x128xf32>
    %244 = arith.divf %242, %243 : vector<2x128xf32>
    %245 = math.tanh %224 : vector<2x128xf32>
    %246 = vector.extract_strided_slice %244 {offsets = [0, 32], sizes = [2, 32], strides = [1, 1]} : vector<2x128xf32> to vector<2x32xf32>
    %247 = arith.mulf %246, %210 : vector<2x32xf32>
    %248 = vector.extract_strided_slice %244 {offsets = [0, 0], sizes = [2, 32], strides = [1, 1]} : vector<2x128xf32> to vector<2x32xf32>
    %249 = vector.extract_strided_slice %245 {offsets = [0, 64], sizes = [2, 32], strides = [1, 1]} : vector<2x128xf32> to vector<2x32xf32>
    %250 = arith.mulf %248, %249 : vector<2x32xf32>
    %251 = arith.addf %247, %250 : vector<2x32xf32>
    %252 = vector.extract_strided_slice %244 {offsets = [0, 96], sizes = [2, 32], strides = [1, 1]} : vector<2x128xf32> to vector<2x32xf32>
    %253 = math.tanh %251 : vector<2x32xf32>
    %254 = arith.mulf %252, %253 : vector<2x32xf32>
    %c10_65 = arith.constant 10 : index
    %c0_66 = arith.constant 0 : index
    %255 = vector.load %arg13[%c10_65, %c0_66] : memref<16x64xf32, #tpu.memory_space<vmem>>, vector<2x32xf32>
    tpu.vector_store %arg13[%c10_65, %c0_66], %239 {strides = array<i32>} : memref<16x64xf32, #tpu.memory_space<vmem>>, vector<2x32xf32>,
    %c4_67 = arith.constant 4 : index
    %c32_68 = arith.constant 32 : index
    %256 = vector.load %arg13[%c4_67, %c32_68] : memref<16x64xf32, #tpu.memory_space<vmem>>, vector<2x32xf32>
    tpu.vector_store %arg13[%c4_67, %c32_68], %254 {strides = array<i32>} : memref<16x64xf32, #tpu.memory_space<vmem>>, vector<2x32xf32>,
    %257 = tpu.concatenate %239, %254 in 1 : vector<2x32xf32>, vector<2x32xf32> -> vector<2x64xf32>
    %258 = arith.truncf %257 : vector<2x64xf32> to vector<2x64xbf16>
    %cst_69 = arith.constant dense<0.000000e+00> : vector<2x256xf32>
    %259 = tpu.matmul %258, %8, %cst_69 {dimension_numbers = #tpu.dot_dimension_numbers<[1], [0], [0], [1], [0, 0, 1, 1], [], []>} : vector<2x64xbf16>, vector<64x256xbf16>, vector<2x256xf32> -> vector<2x256xf32>
    %c12_70 = arith.constant 12 : index
    %c0_71 = arith.constant 0 : index
    %260 = vector.load %arg15[%c12_70, %c0_71] : memref<16x256xf32, #tpu.memory_space<vmem>>, vector<2x128xf32>
    %261 = vector.extract_strided_slice %259 {offsets = [0, 0], sizes = [2, 128], strides = [1, 1]} : vector<2x256xf32> to vector<2x128xf32>
    %262 = arith.addf %260, %261 : vector<2x128xf32>
    %c2_72 = arith.constant 2 : index
    %c128_73 = arith.constant 128 : index
    %263 = vector.load %arg15[%c2_72, %c128_73] : memref<16x256xf32, #tpu.memory_space<vmem>>, vector<2x128xf32>
    %264 = vector.extract_strided_slice %259 {offsets = [0, 128], sizes = [2, 128], strides = [1, 1]} : vector<2x256xf32> to vector<2x128xf32>
    %265 = arith.addf %263, %264 : vector<2x128xf32>
    %266 = arith.negf %262 : vector<2x128xf32>
    %267 = math.exp %266 : vector<2x128xf32>
    %cst_74 = arith.constant 1.000000e+00 : f32
    %268 = vector.broadcast %cst_74 : f32 to vector<2x128xf32>
    %269 = arith.addf %268, %267 : vector<2x128xf32>
    %270 = arith.divf %268, %269 : vector<2x128xf32>
    %271 = math.tanh %262 : vector<2x128xf32>
    %272 = vector.extract_strided_slice %270 {offsets = [0, 32], sizes = [2, 32], strides = [1, 1]} : vector<2x128xf32> to vector<2x32xf32>
    %273 = arith.mulf %272, %236 : vector<2x32xf32>
    %274 = vector.extract_strided_slice %270 {offsets = [0, 0], sizes = [2, 32], strides = [1, 1]} : vector<2x128xf32> to vector<2x32xf32>
    %275 = vector.extract_strided_slice %271 {offsets = [0, 64], sizes = [2, 32], strides = [1, 1]} : vector<2x128xf32> to vector<2x32xf32>
    %276 = arith.mulf %274, %275 : vector<2x32xf32>
    %277 = arith.addf %273, %276 : vector<2x32xf32>
    %278 = vector.extract_strided_slice %270 {offsets = [0, 96], sizes = [2, 32], strides = [1, 1]} : vector<2x128xf32> to vector<2x32xf32>
    %279 = math.tanh %277 : vector<2x32xf32>
    %280 = arith.mulf %278, %279 : vector<2x32xf32>
    %281 = arith.negf %265 : vector<2x128xf32>
    %282 = math.exp %281 : vector<2x128xf32>
    %cst_75 = arith.constant 1.000000e+00 : f32
    %283 = vector.broadcast %cst_75 : f32 to vector<2x128xf32>
    %284 = arith.addf %283, %282 : vector<2x128xf32>
    %285 = arith.divf %283, %284 : vector<2x128xf32>
    %286 = math.tanh %265 : vector<2x128xf32>
    %287 = vector.extract_strided_slice %285 {offsets = [0, 32], sizes = [2, 32], strides = [1, 1]} : vector<2x128xf32> to vector<2x32xf32>
    %288 = arith.mulf %287, %251 : vector<2x32xf32>
    %289 = vector.extract_strided_slice %285 {offsets = [0, 0], sizes = [2, 32], strides = [1, 1]} : vector<2x128xf32> to vector<2x32xf32>
    %290 = vector.extract_strided_slice %286 {offsets = [0, 64], sizes = [2, 32], strides = [1, 1]} : vector<2x128xf32> to vector<2x32xf32>
    %291 = arith.mulf %289, %290 : vector<2x32xf32>
    %292 = arith.addf %288, %291 : vector<2x32xf32>
    %293 = vector.extract_strided_slice %285 {offsets = [0, 96], sizes = [2, 32], strides = [1, 1]} : vector<2x128xf32> to vector<2x32xf32>
    %294 = math.tanh %292 : vector<2x32xf32>
    %295 = arith.mulf %293, %294 : vector<2x32xf32>
    %c12_76 = arith.constant 12 : index
    %c0_77 = arith.constant 0 : index
    %296 = vector.load %arg13[%c12_76, %c0_77] : memref<16x64xf32, #tpu.memory_space<vmem>>, vector<2x32xf32>
    tpu.vector_store %arg13[%c12_76, %c0_77], %280 {strides = array<i32>} : memref<16x64xf32, #tpu.memory_space<vmem>>, vector<2x32xf32>,
    %c2_78 = arith.constant 2 : index
    %c32_79 = arith.constant 32 : index
    %297 = vector.load %arg13[%c2_78, %c32_79] : memref<16x64xf32, #tpu.memory_space<vmem>>, vector<2x32xf32>
    tpu.vector_store %arg13[%c2_78, %c32_79], %295 {strides = array<i32>} : memref<16x64xf32, #tpu.memory_space<vmem>>, vector<2x32xf32>,
    %298 = tpu.concatenate %280, %295 in 1 : vector<2x32xf32>, vector<2x32xf32> -> vector<2x64xf32>
    %299 = arith.truncf %298 : vector<2x64xf32> to vector<2x64xbf16>
    %cst_80 = arith.constant dense<0.000000e+00> : vector<2x256xf32>
    %300 = tpu.matmul %299, %8, %cst_80 {dimension_numbers = #tpu.dot_dimension_numbers<[1], [0], [0], [1], [0, 0, 1, 1], [], []>} : vector<2x64xbf16>, vector<64x256xbf16>, vector<2x256xf32> -> vector<2x256xf32>
    %c14_81 = arith.constant 14 : index
    %c0_82 = arith.constant 0 : index
    %301 = vector.load %arg15[%c14_81, %c0_82] : memref<16x256xf32, #tpu.memory_space<vmem>>, vector<2x128xf32>
    %302 = vector.extract_strided_slice %300 {offsets = [0, 0], sizes = [2, 128], strides = [1, 1]} : vector<2x256xf32> to vector<2x128xf32>
    %303 = arith.addf %301, %302 : vector<2x128xf32>
    %c0_83 = arith.constant 0 : index
    %c128_84 = arith.constant 128 : index
    %304 = vector.load %arg15[%c0_83, %c128_84] : memref<16x256xf32, #tpu.memory_space<vmem>>, vector<2x128xf32>
    %305 = vector.extract_strided_slice %300 {offsets = [0, 128], sizes = [2, 128], strides = [1, 1]} : vector<2x256xf32> to vector<2x128xf32>
    %306 = arith.addf %304, %305 : vector<2x128xf32>
    %307 = arith.negf %303 : vector<2x128xf32>
    %308 = math.exp %307 : vector<2x128xf32>
    %cst_85 = arith.constant 1.000000e+00 : f32
    %309 = vector.broadcast %cst_85 : f32 to vector<2x128xf32>
    %310 = arith.addf %309, %308 : vector<2x128xf32>
    %311 = arith.divf %309, %310 : vector<2x128xf32>
    %312 = math.tanh %303 : vector<2x128xf32>
    %313 = vector.extract_strided_slice %311 {offsets = [0, 32], sizes = [2, 32], strides = [1, 1]} : vector<2x128xf32> to vector<2x32xf32>
    %314 = arith.mulf %313, %277 : vector<2x32xf32>
    %315 = vector.extract_strided_slice %311 {offsets = [0, 0], sizes = [2, 32], strides = [1, 1]} : vector<2x128xf32> to vector<2x32xf32>
    %316 = vector.extract_strided_slice %312 {offsets = [0, 64], sizes = [2, 32], strides = [1, 1]} : vector<2x128xf32> to vector<2x32xf32>
    %317 = arith.mulf %315, %316 : vector<2x32xf32>
    %318 = arith.addf %314, %317 : vector<2x32xf32>
    %319 = vector.extract_strided_slice %311 {offsets = [0, 96], sizes = [2, 32], strides = [1, 1]} : vector<2x128xf32> to vector<2x32xf32>
    %320 = math.tanh %318 : vector<2x32xf32>
    %321 = arith.mulf %319, %320 : vector<2x32xf32>
    %322 = arith.negf %306 : vector<2x128xf32>
    %323 = math.exp %322 : vector<2x128xf32>
    %cst_86 = arith.constant 1.000000e+00 : f32
    %324 = vector.broadcast %cst_86 : f32 to vector<2x128xf32>
    %325 = arith.addf %324, %323 : vector<2x128xf32>
    %326 = arith.divf %324, %325 : vector<2x128xf32>
    %327 = math.tanh %306 : vector<2x128xf32>
    %328 = vector.extract_strided_slice %326 {offsets = [0, 32], sizes = [2, 32], strides = [1, 1]} : vector<2x128xf32> to vector<2x32xf32>
    %329 = arith.mulf %328, %292 : vector<2x32xf32>
    %330 = vector.extract_strided_slice %326 {offsets = [0, 0], sizes = [2, 32], strides = [1, 1]} : vector<2x128xf32> to vector<2x32xf32>
    %331 = vector.extract_strided_slice %327 {offsets = [0, 64], sizes = [2, 32], strides = [1, 1]} : vector<2x128xf32> to vector<2x32xf32>
    %332 = arith.mulf %330, %331 : vector<2x32xf32>
    %333 = arith.addf %329, %332 : vector<2x32xf32>
    %334 = vector.extract_strided_slice %326 {offsets = [0, 96], sizes = [2, 32], strides = [1, 1]} : vector<2x128xf32> to vector<2x32xf32>
    %335 = math.tanh %333 : vector<2x32xf32>
    %336 = arith.mulf %334, %335 : vector<2x32xf32>
    %c14_87 = arith.constant 14 : index
    %c0_88 = arith.constant 0 : index
    %337 = vector.load %arg13[%c14_87, %c0_88] : memref<16x64xf32, #tpu.memory_space<vmem>>, vector<2x32xf32>
    tpu.vector_store %arg13[%c14_87, %c0_88], %321 {strides = array<i32>} : memref<16x64xf32, #tpu.memory_space<vmem>>, vector<2x32xf32>,
    %c0_89 = arith.constant 0 : index
    %c32_90 = arith.constant 32 : index
    %338 = vector.load %arg13[%c0_89, %c32_90] : memref<16x64xf32, #tpu.memory_space<vmem>>, vector<2x32xf32>
    tpu.vector_store %arg13[%c0_89, %c32_90], %336 {strides = array<i32>} : memref<16x64xf32, #tpu.memory_space<vmem>>, vector<2x32xf32>,
    %c0_91 = arith.constant 0 : index
    %c0_92 = arith.constant 0 : index
    %339 = vector.load %arg13[%c0_91, %c0_92] : memref<16x64xf32, #tpu.memory_space<vmem>>, vector<16x64xf32>
    %340 = arith.truncf %339 : vector<16x64xf32> to vector<16x64xbf16>
    %c0_93 = arith.constant 0 : index
    %c0_94 = arith.constant 0 : index
    %341 = vector.load %arg4[%c0_93, %c0_94] : memref<64x256xbf16, #tpu.memory_space<vmem>>, vector<64x256xbf16>
    %cst_95 = arith.constant dense<0.000000e+00> : vector<16x256xf32>
    %342 = tpu.matmul %340, %341, %cst_95 {dimension_numbers = #tpu.dot_dimension_numbers<[1], [0], [0], [1], [0, 0, 1, 1], [], []>} : vector<16x64xbf16>, vector<64x256xbf16>, vector<16x256xf32> -> vector<16x256xf32>
    %c0_96 = arith.constant 0 : index
    %c0_97 = arith.constant 0 : index
    %343 = vector.load %arg6[%c0_96, %c0_97] : memref<1x256xf32, #tpu.memory_space<vmem>>, vector<1x256xf32>
    %344 = vector.broadcast %343 : vector<1x256xf32> to vector<16x256xf32>
    %345 = arith.addf %342, %344 : vector<16x256xf32>
    %c0_98 = arith.constant 0 : index
    %c0_99 = arith.constant 0 : index
    %346 = vector.load %arg15[%c0_98, %c0_99] : memref<16x256xf32, #tpu.memory_space<vmem>>, vector<16x256xf32>
    tpu.vector_store %arg15[%c0_98, %c0_99], %345 {strides = array<i32>} : memref<16x256xf32, #tpu.memory_space<vmem>>, vector<16x256xf32>,
    %c0_100 = arith.constant 0 : index
    %c0_101 = arith.constant 0 : index
    %347 = vector.load %arg5[%c0_100, %c0_101] : memref<64x256xbf16, #tpu.memory_space<vmem>>, vector<64x256xbf16>
    %cst_102 = arith.constant 0.000000e+00 : f32
    %348 = vector.broadcast %cst_102 : f32 to vector<2x64xf32>
    %cst_103 = arith.constant 0.000000e+00 : f32
    %349 = vector.broadcast %cst_103 : f32 to vector<2x32xf32>
    %cst_104 = arith.constant 0.000000e+00 : f32
    %350 = vector.broadcast %cst_104 : f32 to vector<2x32xf32>
    %351 = arith.truncf %348 : vector<2x64xf32> to vector<2x64xbf16>
    %cst_105 = arith.constant dense<0.000000e+00> : vector<2x256xf32>
    %352 = tpu.matmul %351, %347, %cst_105 {dimension_numbers = #tpu.dot_dimension_numbers<[1], [0], [0], [1], [0, 0, 1, 1], [], []>} : vector<2x64xbf16>, vector<64x256xbf16>, vector<2x256xf32> -> vector<2x256xf32>
    %c0_106 = arith.constant 0 : index
    %c0_107 = arith.constant 0 : index
    %353 = vector.load %arg15[%c0_106, %c0_107] : memref<16x256xf32, #tpu.memory_space<vmem>>, vector<2x128xf32>
    %354 = vector.extract_strided_slice %352 {offsets = [0, 0], sizes = [2, 128], strides = [1, 1]} : vector<2x256xf32> to vector<2x128xf32>
    %355 = arith.addf %353, %354 : vector<2x128xf32>
    %c14_108 = arith.constant 14 : index
    %c128_109 = arith.constant 128 : index
    %356 = vector.load %arg15[%c14_108, %c128_109] : memref<16x256xf32, #tpu.memory_space<vmem>>, vector<2x128xf32>
    %357 = vector.extract_strided_slice %352 {offsets = [0, 128], sizes = [2, 128], strides = [1, 1]} : vector<2x256xf32> to vector<2x128xf32>
    %358 = arith.addf %356, %357 : vector<2x128xf32>
    %359 = arith.negf %355 : vector<2x128xf32>
    %360 = math.exp %359 : vector<2x128xf32>
    %cst_110 = arith.constant 1.000000e+00 : f32
    %361 = vector.broadcast %cst_110 : f32 to vector<2x128xf32>
    %362 = arith.addf %361, %360 : vector<2x128xf32>
    %363 = arith.divf %361, %362 : vector<2x128xf32>
    %364 = math.tanh %355 : vector<2x128xf32>
    %365 = vector.extract_strided_slice %363 {offsets = [0, 32], sizes = [2, 32], strides = [1, 1]} : vector<2x128xf32> to vector<2x32xf32>
    %366 = arith.mulf %365, %349 : vector<2x32xf32>
    %367 = vector.extract_strided_slice %363 {offsets = [0, 0], sizes = [2, 32], strides = [1, 1]} : vector<2x128xf32> to vector<2x32xf32>
    %368 = vector.extract_strided_slice %364 {offsets = [0, 64], sizes = [2, 32], strides = [1, 1]} : vector<2x128xf32> to vector<2x32xf32>
    %369 = arith.mulf %367, %368 : vector<2x32xf32>
    %370 = arith.addf %366, %369 : vector<2x32xf32>
    %371 = vector.extract_strided_slice %363 {offsets = [0, 96], sizes = [2, 32], strides = [1, 1]} : vector<2x128xf32> to vector<2x32xf32>
    %372 = math.tanh %370 : vector<2x32xf32>
    %373 = arith.mulf %371, %372 : vector<2x32xf32>
    %374 = arith.negf %358 : vector<2x128xf32>
    %375 = math.exp %374 : vector<2x128xf32>
    %cst_111 = arith.constant 1.000000e+00 : f32
    %376 = vector.broadcast %cst_111 : f32 to vector<2x128xf32>
    %377 = arith.addf %376, %375 : vector<2x128xf32>
    %378 = arith.divf %376, %377 : vector<2x128xf32>
    %379 = math.tanh %358 : vector<2x128xf32>
    %380 = vector.extract_strided_slice %378 {offsets = [0, 32], sizes = [2, 32], strides = [1, 1]} : vector<2x128xf32> to vector<2x32xf32>
    %381 = arith.mulf %380, %350 : vector<2x32xf32>
    %382 = vector.extract_strided_slice %378 {offsets = [0, 0], sizes = [2, 32], strides = [1, 1]} : vector<2x128xf32> to vector<2x32xf32>
    %383 = vector.extract_strided_slice %379 {offsets = [0, 64], sizes = [2, 32], strides = [1, 1]} : vector<2x128xf32> to vector<2x32xf32>
    %384 = arith.mulf %382, %383 : vector<2x32xf32>
    %385 = arith.addf %381, %384 : vector<2x32xf32>
    %386 = vector.extract_strided_slice %378 {offsets = [0, 96], sizes = [2, 32], strides = [1, 1]} : vector<2x128xf32> to vector<2x32xf32>
    %387 = math.tanh %385 : vector<2x32xf32>
    %388 = arith.mulf %386, %387 : vector<2x32xf32>
    %c0_112 = arith.constant 0 : index
    %c0_113 = arith.constant 0 : index
    %389 = vector.load %arg14[%c0_112, %c0_113] : memref<16x64xf32, #tpu.memory_space<vmem>>, vector<2x32xf32>
    tpu.vector_store %arg14[%c0_112, %c0_113], %373 {strides = array<i32>} : memref<16x64xf32, #tpu.memory_space<vmem>>, vector<2x32xf32>,
    %c14_114 = arith.constant 14 : index
    %c32_115 = arith.constant 32 : index
    %390 = vector.load %arg14[%c14_114, %c32_115] : memref<16x64xf32, #tpu.memory_space<vmem>>, vector<2x32xf32>
    tpu.vector_store %arg14[%c14_114, %c32_115], %388 {strides = array<i32>} : memref<16x64xf32, #tpu.memory_space<vmem>>, vector<2x32xf32>,
    %391 = tpu.concatenate %373, %388 in 1 : vector<2x32xf32>, vector<2x32xf32> -> vector<2x64xf32>
    %392 = arith.truncf %391 : vector<2x64xf32> to vector<2x64xbf16>
    %cst_116 = arith.constant dense<0.000000e+00> : vector<2x256xf32>
    %393 = tpu.matmul %392, %347, %cst_116 {dimension_numbers = #tpu.dot_dimension_numbers<[1], [0], [0], [1], [0, 0, 1, 1], [], []>} : vector<2x64xbf16>, vector<64x256xbf16>, vector<2x256xf32> -> vector<2x256xf32>
    %c2_117 = arith.constant 2 : index
    %c0_118 = arith.constant 0 : index
    %394 = vector.load %arg15[%c2_117, %c0_118] : memref<16x256xf32, #tpu.memory_space<vmem>>, vector<2x128xf32>
    %395 = vector.extract_strided_slice %393 {offsets = [0, 0], sizes = [2, 128], strides = [1, 1]} : vector<2x256xf32> to vector<2x128xf32>
    %396 = arith.addf %394, %395 : vector<2x128xf32>
    %c12_119 = arith.constant 12 : index
    %c128_120 = arith.constant 128 : index
    %397 = vector.load %arg15[%c12_119, %c128_120] : memref<16x256xf32, #tpu.memory_space<vmem>>, vector<2x128xf32>
    %398 = vector.extract_strided_slice %393 {offsets = [0, 128], sizes = [2, 128], strides = [1, 1]} : vector<2x256xf32> to vector<2x128xf32>
    %399 = arith.addf %397, %398 : vector<2x128xf32>
    %400 = arith.negf %396 : vector<2x128xf32>
    %401 = math.exp %400 : vector<2x128xf32>
    %cst_121 = arith.constant 1.000000e+00 : f32
    %402 = vector.broadcast %cst_121 : f32 to vector<2x128xf32>
    %403 = arith.addf %402, %401 : vector<2x128xf32>
    %404 = arith.divf %402, %403 : vector<2x128xf32>
    %405 = math.tanh %396 : vector<2x128xf32>
    %406 = vector.extract_strided_slice %404 {offsets = [0, 32], sizes = [2, 32], strides = [1, 1]} : vector<2x128xf32> to vector<2x32xf32>
    %407 = arith.mulf %406, %370 : vector<2x32xf32>
    %408 = vector.extract_strided_slice %404 {offsets = [0, 0], sizes = [2, 32], strides = [1, 1]} : vector<2x128xf32> to vector<2x32xf32>
    %409 = vector.extract_strided_slice %405 {offsets = [0, 64], sizes = [2, 32], strides = [1, 1]} : vector<2x128xf32> to vector<2x32xf32>
    %410 = arith.mulf %408, %409 : vector<2x32xf32>
    %411 = arith.addf %407, %410 : vector<2x32xf32>
    %412 = vector.extract_strided_slice %404 {offsets = [0, 96], sizes = [2, 32], strides = [1, 1]} : vector<2x128xf32> to vector<2x32xf32>
    %413 = math.tanh %411 : vector<2x32xf32>
    %414 = arith.mulf %412, %413 : vector<2x32xf32>
    %415 = arith.negf %399 : vector<2x128xf32>
    %416 = math.exp %415 : vector<2x128xf32>
    %cst_122 = arith.constant 1.000000e+00 : f32
    %417 = vector.broadcast %cst_122 : f32 to vector<2x128xf32>
    %418 = arith.addf %417, %416 : vector<2x128xf32>
    %419 = arith.divf %417, %418 : vector<2x128xf32>
    %420 = math.tanh %399 : vector<2x128xf32>
    %421 = vector.extract_strided_slice %419 {offsets = [0, 32], sizes = [2, 32], strides = [1, 1]} : vector<2x128xf32> to vector<2x32xf32>
    %422 = arith.mulf %421, %385 : vector<2x32xf32>
    %423 = vector.extract_strided_slice %419 {offsets = [0, 0], sizes = [2, 32], strides = [1, 1]} : vector<2x128xf32> to vector<2x32xf32>
    %424 = vector.extract_strided_slice %420 {offsets = [0, 64], sizes = [2, 32], strides = [1, 1]} : vector<2x128xf32> to vector<2x32xf32>
    %425 = arith.mulf %423, %424 : vector<2x32xf32>
    %426 = arith.addf %422, %425 : vector<2x32xf32>
    %427 = vector.extract_strided_slice %419 {offsets = [0, 96], sizes = [2, 32], strides = [1, 1]} : vector<2x128xf32> to vector<2x32xf32>
    %428 = math.tanh %426 : vector<2x32xf32>
    %429 = arith.mulf %427, %428 : vector<2x32xf32>
    %c2_123 = arith.constant 2 : index
    %c0_124 = arith.constant 0 : index
    %430 = vector.load %arg14[%c2_123, %c0_124] : memref<16x64xf32, #tpu.memory_space<vmem>>, vector<2x32xf32>
    tpu.vector_store %arg14[%c2_123, %c0_124], %414 {strides = array<i32>} : memref<16x64xf32, #tpu.memory_space<vmem>>, vector<2x32xf32>,
    %c12_125 = arith.constant 12 : index
    %c32_126 = arith.constant 32 : index
    %431 = vector.load %arg14[%c12_125, %c32_126] : memref<16x64xf32, #tpu.memory_space<vmem>>, vector<2x32xf32>
    tpu.vector_store %arg14[%c12_125, %c32_126], %429 {strides = array<i32>} : memref<16x64xf32, #tpu.memory_space<vmem>>, vector<2x32xf32>,
    %432 = tpu.concatenate %414, %429 in 1 : vector<2x32xf32>, vector<2x32xf32> -> vector<2x64xf32>
    %433 = arith.truncf %432 : vector<2x64xf32> to vector<2x64xbf16>
    %cst_127 = arith.constant dense<0.000000e+00> : vector<2x256xf32>
    %434 = tpu.matmul %433, %347, %cst_127 {dimension_numbers = #tpu.dot_dimension_numbers<[1], [0], [0], [1], [0, 0, 1, 1], [], []>} : vector<2x64xbf16>, vector<64x256xbf16>, vector<2x256xf32> -> vector<2x256xf32>
    %c4_128 = arith.constant 4 : index
    %c0_129 = arith.constant 0 : index
    %435 = vector.load %arg15[%c4_128, %c0_129] : memref<16x256xf32, #tpu.memory_space<vmem>>, vector<2x128xf32>
    %436 = vector.extract_strided_slice %434 {offsets = [0, 0], sizes = [2, 128], strides = [1, 1]} : vector<2x256xf32> to vector<2x128xf32>
    %437 = arith.addf %435, %436 : vector<2x128xf32>
    %c10_130 = arith.constant 10 : index
    %c128_131 = arith.constant 128 : index
    %438 = vector.load %arg15[%c10_130, %c128_131] : memref<16x256xf32, #tpu.memory_space<vmem>>, vector<2x128xf32>
    %439 = vector.extract_strided_slice %434 {offsets = [0, 128], sizes = [2, 128], strides = [1, 1]} : vector<2x256xf32> to vector<2x128xf32>
    %440 = arith.addf %438, %439 : vector<2x128xf32>
    %441 = arith.negf %437 : vector<2x128xf32>
    %442 = math.exp %441 : vector<2x128xf32>
    %cst_132 = arith.constant 1.000000e+00 : f32
    %443 = vector.broadcast %cst_132 : f32 to vector<2x128xf32>
    %444 = arith.addf %443, %442 : vector<2x128xf32>
    %445 = arith.divf %443, %444 : vector<2x128xf32>
    %446 = math.tanh %437 : vector<2x128xf32>
    %447 = vector.extract_strided_slice %445 {offsets = [0, 32], sizes = [2, 32], strides = [1, 1]} : vector<2x128xf32> to vector<2x32xf32>
    %448 = arith.mulf %447, %411 : vector<2x32xf32>
    %449 = vector.extract_strided_slice %445 {offsets = [0, 0], sizes = [2, 32], strides = [1, 1]} : vector<2x128xf32> to vector<2x32xf32>
    %450 = vector.extract_strided_slice %446 {offsets = [0, 64], sizes = [2, 32], strides = [1, 1]} : vector<2x128xf32> to vector<2x32xf32>
    %451 = arith.mulf %449, %450 : vector<2x32xf32>
    %452 = arith.addf %448, %451 : vector<2x32xf32>
    %453 = vector.extract_strided_slice %445 {offsets = [0, 96], sizes = [2, 32], strides = [1, 1]} : vector<2x128xf32> to vector<2x32xf32>
    %454 = math.tanh %452 : vector<2x32xf32>
    %455 = arith.mulf %453, %454 : vector<2x32xf32>
    %456 = arith.negf %440 : vector<2x128xf32>
    %457 = math.exp %456 : vector<2x128xf32>
    %cst_133 = arith.constant 1.000000e+00 : f32
    %458 = vector.broadcast %cst_133 : f32 to vector<2x128xf32>
    %459 = arith.addf %458, %457 : vector<2x128xf32>
    %460 = arith.divf %458, %459 : vector<2x128xf32>
    %461 = math.tanh %440 : vector<2x128xf32>
    %462 = vector.extract_strided_slice %460 {offsets = [0, 32], sizes = [2, 32], strides = [1, 1]} : vector<2x128xf32> to vector<2x32xf32>
    %463 = arith.mulf %462, %426 : vector<2x32xf32>
    %464 = vector.extract_strided_slice %460 {offsets = [0, 0], sizes = [2, 32], strides = [1, 1]} : vector<2x128xf32> to vector<2x32xf32>
    %465 = vector.extract_strided_slice %461 {offsets = [0, 64], sizes = [2, 32], strides = [1, 1]} : vector<2x128xf32> to vector<2x32xf32>
    %466 = arith.mulf %464, %465 : vector<2x32xf32>
    %467 = arith.addf %463, %466 : vector<2x32xf32>
    %468 = vector.extract_strided_slice %460 {offsets = [0, 96], sizes = [2, 32], strides = [1, 1]} : vector<2x128xf32> to vector<2x32xf32>
    %469 = math.tanh %467 : vector<2x32xf32>
    %470 = arith.mulf %468, %469 : vector<2x32xf32>
    %c4_134 = arith.constant 4 : index
    %c0_135 = arith.constant 0 : index
    %471 = vector.load %arg14[%c4_134, %c0_135] : memref<16x64xf32, #tpu.memory_space<vmem>>, vector<2x32xf32>
    tpu.vector_store %arg14[%c4_134, %c0_135], %455 {strides = array<i32>} : memref<16x64xf32, #tpu.memory_space<vmem>>, vector<2x32xf32>,
    %c10_136 = arith.constant 10 : index
    %c32_137 = arith.constant 32 : index
    %472 = vector.load %arg14[%c10_136, %c32_137] : memref<16x64xf32, #tpu.memory_space<vmem>>, vector<2x32xf32>
    tpu.vector_store %arg14[%c10_136, %c32_137], %470 {strides = array<i32>} : memref<16x64xf32, #tpu.memory_space<vmem>>, vector<2x32xf32>,
    %473 = tpu.concatenate %455, %470 in 1 : vector<2x32xf32>, vector<2x32xf32> -> vector<2x64xf32>
    %474 = arith.truncf %473 : vector<2x64xf32> to vector<2x64xbf16>
    %cst_138 = arith.constant dense<0.000000e+00> : vector<2x256xf32>
    %475 = tpu.matmul %474, %347, %cst_138 {dimension_numbers = #tpu.dot_dimension_numbers<[1], [0], [0], [1], [0, 0, 1, 1], [], []>} : vector<2x64xbf16>, vector<64x256xbf16>, vector<2x256xf32> -> vector<2x256xf32>
    %c6_139 = arith.constant 6 : index
    %c0_140 = arith.constant 0 : index
    %476 = vector.load %arg15[%c6_139, %c0_140] : memref<16x256xf32, #tpu.memory_space<vmem>>, vector<2x128xf32>
    %477 = vector.extract_strided_slice %475 {offsets = [0, 0], sizes = [2, 128], strides = [1, 1]} : vector<2x256xf32> to vector<2x128xf32>
    %478 = arith.addf %476, %477 : vector<2x128xf32>
    %c8_141 = arith.constant 8 : index
    %c128_142 = arith.constant 128 : index
    %479 = vector.load %arg15[%c8_141, %c128_142] : memref<16x256xf32, #tpu.memory_space<vmem>>, vector<2x128xf32>
    %480 = vector.extract_strided_slice %475 {offsets = [0, 128], sizes = [2, 128], strides = [1, 1]} : vector<2x256xf32> to vector<2x128xf32>
    %481 = arith.addf %479, %480 : vector<2x128xf32>
    %482 = arith.negf %478 : vector<2x128xf32>
    %483 = math.exp %482 : vector<2x128xf32>
    %cst_143 = arith.constant 1.000000e+00 : f32
    %484 = vector.broadcast %cst_143 : f32 to vector<2x128xf32>
    %485 = arith.addf %484, %483 : vector<2x128xf32>
    %486 = arith.divf %484, %485 : vector<2x128xf32>
    %487 = math.tanh %478 : vector<2x128xf32>
    %488 = vector.extract_strided_slice %486 {offsets = [0, 32], sizes = [2, 32], strides = [1, 1]} : vector<2x128xf32> to vector<2x32xf32>
    %489 = arith.mulf %488, %452 : vector<2x32xf32>
    %490 = vector.extract_strided_slice %486 {offsets = [0, 0], sizes = [2, 32], strides = [1, 1]} : vector<2x128xf32> to vector<2x32xf32>
    %491 = vector.extract_strided_slice %487 {offsets = [0, 64], sizes = [2, 32], strides = [1, 1]} : vector<2x128xf32> to vector<2x32xf32>
    %492 = arith.mulf %490, %491 : vector<2x32xf32>
    %493 = arith.addf %489, %492 : vector<2x32xf32>
    %494 = vector.extract_strided_slice %486 {offsets = [0, 96], sizes = [2, 32], strides = [1, 1]} : vector<2x128xf32> to vector<2x32xf32>
    %495 = math.tanh %493 : vector<2x32xf32>
    %496 = arith.mulf %494, %495 : vector<2x32xf32>
    %497 = arith.negf %481 : vector<2x128xf32>
    %498 = math.exp %497 : vector<2x128xf32>
    %cst_144 = arith.constant 1.000000e+00 : f32
    %499 = vector.broadcast %cst_144 : f32 to vector<2x128xf32>
    %500 = arith.addf %499, %498 : vector<2x128xf32>
    %501 = arith.divf %499, %500 : vector<2x128xf32>
    %502 = math.tanh %481 : vector<2x128xf32>
    %503 = vector.extract_strided_slice %501 {offsets = [0, 32], sizes = [2, 32], strides = [1, 1]} : vector<2x128xf32> to vector<2x32xf32>
    %504 = arith.mulf %503, %467 : vector<2x32xf32>
    %505 = vector.extract_strided_slice %501 {offsets = [0, 0], sizes = [2, 32], strides = [1, 1]} : vector<2x128xf32> to vector<2x32xf32>
    %506 = vector.extract_strided_slice %502 {offsets = [0, 64], sizes = [2, 32], strides = [1, 1]} : vector<2x128xf32> to vector<2x32xf32>
    %507 = arith.mulf %505, %506 : vector<2x32xf32>
    %508 = arith.addf %504, %507 : vector<2x32xf32>
    %509 = vector.extract_strided_slice %501 {offsets = [0, 96], sizes = [2, 32], strides = [1, 1]} : vector<2x128xf32> to vector<2x32xf32>
    %510 = math.tanh %508 : vector<2x32xf32>
    %511 = arith.mulf %509, %510 : vector<2x32xf32>
    %c6_145 = arith.constant 6 : index
    %c0_146 = arith.constant 0 : index
    %512 = vector.load %arg14[%c6_145, %c0_146] : memref<16x64xf32, #tpu.memory_space<vmem>>, vector<2x32xf32>
    tpu.vector_store %arg14[%c6_145, %c0_146], %496 {strides = array<i32>} : memref<16x64xf32, #tpu.memory_space<vmem>>, vector<2x32xf32>,
    %c8_147 = arith.constant 8 : index
    %c32_148 = arith.constant 32 : index
    %513 = vector.load %arg14[%c8_147, %c32_148] : memref<16x64xf32, #tpu.memory_space<vmem>>, vector<2x32xf32>
    tpu.vector_store %arg14[%c8_147, %c32_148], %511 {strides = array<i32>} : memref<16x64xf32, #tpu.memory_space<vmem>>, vector<2x32xf32>,
    %514 = tpu.concatenate %496, %511 in 1 : vector<2x32xf32>, vector<2x32xf32> -> vector<2x64xf32>
    %515 = arith.truncf %514 : vector<2x64xf32> to vector<2x64xbf16>
    %cst_149 = arith.constant dense<0.000000e+00> : vector<2x256xf32>
    %516 = tpu.matmul %515, %347, %cst_149 {dimension_numbers = #tpu.dot_dimension_numbers<[1], [0], [0], [1], [0, 0, 1, 1], [], []>} : vector<2x64xbf16>, vector<64x256xbf16>, vector<2x256xf32> -> vector<2x256xf32>
    %c8_150 = arith.constant 8 : index
    %c0_151 = arith.constant 0 : index
    %517 = vector.load %arg15[%c8_150, %c0_151] : memref<16x256xf32, #tpu.memory_space<vmem>>, vector<2x128xf32>
    %518 = vector.extract_strided_slice %516 {offsets = [0, 0], sizes = [2, 128], strides = [1, 1]} : vector<2x256xf32> to vector<2x128xf32>
    %519 = arith.addf %517, %518 : vector<2x128xf32>
    %c6_152 = arith.constant 6 : index
    %c128_153 = arith.constant 128 : index
    %520 = vector.load %arg15[%c6_152, %c128_153] : memref<16x256xf32, #tpu.memory_space<vmem>>, vector<2x128xf32>
    %521 = vector.extract_strided_slice %516 {offsets = [0, 128], sizes = [2, 128], strides = [1, 1]} : vector<2x256xf32> to vector<2x128xf32>
    %522 = arith.addf %520, %521 : vector<2x128xf32>
    %523 = arith.negf %519 : vector<2x128xf32>
    %524 = math.exp %523 : vector<2x128xf32>
    %cst_154 = arith.constant 1.000000e+00 : f32
    %525 = vector.broadcast %cst_154 : f32 to vector<2x128xf32>
    %526 = arith.addf %525, %524 : vector<2x128xf32>
    %527 = arith.divf %525, %526 : vector<2x128xf32>
    %528 = math.tanh %519 : vector<2x128xf32>
    %529 = vector.extract_strided_slice %527 {offsets = [0, 32], sizes = [2, 32], strides = [1, 1]} : vector<2x128xf32> to vector<2x32xf32>
    %530 = arith.mulf %529, %493 : vector<2x32xf32>
    %531 = vector.extract_strided_slice %527 {offsets = [0, 0], sizes = [2, 32], strides = [1, 1]} : vector<2x128xf32> to vector<2x32xf32>
    %532 = vector.extract_strided_slice %528 {offsets = [0, 64], sizes = [2, 32], strides = [1, 1]} : vector<2x128xf32> to vector<2x32xf32>
    %533 = arith.mulf %531, %532 : vector<2x32xf32>
    %534 = arith.addf %530, %533 : vector<2x32xf32>
    %535 = vector.extract_strided_slice %527 {offsets = [0, 96], sizes = [2, 32], strides = [1, 1]} : vector<2x128xf32> to vector<2x32xf32>
    %536 = math.tanh %534 : vector<2x32xf32>
    %537 = arith.mulf %535, %536 : vector<2x32xf32>
    %538 = arith.negf %522 : vector<2x128xf32>
    %539 = math.exp %538 : vector<2x128xf32>
    %cst_155 = arith.constant 1.000000e+00 : f32
    %540 = vector.broadcast %cst_155 : f32 to vector<2x128xf32>
    %541 = arith.addf %540, %539 : vector<2x128xf32>
    %542 = arith.divf %540, %541 : vector<2x128xf32>
    %543 = math.tanh %522 : vector<2x128xf32>
    %544 = vector.extract_strided_slice %542 {offsets = [0, 32], sizes = [2, 32], strides = [1, 1]} : vector<2x128xf32> to vector<2x32xf32>
    %545 = arith.mulf %544, %508 : vector<2x32xf32>
    %546 = vector.extract_strided_slice %542 {offsets = [0, 0], sizes = [2, 32], strides = [1, 1]} : vector<2x128xf32> to vector<2x32xf32>
    %547 = vector.extract_strided_slice %543 {offsets = [0, 64], sizes = [2, 32], strides = [1, 1]} : vector<2x128xf32> to vector<2x32xf32>
    %548 = arith.mulf %546, %547 : vector<2x32xf32>
    %549 = arith.addf %545, %548 : vector<2x32xf32>
    %550 = vector.extract_strided_slice %542 {offsets = [0, 96], sizes = [2, 32], strides = [1, 1]} : vector<2x128xf32> to vector<2x32xf32>
    %551 = math.tanh %549 : vector<2x32xf32>
    %552 = arith.mulf %550, %551 : vector<2x32xf32>
    %c8_156 = arith.constant 8 : index
    %c0_157 = arith.constant 0 : index
    %553 = vector.load %arg14[%c8_156, %c0_157] : memref<16x64xf32, #tpu.memory_space<vmem>>, vector<2x32xf32>
    tpu.vector_store %arg14[%c8_156, %c0_157], %537 {strides = array<i32>} : memref<16x64xf32, #tpu.memory_space<vmem>>, vector<2x32xf32>,
    %c6_158 = arith.constant 6 : index
    %c32_159 = arith.constant 32 : index
    %554 = vector.load %arg14[%c6_158, %c32_159] : memref<16x64xf32, #tpu.memory_space<vmem>>, vector<2x32xf32>
    tpu.vector_store %arg14[%c6_158, %c32_159], %552 {strides = array<i32>} : memref<16x64xf32, #tpu.memory_space<vmem>>, vector<2x32xf32>,
    %555 = tpu.concatenate %537, %552 in 1 : vector<2x32xf32>, vector<2x32xf32> -> vector<2x64xf32>
    %556 = arith.truncf %555 : vector<2x64xf32> to vector<2x64xbf16>
    %cst_160 = arith.constant dense<0.000000e+00> : vector<2x256xf32>
    %557 = tpu.matmul %556, %347, %cst_160 {dimension_numbers = #tpu.dot_dimension_numbers<[1], [0], [0], [1], [0, 0, 1, 1], [], []>} : vector<2x64xbf16>, vector<64x256xbf16>, vector<2x256xf32> -> vector<2x256xf32>
    %c10_161 = arith.constant 10 : index
    %c0_162 = arith.constant 0 : index
    %558 = vector.load %arg15[%c10_161, %c0_162] : memref<16x256xf32, #tpu.memory_space<vmem>>, vector<2x128xf32>
    %559 = vector.extract_strided_slice %557 {offsets = [0, 0], sizes = [2, 128], strides = [1, 1]} : vector<2x256xf32> to vector<2x128xf32>
    %560 = arith.addf %558, %559 : vector<2x128xf32>
    %c4_163 = arith.constant 4 : index
    %c128_164 = arith.constant 128 : index
    %561 = vector.load %arg15[%c4_163, %c128_164] : memref<16x256xf32, #tpu.memory_space<vmem>>, vector<2x128xf32>
    %562 = vector.extract_strided_slice %557 {offsets = [0, 128], sizes = [2, 128], strides = [1, 1]} : vector<2x256xf32> to vector<2x128xf32>
    %563 = arith.addf %561, %562 : vector<2x128xf32>
    %564 = arith.negf %560 : vector<2x128xf32>
    %565 = math.exp %564 : vector<2x128xf32>
    %cst_165 = arith.constant 1.000000e+00 : f32
    %566 = vector.broadcast %cst_165 : f32 to vector<2x128xf32>
    %567 = arith.addf %566, %565 : vector<2x128xf32>
    %568 = arith.divf %566, %567 : vector<2x128xf32>
    %569 = math.tanh %560 : vector<2x128xf32>
    %570 = vector.extract_strided_slice %568 {offsets = [0, 32], sizes = [2, 32], strides = [1, 1]} : vector<2x128xf32> to vector<2x32xf32>
    %571 = arith.mulf %570, %534 : vector<2x32xf32>
    %572 = vector.extract_strided_slice %568 {offsets = [0, 0], sizes = [2, 32], strides = [1, 1]} : vector<2x128xf32> to vector<2x32xf32>
    %573 = vector.extract_strided_slice %569 {offsets = [0, 64], sizes = [2, 32], strides = [1, 1]} : vector<2x128xf32> to vector<2x32xf32>
    %574 = arith.mulf %572, %573 : vector<2x32xf32>
    %575 = arith.addf %571, %574 : vector<2x32xf32>
    %576 = vector.extract_strided_slice %568 {offsets = [0, 96], sizes = [2, 32], strides = [1, 1]} : vector<2x128xf32> to vector<2x32xf32>
    %577 = math.tanh %575 : vector<2x32xf32>
    %578 = arith.mulf %576, %577 : vector<2x32xf32>
    %579 = arith.negf %563 : vector<2x128xf32>
    %580 = math.exp %579 : vector<2x128xf32>
    %cst_166 = arith.constant 1.000000e+00 : f32
    %581 = vector.broadcast %cst_166 : f32 to vector<2x128xf32>
    %582 = arith.addf %581, %580 : vector<2x128xf32>
    %583 = arith.divf %581, %582 : vector<2x128xf32>
    %584 = math.tanh %563 : vector<2x128xf32>
    %585 = vector.extract_strided_slice %583 {offsets = [0, 32], sizes = [2, 32], strides = [1, 1]} : vector<2x128xf32> to vector<2x32xf32>
    %586 = arith.mulf %585, %549 : vector<2x32xf32>
    %587 = vector.extract_strided_slice %583 {offsets = [0, 0], sizes = [2, 32], strides = [1, 1]} : vector<2x128xf32> to vector<2x32xf32>
    %588 = vector.extract_strided_slice %584 {offsets = [0, 64], sizes = [2, 32], strides = [1, 1]} : vector<2x128xf32> to vector<2x32xf32>
    %589 = arith.mulf %587, %588 : vector<2x32xf32>
    %590 = arith.addf %586, %589 : vector<2x32xf32>
    %591 = vector.extract_strided_slice %583 {offsets = [0, 96], sizes = [2, 32], strides = [1, 1]} : vector<2x128xf32> to vector<2x32xf32>
    %592 = math.tanh %590 : vector<2x32xf32>
    %593 = arith.mulf %591, %592 : vector<2x32xf32>
    %c10_167 = arith.constant 10 : index
    %c0_168 = arith.constant 0 : index
    %594 = vector.load %arg14[%c10_167, %c0_168] : memref<16x64xf32, #tpu.memory_space<vmem>>, vector<2x32xf32>
    tpu.vector_store %arg14[%c10_167, %c0_168], %578 {strides = array<i32>} : memref<16x64xf32, #tpu.memory_space<vmem>>, vector<2x32xf32>,
    %c4_169 = arith.constant 4 : index
    %c32_170 = arith.constant 32 : index
    %595 = vector.load %arg14[%c4_169, %c32_170] : memref<16x64xf32, #tpu.memory_space<vmem>>, vector<2x32xf32>
    tpu.vector_store %arg14[%c4_169, %c32_170], %593 {strides = array<i32>} : memref<16x64xf32, #tpu.memory_space<vmem>>, vector<2x32xf32>,
    %596 = tpu.concatenate %578, %593 in 1 : vector<2x32xf32>, vector<2x32xf32> -> vector<2x64xf32>
    %597 = arith.truncf %596 : vector<2x64xf32> to vector<2x64xbf16>
    %cst_171 = arith.constant dense<0.000000e+00> : vector<2x256xf32>
    %598 = tpu.matmul %597, %347, %cst_171 {dimension_numbers = #tpu.dot_dimension_numbers<[1], [0], [0], [1], [0, 0, 1, 1], [], []>} : vector<2x64xbf16>, vector<64x256xbf16>, vector<2x256xf32> -> vector<2x256xf32>
    %c12_172 = arith.constant 12 : index
    %c0_173 = arith.constant 0 : index
    %599 = vector.load %arg15[%c12_172, %c0_173] : memref<16x256xf32, #tpu.memory_space<vmem>>, vector<2x128xf32>
    %600 = vector.extract_strided_slice %598 {offsets = [0, 0], sizes = [2, 128], strides = [1, 1]} : vector<2x256xf32> to vector<2x128xf32>
    %601 = arith.addf %599, %600 : vector<2x128xf32>
    %c2_174 = arith.constant 2 : index
    %c128_175 = arith.constant 128 : index
    %602 = vector.load %arg15[%c2_174, %c128_175] : memref<16x256xf32, #tpu.memory_space<vmem>>, vector<2x128xf32>
    %603 = vector.extract_strided_slice %598 {offsets = [0, 128], sizes = [2, 128], strides = [1, 1]} : vector<2x256xf32> to vector<2x128xf32>
    %604 = arith.addf %602, %603 : vector<2x128xf32>
    %605 = arith.negf %601 : vector<2x128xf32>
    %606 = math.exp %605 : vector<2x128xf32>
    %cst_176 = arith.constant 1.000000e+00 : f32
    %607 = vector.broadcast %cst_176 : f32 to vector<2x128xf32>
    %608 = arith.addf %607, %606 : vector<2x128xf32>
    %609 = arith.divf %607, %608 : vector<2x128xf32>
    %610 = math.tanh %601 : vector<2x128xf32>
    %611 = vector.extract_strided_slice %609 {offsets = [0, 32], sizes = [2, 32], strides = [1, 1]} : vector<2x128xf32> to vector<2x32xf32>
    %612 = arith.mulf %611, %575 : vector<2x32xf32>
    %613 = vector.extract_strided_slice %609 {offsets = [0, 0], sizes = [2, 32], strides = [1, 1]} : vector<2x128xf32> to vector<2x32xf32>
    %614 = vector.extract_strided_slice %610 {offsets = [0, 64], sizes = [2, 32], strides = [1, 1]} : vector<2x128xf32> to vector<2x32xf32>
    %615 = arith.mulf %613, %614 : vector<2x32xf32>
    %616 = arith.addf %612, %615 : vector<2x32xf32>
    %617 = vector.extract_strided_slice %609 {offsets = [0, 96], sizes = [2, 32], strides = [1, 1]} : vector<2x128xf32> to vector<2x32xf32>
    %618 = math.tanh %616 : vector<2x32xf32>
    %619 = arith.mulf %617, %618 : vector<2x32xf32>
    %620 = arith.negf %604 : vector<2x128xf32>
    %621 = math.exp %620 : vector<2x128xf32>
    %cst_177 = arith.constant 1.000000e+00 : f32
    %622 = vector.broadcast %cst_177 : f32 to vector<2x128xf32>
    %623 = arith.addf %622, %621 : vector<2x128xf32>
    %624 = arith.divf %622, %623 : vector<2x128xf32>
    %625 = math.tanh %604 : vector<2x128xf32>
    %626 = vector.extract_strided_slice %624 {offsets = [0, 32], sizes = [2, 32], strides = [1, 1]} : vector<2x128xf32> to vector<2x32xf32>
    %627 = arith.mulf %626, %590 : vector<2x32xf32>
    %628 = vector.extract_strided_slice %624 {offsets = [0, 0], sizes = [2, 32], strides = [1, 1]} : vector<2x128xf32> to vector<2x32xf32>
    %629 = vector.extract_strided_slice %625 {offsets = [0, 64], sizes = [2, 32], strides = [1, 1]} : vector<2x128xf32> to vector<2x32xf32>
    %630 = arith.mulf %628, %629 : vector<2x32xf32>
    %631 = arith.addf %627, %630 : vector<2x32xf32>
    %632 = vector.extract_strided_slice %624 {offsets = [0, 96], sizes = [2, 32], strides = [1, 1]} : vector<2x128xf32> to vector<2x32xf32>
    %633 = math.tanh %631 : vector<2x32xf32>
    %634 = arith.mulf %632, %633 : vector<2x32xf32>
    %c12_178 = arith.constant 12 : index
    %c0_179 = arith.constant 0 : index
    %635 = vector.load %arg14[%c12_178, %c0_179] : memref<16x64xf32, #tpu.memory_space<vmem>>, vector<2x32xf32>
    tpu.vector_store %arg14[%c12_178, %c0_179], %619 {strides = array<i32>} : memref<16x64xf32, #tpu.memory_space<vmem>>, vector<2x32xf32>,
    %c2_180 = arith.constant 2 : index
    %c32_181 = arith.constant 32 : index
    %636 = vector.load %arg14[%c2_180, %c32_181] : memref<16x64xf32, #tpu.memory_space<vmem>>, vector<2x32xf32>
    tpu.vector_store %arg14[%c2_180, %c32_181], %634 {strides = array<i32>} : memref<16x64xf32, #tpu.memory_space<vmem>>, vector<2x32xf32>,
    %637 = tpu.concatenate %619, %634 in 1 : vector<2x32xf32>, vector<2x32xf32> -> vector<2x64xf32>
    %638 = arith.truncf %637 : vector<2x64xf32> to vector<2x64xbf16>
    %cst_182 = arith.constant dense<0.000000e+00> : vector<2x256xf32>
    %639 = tpu.matmul %638, %347, %cst_182 {dimension_numbers = #tpu.dot_dimension_numbers<[1], [0], [0], [1], [0, 0, 1, 1], [], []>} : vector<2x64xbf16>, vector<64x256xbf16>, vector<2x256xf32> -> vector<2x256xf32>
    %c14_183 = arith.constant 14 : index
    %c0_184 = arith.constant 0 : index
    %640 = vector.load %arg15[%c14_183, %c0_184] : memref<16x256xf32, #tpu.memory_space<vmem>>, vector<2x128xf32>
    %641 = vector.extract_strided_slice %639 {offsets = [0, 0], sizes = [2, 128], strides = [1, 1]} : vector<2x256xf32> to vector<2x128xf32>
    %642 = arith.addf %640, %641 : vector<2x128xf32>
    %c0_185 = arith.constant 0 : index
    %c128_186 = arith.constant 128 : index
    %643 = vector.load %arg15[%c0_185, %c128_186] : memref<16x256xf32, #tpu.memory_space<vmem>>, vector<2x128xf32>
    %644 = vector.extract_strided_slice %639 {offsets = [0, 128], sizes = [2, 128], strides = [1, 1]} : vector<2x256xf32> to vector<2x128xf32>
    %645 = arith.addf %643, %644 : vector<2x128xf32>
    %646 = arith.negf %642 : vector<2x128xf32>
    %647 = math.exp %646 : vector<2x128xf32>
    %cst_187 = arith.constant 1.000000e+00 : f32
    %648 = vector.broadcast %cst_187 : f32 to vector<2x128xf32>
    %649 = arith.addf %648, %647 : vector<2x128xf32>
    %650 = arith.divf %648, %649 : vector<2x128xf32>
    %651 = math.tanh %642 : vector<2x128xf32>
    %652 = vector.extract_strided_slice %650 {offsets = [0, 32], sizes = [2, 32], strides = [1, 1]} : vector<2x128xf32> to vector<2x32xf32>
    %653 = arith.mulf %652, %616 : vector<2x32xf32>
    %654 = vector.extract_strided_slice %650 {offsets = [0, 0], sizes = [2, 32], strides = [1, 1]} : vector<2x128xf32> to vector<2x32xf32>
    %655 = vector.extract_strided_slice %651 {offsets = [0, 64], sizes = [2, 32], strides = [1, 1]} : vector<2x128xf32> to vector<2x32xf32>
    %656 = arith.mulf %654, %655 : vector<2x32xf32>
    %657 = arith.addf %653, %656 : vector<2x32xf32>
    %658 = vector.extract_strided_slice %650 {offsets = [0, 96], sizes = [2, 32], strides = [1, 1]} : vector<2x128xf32> to vector<2x32xf32>
    %659 = math.tanh %657 : vector<2x32xf32>
    %660 = arith.mulf %658, %659 : vector<2x32xf32>
    %661 = arith.negf %645 : vector<2x128xf32>
    %662 = math.exp %661 : vector<2x128xf32>
    %cst_188 = arith.constant 1.000000e+00 : f32
    %663 = vector.broadcast %cst_188 : f32 to vector<2x128xf32>
    %664 = arith.addf %663, %662 : vector<2x128xf32>
    %665 = arith.divf %663, %664 : vector<2x128xf32>
    %666 = math.tanh %645 : vector<2x128xf32>
    %667 = vector.extract_strided_slice %665 {offsets = [0, 32], sizes = [2, 32], strides = [1, 1]} : vector<2x128xf32> to vector<2x32xf32>
    %668 = arith.mulf %667, %631 : vector<2x32xf32>
    %669 = vector.extract_strided_slice %665 {offsets = [0, 0], sizes = [2, 32], strides = [1, 1]} : vector<2x128xf32> to vector<2x32xf32>
    %670 = vector.extract_strided_slice %666 {offsets = [0, 64], sizes = [2, 32], strides = [1, 1]} : vector<2x128xf32> to vector<2x32xf32>
    %671 = arith.mulf %669, %670 : vector<2x32xf32>
    %672 = arith.addf %668, %671 : vector<2x32xf32>
    %673 = vector.extract_strided_slice %665 {offsets = [0, 96], sizes = [2, 32], strides = [1, 1]} : vector<2x128xf32> to vector<2x32xf32>
    %674 = math.tanh %672 : vector<2x32xf32>
    %675 = arith.mulf %673, %674 : vector<2x32xf32>
    %c14_189 = arith.constant 14 : index
    %c0_190 = arith.constant 0 : index
    %676 = vector.load %arg14[%c14_189, %c0_190] : memref<16x64xf32, #tpu.memory_space<vmem>>, vector<2x32xf32>
    tpu.vector_store %arg14[%c14_189, %c0_190], %660 {strides = array<i32>} : memref<16x64xf32, #tpu.memory_space<vmem>>, vector<2x32xf32>,
    %c0_191 = arith.constant 0 : index
    %c32_192 = arith.constant 32 : index
    %677 = vector.load %arg14[%c0_191, %c32_192] : memref<16x64xf32, #tpu.memory_space<vmem>>, vector<2x32xf32>
    tpu.vector_store %arg14[%c0_191, %c32_192], %675 {strides = array<i32>} : memref<16x64xf32, #tpu.memory_space<vmem>>, vector<2x32xf32>,
    %678 = tpu.concatenate %660, %675 in 1 : vector<2x32xf32>, vector<2x32xf32> -> vector<2x64xf32>
    %c0_193 = arith.constant 0 : index
    %c0_194 = arith.constant 0 : index
    %679 = vector.load %arg14[%c0_193, %c0_194] : memref<16x64xf32, #tpu.memory_space<vmem>>, vector<16x64xf32>
    %680 = arith.truncf %679 : vector<16x64xf32> to vector<16x64xbf16>
    %c0_195 = arith.constant 0 : index
    %c0_196 = arith.constant 0 : index
    %681 = vector.load %arg7[%c0_195, %c0_196] : memref<64x5xbf16, #tpu.memory_space<vmem>>, vector<64x5xbf16>
    %cst_197 = arith.constant dense<0.000000e+00> : vector<16x5xf32>
    %682 = tpu.matmul %680, %681, %cst_197 {dimension_numbers = #tpu.dot_dimension_numbers<[1], [0], [0], [1], [0, 0, 1, 1], [], []>} : vector<16x64xbf16>, vector<64x5xbf16>, vector<16x5xf32> -> vector<16x5xf32>
    %c0_198 = arith.constant 0 : index
    %c0_199 = arith.constant 0 : index
    %683 = vector.load %arg8[%c0_198, %c0_199] : memref<1x5xf32, #tpu.memory_space<vmem>>, vector<1x5xf32>
    %684 = vector.broadcast %683 : vector<1x5xf32> to vector<16x5xf32>
    %685 = arith.addf %682, %684 : vector<16x5xf32>
    %c0_200 = arith.constant 0 : index
    %c0_201 = arith.constant 0 : index
    %686 = vector.load %arg11[%c0_200, %c0_201] : memref<16x5xf32, #tpu.memory_space<vmem>>, vector<16x5xf32>
    tpu.vector_store %arg11[%c0_200, %c0_201], %685 {strides = array<i32>} : memref<16x5xf32, #tpu.memory_space<vmem>>, vector<16x5xf32>,
    %687 = arith.truncf %678 : vector<2x64xf32> to vector<2x64xbf16>
    %c0_202 = arith.constant 0 : index
    %c0_203 = arith.constant 0 : index
    %688 = vector.load %arg9[%c0_202, %c0_203] : memref<64x3xbf16, #tpu.memory_space<vmem>>, vector<64x3xbf16>
    %cst_204 = arith.constant dense<0.000000e+00> : vector<2x3xf32>
    %689 = tpu.matmul %687, %688, %cst_204 {dimension_numbers = #tpu.dot_dimension_numbers<[1], [0], [0], [1], [0, 0, 1, 1], [], []>} : vector<2x64xbf16>, vector<64x3xbf16>, vector<2x3xf32> -> vector<2x3xf32>
    %c0_205 = arith.constant 0 : index
    %c0_206 = arith.constant 0 : index
    %690 = vector.load %arg10[%c0_205, %c0_206] : memref<1x3xf32, #tpu.memory_space<vmem>>, vector<1x3xf32>
    %691 = vector.broadcast %690 : vector<1x3xf32> to vector<2x3xf32>
    %692 = arith.addf %689, %691 : vector<2x3xf32>
    %c0_207 = arith.constant 0 : index
    %c0_208 = arith.constant 0 : index
    %693 = vector.load %arg12[%c0_207, %c0_208] : memref<2x3xf32, #tpu.memory_space<vmem>>, vector<2x3xf32>
    tpu.vector_store %arg12[%c0_207, %c0_208], %692 {strides = array<i32>} : memref<2x3xf32, #tpu.memory_space<vmem>>, vector<2x3xf32>,
    return
  }
}

</mosaic_0001>

<bundles_post_ra>
// kernel: combined_model_forward.1
= control target key start
LH: loop header
LB: loop body
LE: loop exit
PB: predicated region body
PF: predicated region fallthrough
CT: control target
= control target key end

     0   :  { %18 = vsyncpa [#allocation6], 0  ;;  %s3951_s0 = inlined_call_operand.vmem [shape: f32[16,16], index: 0, kind: input, shape index: {}]   ;;  %s3952_s1 = inlined_call_operand.vmem [shape: bf16[16,256], index: 1, kind: input, shape index: {}]   ;;  %s3953_s2 = inlined_call_operand.vmem [shape: bf16[64,256], index: 2, kind: input, shape index: {}]   ;;  %s3954_s3 = inlined_call_operand.vmem [shape: f32[1,256], index: 3, kind: input, shape index: {}]   ;;  %s3955_s4 = inlined_call_operand.hbm [shape: bf16[64,256], index: 4, kind: input, shape index: {}]   ;;  %s3956_s5 = inlined_call_operand.hbm [shape: bf16[64,256], index: 5, kind: input, shape index: {}]   ;;  %s3957_s6 = inlined_call_operand.vmem [shape: f32[1,256], index: 6, kind: input, shape index: {}]   ;;  %s3958_s7 = inlined_call_operand.vmem [shape: bf16[64,5], index: 7, kind: input, shape index: {}]   ;;  %s3959_s8 = inlined_call_operand.vmem [shape: f32[1,5], index: 8, kind: input, shape index: {}]   ;;  %s3960_s9 = inlined_call_operand.vmem [shape: bf16[64,3], index: 9, kind: input, shape index: {}]   ;;  %s3961_s10 = inlined_call_operand.vmem [shape: f32[1,3], index: 10, kind: input, shape index: {}]   ;;  %s3962_s11 = inlined_call_operand.vmem [shape: f32[16,5], index: 11, kind: output, shape index: {0}]   ;;  %s3963_s12 = inlined_call_operand.hbm [shape: f32[2,3], index: 12, kind: output, shape index: {1}]  }
   0x1   :  { %19 = vsyncpa [#allocation9], 0 }
   0x2   :  { %20 = vsyncpa [#allocation7], 0  ;;  %s33_s23 = sshll.u32 %s3955_s4, 4  ;;  %s3181_s24 = smov [#allocation5]   ;;  %s34_s23 = int_to_ptr.hbm [resolvable:$true] %s33_s23 }
   0x3   :  { %s35_s25 = sshll.u32 %s3181_s24, 4  ;;  %s46_s28 = sshll.u32 %s3956_s5, 4  ;;  %s36_s25 = int_to_ptr.vmem [resolvable:$true] %s35_s25  ;;  %s47_s28 = int_to_ptr.hbm [resolvable:$true] %s46_s28 }
   0x4   :  { %s3182_s29 = smov 128   ;;  %s3183_s30 = smov 8  }
   0x5   :  { %41 = dma.hbm_to_vmem [thread:$0]  %s34_s23, 1024, %s36_s25, [#allocation6], %s3182_s29, %s3182_s29, %s3183_s30  }
   0x6   :  { %s3184_s13 = smov [#allocation8]  }
   0x7   :  { %s48_s14 = sshll.u32 %s3184_s13, 4  ;;  %s49_s14 = int_to_ptr.vmem [resolvable:$true] %s48_s14 }
   0x8   :  { %54 = dma.hbm_to_vmem [thread:$0]  %s47_s28, 1024, %s49_s14, [#allocation9], %s3182_s29, %s3182_s29, %s3183_s30  }
   0x9   :  { %3175 = dma.done.wait [#allocation6], 1024  }
   0xa   :  { %3176 = vsyncadd [#allocation6], 4294966272 }
   0xb   :  { %3177 = dma.done.wait [#allocation9], 1024  }
   0xc   :  { %3178 = vsyncadd [#allocation9], 4294966272  ;;  %v2803_v0 = vld [vmem:[%s3952_s1 + $0x4] sm:$0xf]  ;;  %v2605_v1 = vld [vmem:[%s3952_s1 + $0x8] sm:$0xf0] }
   0xd   :  { %v2637_v2 = vld [vmem:[%s3953_s2 + $0x30] sm:$0xf]  ;;  %v2608_v3 = vor.u32 %v2803_v0, %v2605_v1  ;;  %v2812_v4 = vld [vmem:[%s3953_s2 + $0x34] sm:$0xf0]  ;;  %v2811_v5 = vld [vmem:[%s3953_s2 + $0x34] sm:$0xf] }
   0xe   :  { %v2639_v6 = vld [vmem:[%s3953_s2 + $0x38] sm:$0xf0]  ;;  %v3278_v7 = vor.u32 %v2812_v4, %v2637_v2  ;;  %v74_v9 = vld [vmem:[%s3951_s0] sm:$0xff]  ;;  %v75_v10 = vld [vmem:[%s3951_s0 + $0x8] sm:$0xff]  ;;  %vm95_vm0 = vcmask 130048   ;;  %v3185_v33 = vmov 0  }
   0xf   :  { %v3280_v8 = vor.u32 %v2811_v5, %v2639_v6  ;;  %v2629_v11 = vld [vmem:[%s3953_s2 + $0x20] sm:$0xf]  ;;  %120 = vmatpush.bf16.msra.mxu1 %v2608_v3  ;;  %v76_v12 = vpack.c.bf16 %v75_v10, %v74_v9  ;;  %v2810_v13 = vld [vmem:[%s3953_s2 + $0x24] sm:$0xf0]  ;;  %v2809_v14 = vld [vmem:[%s3953_s2 + $0x24] sm:$0xf] }
  0x10   :  { %v2631_v15 = vld [vmem:[%s3953_s2 + $0x28] sm:$0xf0]  ;;  %187 = vmatpush.bf16.msra.mxu2 %v3278_v7  ;;  %v3302_v16 = vor.u32 %v2810_v13, %v2629_v11  ;;  %v2603_v18 = vld [vmem:[%s3952_s1] sm:$0xf]  ;;  %v2804_v19 = vld [vmem:[%s3952_s1 + $0x4] sm:$0xf0] }
  0x11   :  { %200 = vmatpush.bf16.msra.mxu3 %v3280_v8  ;;  %v3304_v17 = vor.u32 %v2809_v14, %v2631_v15  ;;  %v2621_v20 = vld [vmem:[%s3953_s2 + $0x10] sm:$0xf]  ;;  %v2604_v21 = vor.u32 %v2804_v19, %v2603_v18  ;;  %v2808_v22 = vld [vmem:[%s3953_s2 + $0x14] sm:$0xf0]  ;;  %v2807_v23 = vld [vmem:[%s3953_s2 + $0x14] sm:$0xf] }
  0x12   :  { %v2623_v24 = vld [vmem:[%s3953_s2 + $0x18] sm:$0xf0]  ;;  %2610 = vmatmul.msk.bf16.vlgmr.msra.gmra.mxu1 %vm95_vm0, %v76_v12  ;;  %v3328_v25 = vor.u32 %v2808_v22, %v2621_v20  ;;  %v2613_v27 = vld [vmem:[%s3953_s2] sm:$0xf]  ;;  %v2806_v28 = vld [vmem:[%s3953_s2 + $0x4] sm:$0xf0] }
  0x13   :  { %329 = vmatpush.bf16.msrb.mxu1 %v3280_v8  ;;  %106 = vmatpush.bf16.msra.mxu0 %v2604_v21  ;;  %v3330_v26 = vor.u32 %v2807_v23, %v2623_v24  ;;  %v2805_v29 = vld [vmem:[%s3953_s2 + $0x4] sm:$0xf]  ;;  %v2615_v30 = vld [vmem:[%s3953_s2 + $0x8] sm:$0xf0]  ;;  %v3349_v31 = vor.u32 %v2806_v28, %v2613_v27  ;;  %v79_v34 = vld [vmem:[%s3954_s3] sm:$0x3] }
  0x14   :  { %188 = vmatpush.bf16.msra.mxu2 %v3302_v16  ;;  %v3351_v32 = vor.u32 %v2805_v29, %v2615_v30  ;;  %v82_v35 = vperm.slane %v79_v34, 1  ;;  %v81_v38 = vperm.slane %v79_v34, 0  ;;  %s3186_s3 = smov 64   ;;  %s3187_s17 = smov 32   ;;  %vm294_vm9 = vcmask 254976  }
  0x15   :  { %201 = vmatpush.bf16.msra.mxu3 %v3304_v17  ;;  %vm306_vm10 = vcmask 261120   ;;  %vm179_vm11 = vcmask 523264   ;;  %s3188_s14 = smov [#allocation10]   ;;  %s2588_s16 = sshll.u32 %s3963_s12, 4  ;;  %s2589_s16 = int_to_ptr.hbm [resolvable:$true] %s2588_s16 }
  0x16   :  { %2609 = vmatmul.msk.bf16.vlgmr.msra.gmra.mxu0 %vm95_vm0, %v76_v12  ;;  %s2586_s4 = sshll.u32 %s3188_s14, 4  ;;  %s2587_s4 = int_to_ptr.vmem [resolvable:$true] %s2586_s4 }
  0x17   :  { %316 = vmatpush.bf16.msrb.mxu0 %v3278_v7  ;;  %330 = vmatpush.bf16.msrb.mxu1 %v3304_v17 }
  0x18   :  { %189 = vmatpush.bf16.msra.mxu2 %v3328_v25 }
  0x19   :  { %202 = vmatpush.bf16.msra.mxu3 %v3330_v26 }
  0x1b   :  { %317 = vmatpush.bf16.msrb.mxu0 %v3302_v16  ;;  %331 = vmatpush.bf16.msrb.mxu1 %v3330_v26 }
  0x1c   :  { %190 = vmatpush.bf16.msra.mxu2 %v3349_v31 }
  0x1d   :  { %203 = vmatpush.bf16.msra.mxu3 %v3351_v32 }
  0x1f   :  { %318 = vmatpush.bf16.msrb.mxu0 %v3328_v25  ;;  %332 = vmatpush.bf16.msrb.mxu1 %v3351_v32 }
  0x20   :  { %455 = vmatpush.bf16.msrb.mxu2 %v3278_v7  ;;  %204 = vmatmul.bf16.vlgmr.msra.gmra.mxu3 %v3185_v33 }
  0x21   :  { %468 = vmatpush.bf16.msrb.mxu3 %v3280_v8  ;;  %191 = vmatmul.bf16.vlgmr.msra.gmra.mxu2 %v3185_v33 }
  0x23   :  { %607 = vmatpush.bf16.msra.mxu1 %v3280_v8  ;;  %319 = vmatpush.bf16.msrb.mxu0 %v3349_v31 }
  0x24   :  { %456 = vmatpush.bf16.msrb.mxu2 %v3302_v16 }
  0x25   :  { %469 = vmatpush.bf16.msrb.mxu3 %v3304_v17 }
  0x27   :  { %594 = vmatpush.bf16.msra.mxu0 %v3278_v7  ;;  %608 = vmatpush.bf16.msra.mxu1 %v3304_v17 }
  0x28   :  { %457 = vmatpush.bf16.msrb.mxu2 %v3328_v25 }
  0x29   :  { %470 = vmatpush.bf16.msrb.mxu3 %v3330_v26 }
  0x2b   :  { %595 = vmatpush.bf16.msra.mxu0 %v3302_v16  ;;  %609 = vmatpush.bf16.msra.mxu1 %v3330_v26 }
  0x2c   :  { %458 = vmatpush.bf16.msrb.mxu2 %v3349_v31 }
  0x2d   :  { %471 = vmatpush.bf16.msrb.mxu3 %v3351_v32 }
  0x2f   :  { %596 = vmatpush.bf16.msra.mxu0 %v3328_v25  ;;  %610 = vmatpush.bf16.msra.mxu1 %v3351_v32 }
  0x30   :  { %730 = vmatpush.bf16.msra.mxu2 %v3278_v7 }
  0x31   :  { %743 = vmatpush.bf16.msra.mxu3 %v3280_v8 }
  0x33   :  { %597 = vmatpush.bf16.msra.mxu0 %v3349_v31 }
  0x34   :  { %731 = vmatpush.bf16.msra.mxu2 %v3302_v16 }
  0x35   :  { %744 = vmatpush.bf16.msra.mxu3 %v3304_v17 }
  0x38   :  { %732 = vmatpush.bf16.msra.mxu2 %v3328_v25 }
  0x39   :  { %745 = vmatpush.bf16.msra.mxu3 %v3330_v26 }
  0x3c   :  { %733 = vmatpush.bf16.msra.mxu2 %v3349_v31 }
  0x3d   :  { %746 = vmatpush.bf16.msra.mxu3 %v3351_v32 }
  0x8f   :  { %v122_v36 = vpop.f32.mrf.mxu1 }
  0x90   :  { %v123_v37 = vadd.f32 %v122_v36, %v82_v35 }
  0x92   :  { %128 = vst [vmem:[#allocation4] sm:$0xff] %v123_v37 }
  0x93   :  { %v108_v39 = vpop.f32.mrf.mxu0 }
  0x94   :  { %v109_v40 = vadd.f32 %v108_v39, %v81_v38 }
  0x96   :  { %127 = vst [vmem:[#allocation4 + $0x10] sm:$0xff] %v109_v40 }
  0x97   :  { %v124_v41 = vpop.f32.mrf.mxu1 }
  0x98   :  { %v125_v42 = vadd.f32 %v124_v41, %v82_v35 }
  0x9a   :  { %130 = vst [vmem:[#allocation4 + $0x8] sm:$0xff] %v125_v42 }
  0x9b   :  { %v110_v43 = vpop.f32.mrf.mxu0 }
  0x9c   :  { %v111_v44 = vadd.f32 %v110_v43, %v81_v38 }
  0x9d   :  { %v209_v50 = vld [vmem:[#allocation4 + $0x10] sm:$0x3] }
  0x9e   :  { %129 = vst [vmem:[#allocation4 + $0x18] sm:$0xff] %v111_v44 }
  0xa1   :  { %v211_v48 = vld [vmem:[#allocation4 + $0x8] sm:$0xc0] }
  0xa3   :  { %v205_v46 = vpop.f32.mrf.mxu3 }
  0xa4   :  { %v192_v45 = vpop.f32.mrf.mxu2  ;;  %v213_v47 = vrot.slane %v205_v46, 2 }
  0xa5   :  { %v210_v53 = vadd.f32 %v209_v50, %v192_v45 }
  0xa6   :  { %v215_v49 = vadd.f32 %v213_v47, %v211_v48 }
  0xa7   :  { %v2643_v57 = vmul.f32 -1.442695, %v210_v53 }
  0xa8   :  { %2847 = vtanh.f32 %v215_v49  ;;  %v2644_v56 = vmul.f32 -1.442695, %v215_v49 }
  0xa9   :  { %2849 = vtanh.f32 %v210_v53  ;;  %v343_v53 = vld [vmem:[#allocation4 + $0x8] sm:$0x30] }
  0xaa   :  { %2851 = vpow2.f32 %v2644_v56 }
  0xab   :  { %v207_v51 = vpop.f32.mrf.mxu3  ;;  %2853 = vpow2.f32 %v2643_v57 }
  0xac   :  { %v194_v52 = vpop.f32.mrf.mxu2 }
  0xad   :  { %v338_v52 = vld [vmem:[#allocation4 + $0x10] sm:$0xc] }
  0xae   :  { %v2848_v54 = vpop.eup %2847 }
  0xaf   :  { %275 = vrot.lane.b32.xlu0 %v2848_v54, %s3186_s3  ;;  %v2850_v55 = vpop.eup %2849 }
  0xb0   :  { %v2852_v58 = vpop.eup %2851 }
  0xb1   :  { %v256_v59 = vadd.f32 1.0, %v2852_v58  ;;  %v2854_v60 = vpop.eup %2853 }
  0xb2   :  { %v219_v61 = vadd.f32 1.0, %v2854_v60 }
  0xb3   :  { %2855 = vrcp.f32 %v256_v59  ;;  %v268_v6 = vand.u32 2147483648, %v256_v59  ;;  %vm262_vm2 = vweird.f32 %v256_v59  ;;  %v266_v9 = vand.u32 2147483647, %v256_v59 }
  0xb4   :  { %2857 = vrcp.f32 %v219_v61  ;;  %vm225_vm5 = vweird.f32 %v219_v61  ;;  %v231_v19 = vand.u32 2147483648, %v219_v61  ;;  %v229_v20 = vand.u32 2147483647, %v219_v61 }
  0xb5   :  { %v269_v12 = vor.u32 1.1754944e-38, %v268_v6  ;;  %vm267_vm4 = vcmp.eq.f32.partialorder %v266_v9, 8.507059e+37 }
  0xb6   :  { %v232_v22 = vor.u32 1.1754944e-38, %v231_v19  ;;  %vm230_vm8 = vcmp.eq.f32.partialorder %v229_v20, 8.507059e+37 }
  0xb7   :  { %238 = vrot.lane.b32.xlu0 %v2850_v55, %s3186_s3 }
  0xb9   :  { %v2856_v62 = vpop.eup %2855 }
  0xba   :  { %v258_v63 = vmul.f32 %v2856_v62, %v256_v59  ;;  %v2858_v1 = vpop.eup %2857  ;;  %vm263_vm1 = vweird.f32 %v2856_v62 }
  0xbb   :  { %v221_v3 = vmul.f32 %v2858_v1, %v219_v61  ;;  %vm264_vm3 = vmor %vm262_vm2, %vm263_vm1  ;;  %vm226_vm6 = vweird.f32 %v2858_v1 }
  0xbc   :  { %v259_v0 = vsub.f32 1.0, %v258_v63  ;;  %vm227_vm7 = vmor %vm225_vm5, %vm226_vm6 }
  0xbd   :  { %v222_v5 = vsub.f32 1.0, %v221_v3 }
  0xbe   :  { %v260_v2 = vmul.f32 %v2856_v62, %v259_v0 }
  0xbf   :  { %v223_v11 = vmul.f32 %v2858_v1, %v222_v5 }
  0xc0   :  { %v261_v4 = vadd.f32 %v2856_v62, %v260_v2 }
  0xc1   :  { %v224_v18 = vadd.f32 %v2858_v1, %v223_v11 }
  0xc2   :  { %v265_v10 = vsel %vm264_vm3, %v2856_v62, %v261_v4 }
  0xc3   :  { %v270_v14 = vsel %vm267_vm4, %v269_v12, %v265_v10  ;;  %v228_v21 = vsel %vm227_vm7, %v2858_v1, %v224_v18  ;;  %vm3965_vm4 = vcmask 257026  }
  0xc4   :  { %v233_v24 = vsel %vm230_vm8, %v232_v22, %v228_v21  ;;  %v273_v28 = vmul.f32 0.0, %v270_v14 }
  0xc5   :  { %v236_v34 = vmul.f32 0.0, %v233_v24 }
 0x121   :  { %v276_v13 = vpop.permute.xlu0 %275 }
 0x122   :  { %v278_v15 = vmul.f32 %v276_v13, %v270_v14 }
 0x124   :  { %280 = vrot.lane.b32.xlu1 %v278_v15, %s3187_s17 }
 0x129   :  { %v239_v23 = vpop.permute.xlu0 %238 }
 0x12a   :  { %v241_v27 = vmul.f32 %v239_v23, %v233_v24 }
 0x12c   :  { %243 = vrot.lane.b32.xlu1 %v241_v27, %s3187_s17 }
 0x196   :  { %v281_v29 = vpop.permute.xlu1 %280 }
 0x197   :  { %v3393_v30 = vadd.f32 %v281_v29, %v273_v28 }
 0x199   :  { %2859 = vtanh.f32 %v3393_v30 }
 0x19e   :  { %v244_v35 = vpop.permute.xlu1 %243 }
 0x19f   :  { %v2860_v36 = vpop.eup %2859  ;;  %v3396_v37 = vadd.f32 %v244_v35, %v236_v34 }
 0x1a0   :  { %286 = vrot.lane.b32.xlu2 %v2860_v36, %s3186_s3 }
 0x1a1   :  { %2861 = vtanh.f32 %v3396_v37  ;;  %v369_v36 = vrot.slane %v3396_v37, 6 }
 0x1a7   :  { %v2862_v38 = vpop.eup %2861 }
 0x1a8   :  { %249 = vrot.lane.b32.xlu2 %v2862_v38, %s3186_s3  ;;  %v409_v38 = vrot.slane %v3393_v30, 2 }
 0x1fa   :  { %v287_v39 = vpop.permute.xlu2 %286 }
 0x1fb   :  { %v3401_v40 = vmul.f32 %v287_v39, %v270_v14 }
 0x1fd   :  { %v302_v41 = vrot.slane %v3401_v40, 6 }
 0x1ff   :  { %303 = vrot.lane.b32.xlu1 %v302_v41, %s3186_s3 }
 0x202   :  { %v250_v42 = vpop.permute.xlu2 %249 }
 0x203   :  { %v252_v43 = vmul.f32 %v250_v42, %v233_v24 }
 0x205   :  { %291 = vrot.lane.b32.xlu0 %v252_v43, %s3187_s17 }
 0x271   :  { %v304_v44 = vpop.permute.xlu1 %303 }
 0x277   :  { %v292_v45 = vpop.permute.xlu0 %291 }
 0x278   :  { %295 = vst.msk [vmem:[#allocation2] sm:$0x3] %vm294_vm9, %v292_v45  ;;  %v307_v46 = vsel %vm306_vm10, %v292_v45, %v304_v44 }
 0x279   :  { %v308_v47 = vpack.c.bf16 %v307_v46, %v307_v46 }
 0x27b   :  { %2645 = vmatmul.msk.bf16.vlgmr.msrb.gmra.mxu0 %vm179_vm11, %v308_v47  ;;  %2646 = vmatmul.msk.bf16.vlgmr.msrb.gmra.mxu1 %vm179_vm11, %v308_v47 }
 0x27c   :  { %862 = vmatpush.bf16.msrb.mxu0 %v3278_v7  ;;  %875 = vmatpush.bf16.msrb.mxu1 %v3280_v8 }
 0x280   :  { %863 = vmatpush.bf16.msrb.mxu0 %v3302_v16  ;;  %876 = vmatpush.bf16.msrb.mxu1 %v3304_v17 }
 0x284   :  { %864 = vmatpush.bf16.msrb.mxu0 %v3328_v25  ;;  %877 = vmatpush.bf16.msrb.mxu1 %v3330_v26 }
 0x288   :  { %865 = vmatpush.bf16.msrb.mxu0 %v3349_v31  ;;  %878 = vmatpush.bf16.msrb.mxu1 %v3351_v32 }
 0x2f8   :  { %v321_v48 = vpop.f32.mrf.mxu0  ;;  %v334_v49 = vpop.f32.mrf.mxu1 }
 0x2f9   :  { %v340_v50 = vrot.slane %v321_v48, 6  ;;  %v345_v51 = vrot.slane %v334_v49, 4 }
 0x2fb   :  { %v342_v54 = vadd.f32 %v340_v50, %v338_v52  ;;  %v347_v55 = vadd.f32 %v345_v51, %v343_v53 }
 0x2fd   :  { %2863 = vtanh.f32 %v342_v54  ;;  %v2648_v60 = vmul.f32 -1.442695, %v347_v55  ;;  %v2647_v0 = vmul.f32 -1.442695, %v342_v54 }
 0x2fe   :  { %2865 = vtanh.f32 %v347_v55 }
 0x2ff   :  { %2867 = vpow2.f32 %v2648_v60  ;;  %v477_v60 = vld [vmem:[#allocation4 + $0x10] sm:$0x30] }
 0x300   :  { %v323_v56 = vpop.f32.mrf.mxu0  ;;  %v336_v57 = vpop.f32.mrf.mxu1 }
 0x303   :  { %v2864_v58 = vpop.eup %2863 }
 0x304   :  { %v2866_v59 = vpop.eup %2865  ;;  %373 = vrot.lane.b32.xlu0 %v2864_v58, %s3186_s3 }
 0x305   :  { %413 = vrot.lane.b32.xlu2 %v2866_v59, %s3186_s3  ;;  %v2868_v61 = vpop.eup %2867 }
 0x306   :  { %v391_v62 = vadd.f32 1.0, %v2868_v61  ;;  %v482_v61 = vld [vmem:[#allocation4 + $0x8] sm:$0xc] }
 0x308   :  { %2869 = vrcp.f32 %v391_v62  ;;  %v403_v9 = vand.u32 2147483648, %v391_v62  ;;  %vm397_vm13 = vweird.f32 %v391_v62  ;;  %v401_v10 = vand.u32 2147483647, %v391_v62 }
 0x309   :  { %2871 = vpow2.f32 %v2647_v0 }
 0x30a   :  { %v404_v12 = vor.u32 1.1754944e-38, %v403_v9  ;;  %vm402_vm15 = vcmp.eq.f32.partialorder %v401_v10, 8.507059e+37 }
 0x30e   :  { %v2870_v63 = vpop.eup %2869 }
 0x30f   :  { %v393_v1 = vmul.f32 %v2870_v63, %v391_v62  ;;  %v2872_v3 = vpop.eup %2871  ;;  %vm398_vm12 = vweird.f32 %v2870_v63 }
 0x310   :  { %v351_v5 = vadd.f32 1.0, %v2872_v3  ;;  %vm399_vm14 = vmor %vm397_vm13, %vm398_vm12 }
 0x311   :  { %v394_v2 = vsub.f32 1.0, %v393_v1 }
 0x312   :  { %2873 = vrcp.f32 %v351_v5  ;;  %v363_v23 = vand.u32 2147483648, %v351_v5  ;;  %vm357_vm1 = vweird.f32 %v351_v5  ;;  %v361_v24 = vand.u32 2147483647, %v351_v5 }
 0x313   :  { %v395_v4 = vmul.f32 %v2870_v63, %v394_v2 }
 0x314   :  { %v364_v28 = vor.u32 1.1754944e-38, %v363_v23  ;;  %vm362_vm3 = vcmp.eq.f32.partialorder %v361_v24, 8.507059e+37 }
 0x315   :  { %v396_v6 = vadd.f32 %v2870_v63, %v395_v4 }
 0x317   :  { %v400_v11 = vsel %vm399_vm14, %v2870_v63, %v396_v6 }
 0x318   :  { %v405_v14 = vsel %vm402_vm15, %v404_v12, %v400_v11  ;;  %v2874_v15 = vpop.eup %2873 }
 0x319   :  { %v353_v19 = vmul.f32 %v2874_v15, %v351_v5  ;;  %vm358_vm0 = vweird.f32 %v2874_v15  ;;  %v411_v41 = vmul.f32 %v409_v38, %v405_v14 }
 0x31a   :  { %vm359_vm2 = vmor %vm357_vm1, %vm358_vm0  ;;  %vm571_vm0 = vcmask 259076  }
 0x31b   :  { %v354_v20 = vsub.f32 1.0, %v353_v19 }
 0x31d   :  { %v355_v21 = vmul.f32 %v2874_v15, %v354_v20 }
 0x31f   :  { %v356_v22 = vadd.f32 %v2874_v15, %v355_v21 }
 0x321   :  { %v360_v27 = vsel %vm359_vm2, %v2874_v15, %v356_v22 }
 0x322   :  { %v365_v34 = vsel %vm362_vm3, %v364_v28, %v360_v27 }
 0x323   :  { %v371_v39 = vmul.f32 %v369_v36, %v365_v34 }
 0x35f   :  { %v414_v13 = vpop.permute.xlu2 %413 }
 0x360   :  { %v416_v18 = vmul.f32 %v414_v13, %v405_v14 }
 0x362   :  { %418 = vrot.lane.b32.xlu1 %v416_v18, %s3187_s17 }
 0x376   :  { %v374_v29 = vpop.permute.xlu0 %373 }
 0x377   :  { %v376_v35 = vmul.f32 %v374_v29, %v365_v34 }
 0x379   :  { %378 = vrot.lane.b32.xlu2 %v376_v35, %s3187_s17 }
 0x3d3   :  { %v379_v42 = vpop.permute.xlu2 %378 }
 0x3d4   :  { %v419_v43 = vpop.permute.xlu1 %418  ;;  %v3424_v44 = vadd.f32 %v379_v42, %v371_v39 }
 0x3d5   :  { %v3426_v45 = vadd.f32 %v419_v43, %v411_v41 }
 0x3d6   :  { %2875 = vtanh.f32 %v3424_v44 }
 0x3d7   :  { %2877 = vtanh.f32 %v3426_v45 }
 0x3dc   :  { %v2876_v46 = vpop.eup %2875 }
 0x3dd   :  { %v2878_v47 = vpop.eup %2877  ;;  %384 = vrot.lane.b32.xlu1 %v2876_v46, %s3186_s3 }
 0x3de   :  { %424 = vrot.lane.b32.xlu0 %v2878_v47, %s3186_s3 }
 0x44f   :  { %v385_v37 = vpop.permute.xlu1 %384 }
 0x450   :  { %v425_v30 = vpop.permute.xlu0 %424  ;;  %v387_v48 = vmul.f32 %v385_v37, %v365_v34  ;;  %v508_v37 = vrot.slane %v3424_v44, 6 }
 0x451   :  { %v3432_v49 = vmul.f32 %v425_v30, %v405_v14 }
 0x452   :  { %429 = vrot.lane.b32.xlu2 %v387_v48, %s3187_s17 }
 0x453   :  { %v440_v50 = vrot.slane %v3432_v49, 2 }
 0x455   :  { %441 = vrot.lane.b32.xlu0 %v440_v50, %s3186_s3 }
 0x4ac   :  { %v430_v51 = vpop.permute.xlu2 %429 }
 0x4ad   :  { %433 = vst.msk [vmem:[#allocation2] sm:$0xc] %vm3965_vm4, %v430_v51 }
 0x4c7   :  { %v442_v52 = vpop.permute.xlu0 %441 }
 0x4c8   :  { %v444_v53 = vsel %vm306_vm10, %v430_v51, %v442_v52  ;;  %v548_v52 = vrot.slane %v3426_v45, 2 }
 0x4c9   :  { %v445_v54 = vpack.c.bf16 %v444_v53, %v444_v53 }
 0x4cb   :  { %v447_v55 = vrot.slane %v445_v54, 1 }
 0x4cd   :  { %2649 = vmatmul.msk.bf16.vlgmr.msrb.gmra.mxu2 %vm179_vm11, %v447_v55  ;;  %2650 = vmatmul.msk.bf16.vlgmr.msrb.gmra.mxu3 %vm179_vm11, %v447_v55 }
 0x4ce   :  { %1012 = vmatpush.bf16.msrb.mxu3 %v3280_v8  ;;  %999 = vmatpush.bf16.msrb.mxu2 %v3278_v7 }
 0x4d2   :  { %1013 = vmatpush.bf16.msrb.mxu3 %v3304_v17  ;;  %1000 = vmatpush.bf16.msrb.mxu2 %v3302_v16 }
 0x4d6   :  { %1014 = vmatpush.bf16.msrb.mxu3 %v3330_v26  ;;  %1001 = vmatpush.bf16.msrb.mxu2 %v3328_v25 }
 0x4da   :  { %1015 = vmatpush.bf16.msrb.mxu3 %v3351_v32  ;;  %1002 = vmatpush.bf16.msrb.mxu2 %v3349_v31 }
 0x550   :  { %v460_v56 = vpop.f32.mrf.mxu2  ;;  %v473_v57 = vpop.f32.mrf.mxu3 }
 0x551   :  { %v479_v58 = vrot.slane %v460_v56, 4  ;;  %v484_v59 = vrot.slane %v473_v57, 6 }
 0x553   :  { %v481_v62 = vadd.f32 %v479_v58, %v477_v60  ;;  %v486_v63 = vadd.f32 %v484_v59, %v482_v61 }
 0x555   :  { %2879 = vtanh.f32 %v481_v62  ;;  %v2651_v4 = vmul.f32 -1.442695, %v481_v62  ;;  %v2652_v10 = vmul.f32 -1.442695, %v486_v63 }
 0x556   :  { %2881 = vtanh.f32 %v486_v63 }
 0x557   :  { %2883 = vpow2.f32 %v2651_v4 }
 0x558   :  { %v462_v0 = vpop.f32.mrf.mxu2  ;;  %v475_v1 = vpop.f32.mrf.mxu3 }
 0x55b   :  { %v2880_v2 = vpop.eup %2879 }
 0x55c   :  { %v2882_v3 = vpop.eup %2881  ;;  %512 = vrot.lane.b32.xlu2 %v2880_v2, %s3186_s3 }
 0x55d   :  { %552 = vrot.lane.b32.xlu1 %v2882_v3, %s3186_s3  ;;  %v2884_v5 = vpop.eup %2883  ;;  %v621_v3 = vld [vmem:[#allocation4 + $0x8] sm:$0x3] }
 0x55e   :  { %v490_v6 = vadd.f32 1.0, %v2884_v5 }
 0x560   :  { %2885 = vrcp.f32 %v490_v6  ;;  %v502_v19 = vand.u32 2147483648, %v490_v6  ;;  %vm496_vm6 = vweird.f32 %v490_v6  ;;  %v500_v20 = vand.u32 2147483647, %v490_v6 }
 0x561   :  { %2887 = vpow2.f32 %v2652_v10 }
 0x562   :  { %v503_v22 = vor.u32 1.1754944e-38, %v502_v19  ;;  %vm501_vm8 = vcmp.eq.f32.partialorder %v500_v20, 8.507059e+37 }
 0x566   :  { %v2886_v9 = vpop.eup %2885 }
 0x567   :  { %v492_v11 = vmul.f32 %v2886_v9, %v490_v6  ;;  %v2888_v14 = vpop.eup %2887  ;;  %vm497_vm5 = vweird.f32 %v2886_v9 }
 0x568   :  { %v530_v15 = vadd.f32 1.0, %v2888_v14  ;;  %vm498_vm7 = vmor %vm496_vm6, %vm497_vm5 }
 0x569   :  { %v493_v12 = vsub.f32 1.0, %v492_v11 }
 0x56a   :  { %2889 = vrcp.f32 %v530_v15  ;;  %v542_v38 = vand.u32 2147483648, %v530_v15  ;;  %vm536_vm13 = vweird.f32 %v530_v15  ;;  %v540_v39 = vand.u32 2147483647, %v530_v15 }
 0x56b   :  { %v494_v13 = vmul.f32 %v2886_v9, %v493_v12 }
 0x56c   :  { %v543_v42 = vor.u32 1.1754944e-38, %v542_v38  ;;  %vm541_vm15 = vcmp.eq.f32.partialorder %v540_v39, 8.507059e+37 }
 0x56d   :  { %v495_v18 = vadd.f32 %v2886_v9, %v494_v13 }
 0x56f   :  { %v499_v21 = vsel %vm498_vm7, %v2886_v9, %v495_v18 }
 0x570   :  { %v504_v24 = vsel %vm501_vm8, %v503_v22, %v499_v21  ;;  %v2890_v28 = vpop.eup %2889 }
 0x571   :  { %v532_v29 = vmul.f32 %v2890_v28, %v530_v15  ;;  %vm537_vm12 = vweird.f32 %v2890_v28  ;;  %v510_v30 = vmul.f32 %v508_v37, %v504_v24 }
 0x572   :  { %vm538_vm14 = vmor %vm536_vm13, %vm537_vm12  ;;  %vm707_vm13 = vcmask 261126  }
 0x573   :  { %v533_v34 = vsub.f32 1.0, %v532_v29 }
 0x575   :  { %v534_v35 = vmul.f32 %v2890_v28, %v533_v34 }
 0x577   :  { %v535_v36 = vadd.f32 %v2890_v28, %v534_v35 }
 0x579   :  { %v539_v41 = vsel %vm538_vm14, %v2890_v28, %v535_v36 }
 0x57a   :  { %v544_v46 = vsel %vm541_vm15, %v543_v42, %v539_v41 }
 0x57b   :  { %v550_v53 = vmul.f32 %v548_v52, %v544_v46 }
 0x5b6   :  { %v513_v23 = vpop.permute.xlu2 %512 }
 0x5b7   :  { %v515_v27 = vmul.f32 %v513_v23, %v504_v24 }
 0x5b9   :  { %517 = vrot.lane.b32.xlu1 %v515_v27, %s3187_s17 }
 0x5cf   :  { %v553_v43 = vpop.permute.xlu1 %552 }
 0x5d0   :  { %v555_v47 = vmul.f32 %v553_v43, %v544_v46 }
 0x5d2   :  { %557 = vrot.lane.b32.xlu0 %v555_v47, %s3187_s17 }
 0x62b   :  { %v518_v48 = vpop.permute.xlu1 %517 }
 0x62c   :  { %v3454_v50 = vadd.f32 %v518_v48, %v510_v30 }
 0x62e   :  { %2891 = vtanh.f32 %v3454_v50 }
 0x634   :  { %v2892_v51 = vpop.eup %2891 }
 0x635   :  { %523 = vrot.lane.b32.xlu0 %v2892_v51, %s3186_s3 }
 0x644   :  { %v558_v54 = vpop.permute.xlu0 %557 }
 0x645   :  { %v3459_v55 = vadd.f32 %v558_v54, %v550_v53  ;;  %v644_v53 = vrot.slane %v3454_v50, 6 }
 0x647   :  { %2893 = vtanh.f32 %v3459_v55  ;;  %v684_v37 = vrot.slane %v3459_v55, 2 }
 0x64d   :  { %v2894_v56 = vpop.eup %2893 }
 0x64e   :  { %563 = vrot.lane.b32.xlu2 %v2894_v56, %s3186_s3 }
 0x6a7   :  { %v524_v44 = vpop.permute.xlu0 %523 }
 0x6a8   :  { %v564_v57 = vpop.permute.xlu2 %563  ;;  %v526_v58 = vmul.f32 %v524_v44, %v504_v24 }
 0x6a9   :  { %v3463_v59 = vmul.f32 %v564_v57, %v544_v46 }
 0x6aa   :  { %568 = vrot.lane.b32.xlu1 %v526_v58, %s3187_s17 }
 0x6ab   :  { %v579_v60 = vrot.slane %v3463_v59, 6 }
 0x6ad   :  { %580 = vrot.lane.b32.xlu2 %v579_v60, %s3186_s3 }
 0x707   :  { %v581_v45 = vpop.permute.xlu2 %580 }
 0x71c   :  { %v569_v61 = vpop.permute.xlu1 %568 }
 0x71d   :  { %572 = vst.msk [vmem:[#allocation2] sm:$0x30] %vm571_vm0, %v569_v61  ;;  %v583_v62 = vsel %vm306_vm10, %v569_v61, %v581_v45 }
 0x71e   :  { %v584_v63 = vpack.c.bf16 %v583_v62, %v583_v62 }
 0x720   :  { %v586_v0 = vrot.slane %v584_v63, 2 }
 0x722   :  { %2653 = vmatmul.msk.bf16.vlgmr.msra.gmra.mxu0 %vm179_vm11, %v586_v0  ;;  %2654 = vmatmul.msk.bf16.vlgmr.msra.gmra.mxu1 %vm179_vm11, %v586_v0 }
 0x723   :  { %1136 = vmatpush.bf16.msra.mxu0 %v3278_v7  ;;  %1149 = vmatpush.bf16.msra.mxu1 %v3280_v8  ;;  %v616_v7 = vld [vmem:[#allocation4 + $0x10] sm:$0xc0] }
 0x727   :  { %1137 = vmatpush.bf16.msra.mxu0 %v3302_v16  ;;  %1150 = vmatpush.bf16.msra.mxu1 %v3304_v17 }
 0x72b   :  { %1138 = vmatpush.bf16.msra.mxu0 %v3328_v25  ;;  %1151 = vmatpush.bf16.msra.mxu1 %v3330_v26 }
 0x72f   :  { %1139 = vmatpush.bf16.msra.mxu0 %v3349_v31  ;;  %1152 = vmatpush.bf16.msra.mxu1 %v3351_v32 }
 0x79f   :  { %v599_v1 = vpop.f32.mrf.mxu0  ;;  %v612_v2 = vpop.f32.mrf.mxu1 }
 0x7a0   :  { %v618_v4 = vrot.slane %v599_v1, 2  ;;  %v622_v5 = vadd.f32 %v621_v3, %v612_v2  ;;  %v752_v3 = vld [vmem:[#allocation4 + $0x18] sm:$0x3] }
 0x7a2   :  { %v620_v6 = vadd.f32 %v618_v4, %v616_v7  ;;  %2895 = vtanh.f32 %v622_v5  ;;  %v2656_v26 = vmul.f32 -1.442695, %v622_v5 }
 0x7a4   :  { %2897 = vtanh.f32 %v620_v6  ;;  %v2655_v31 = vmul.f32 -1.442695, %v620_v6  ;;  %v754_v6 = vld [vmem:[#allocation4] sm:$0xc0] }
 0x7a5   :  { %2899 = vpow2.f32 %v2656_v26 }
 0x7a6   :  { %2901 = vpow2.f32 %v2655_v31 }
 0x7a7   :  { %v601_v8 = vpop.f32.mrf.mxu0  ;;  %v614_v16 = vpop.f32.mrf.mxu1 }
 0x7a8   :  { %v2896_v17 = vpop.eup %2895 }
 0x7a9   :  { %688 = vrot.lane.b32.xlu0 %v2896_v17, %s3186_s3 }
 0x7aa   :  { %v2898_v25 = vpop.eup %2897 }
 0x7ab   :  { %648 = vrot.lane.b32.xlu1 %v2898_v25, %s3186_s3  ;;  %v2900_v32 = vpop.eup %2899 }
 0x7ac   :  { %v2902_v9 = vpop.eup %2901  ;;  %v666_v10 = vadd.f32 1.0, %v2900_v32 }
 0x7ad   :  { %v626_v11 = vadd.f32 1.0, %v2902_v9 }
 0x7ae   :  { %2903 = vrcp.f32 %v666_v10  ;;  %v678_v23 = vand.u32 2147483648, %v666_v10  ;;  %vm672_vm2 = vweird.f32 %v666_v10  ;;  %v676_v24 = vand.u32 2147483647, %v666_v10 }
 0x7af   :  { %2905 = vrcp.f32 %v626_v11  ;;  %v638_v28 = vand.u32 2147483648, %v626_v11  ;;  %vm632_vm6 = vweird.f32 %v626_v11  ;;  %v636_v34 = vand.u32 2147483647, %v626_v11 }
 0x7b0   :  { %v679_v35 = vor.u32 1.1754944e-38, %v678_v23  ;;  %vm677_vm8 = vcmp.eq.f32.partialorder %v676_v24, 8.507059e+37 }
 0x7b1   :  { %v639_v41 = vor.u32 1.1754944e-38, %v638_v28  ;;  %vm637_vm12 = vcmp.eq.f32.partialorder %v636_v34, 8.507059e+37 }
 0x7b4   :  { %v2904_v12 = vpop.eup %2903 }
 0x7b5   :  { %v2906_v13 = vpop.eup %2905  ;;  %v668_v14 = vmul.f32 %v2904_v12, %v666_v10  ;;  %vm673_vm1 = vweird.f32 %v2904_v12 }
 0x7b6   :  { %v628_v15 = vmul.f32 %v2906_v13, %v626_v11  ;;  %vm633_vm3 = vweird.f32 %v2906_v13  ;;  %vm674_vm5 = vmor %vm672_vm2, %vm673_vm1 }
 0x7b7   :  { %v669_v18 = vsub.f32 1.0, %v668_v14  ;;  %vm634_vm7 = vmor %vm632_vm6, %vm633_vm3 }
 0x7b8   :  { %v629_v19 = vsub.f32 1.0, %v628_v15 }
 0x7b9   :  { %v670_v20 = vmul.f32 %v2904_v12, %v669_v18 }
 0x7ba   :  { %v630_v21 = vmul.f32 %v2906_v13, %v629_v19 }
 0x7bb   :  { %v671_v22 = vadd.f32 %v2904_v12, %v670_v20 }
 0x7bc   :  { %v631_v27 = vadd.f32 %v2906_v13, %v630_v21 }
 0x7bd   :  { %v675_v29 = vsel %vm674_vm5, %v2904_v12, %v671_v22 }
 0x7be   :  { %v635_v36 = vsel %vm634_vm7, %v2906_v13, %v631_v27  ;;  %v680_v39 = vsel %vm677_vm8, %v679_v35, %v675_v29 }
 0x7bf   :  { %v640_v46 = vsel %vm637_vm12, %v639_v41, %v635_v36  ;;  %v686_v30 = vmul.f32 %v684_v37, %v680_v39 }
 0x7c0   :  { %v646_v54 = vmul.f32 %v644_v53, %v640_v46 }
 0x81b   :  { %v689_v38 = vpop.permute.xlu0 %688 }
 0x81c   :  { %v691_v42 = vmul.f32 %v689_v38, %v680_v39 }
 0x81d   :  { %v649_v43 = vpop.permute.xlu1 %648 }
 0x81e   :  { %v651_v47 = vmul.f32 %v649_v43, %v640_v46  ;;  %693 = vrot.lane.b32.xlu2 %v691_v42, %s3187_s17 }
 0x820   :  { %653 = vrot.lane.b32.xlu0 %v651_v47, %s3187_s17 }
 0x878   :  { %v694_v48 = vpop.permute.xlu2 %693 }
 0x879   :  { %v3485_v51 = vadd.f32 %v694_v48, %v686_v30 }
 0x87b   :  { %2907 = vtanh.f32 %v3485_v51 }
 0x881   :  { %v2908_v52 = vpop.eup %2907 }
 0x882   :  { %699 = vrot.lane.b32.xlu1 %v2908_v52, %s3186_s3  ;;  %v820_v52 = vrot.slane %v3485_v51, 2 }
 0x892   :  { %v654_v56 = vpop.permute.xlu0 %653 }
 0x893   :  { %v3490_v44 = vadd.f32 %v654_v56, %v646_v54 }
 0x895   :  { %2909 = vtanh.f32 %v3490_v44  ;;  %v780_v30 = vrot.slane %v3490_v44, 6 }
 0x89b   :  { %v2910_v57 = vpop.eup %2909 }
 0x89c   :  { %659 = vrot.lane.b32.xlu2 %v2910_v57, %s3186_s3 }
 0x8f4   :  { %v700_v55 = vpop.permute.xlu1 %699 }
 0x8f5   :  { %v3494_v58 = vmul.f32 %v700_v55, %v680_v39 }
 0x8f6   :  { %v660_v60 = vpop.permute.xlu2 %659 }
 0x8f7   :  { %v715_v45 = vrot.slane %v3494_v58, 2  ;;  %v662_v61 = vmul.f32 %v660_v60, %v640_v46 }
 0x8f9   :  { %716 = vrot.lane.b32.xlu1 %v715_v45, %s3186_s3  ;;  %704 = vrot.lane.b32.xlu0 %v662_v61, %s3187_s17 }
 0x96b   :  { %v717_v50 = vpop.permute.xlu1 %716  ;;  %v705_v62 = vpop.permute.xlu0 %704 }
 0x96c   :  { %708 = vst.msk [vmem:[#allocation2] sm:$0xc0] %vm707_vm13, %v705_v62  ;;  %v719_v63 = vsel %vm306_vm10, %v705_v62, %v717_v50 }
 0x96d   :  { %v720_v0 = vpack.c.bf16 %v719_v63, %v719_v63 }
 0x96f   :  { %v722_v1 = vrot.slane %v720_v0, 3 }
 0x971   :  { %2657 = vmatmul.msk.bf16.vlgmr.msra.gmra.mxu2 %vm179_vm11, %v722_v1  ;;  %2658 = vmatmul.msk.bf16.vlgmr.msra.gmra.mxu3 %vm179_vm11, %v722_v1 }
 0x9f4   :  { %v735_v2 = vpop.f32.mrf.mxu2  ;;  %v748_v4 = vpop.f32.mrf.mxu3 }
 0x9f5   :  { %v753_v5 = vadd.f32 %v752_v3, %v735_v2  ;;  %v756_v7 = vrot.slane %v748_v4, 2 }
 0x9f7   :  { %2911 = vtanh.f32 %v753_v5  ;;  %v758_v8 = vadd.f32 %v756_v7, %v754_v6  ;;  %v2659_v10 = vmul.f32 -1.442695, %v753_v5  ;;  %v884_v6 = vld [vmem:[#allocation4 + $0x18] sm:$0xc] }
 0x9f9   :  { %2913 = vtanh.f32 %v758_v8  ;;  %v2660_v31 = vmul.f32 -1.442695, %v758_v8  ;;  %v889_v8 = vld [vmem:[#allocation4] sm:$0x30] }
 0x9fb   :  { %2915 = vpow2.f32 %v2660_v31 }
 0x9fc   :  { %v737_v16 = vpop.f32.mrf.mxu2  ;;  %v750_v17 = vpop.f32.mrf.mxu3 }
 0x9fd   :  { %v2912_v25 = vpop.eup %2911 }
 0x9fe   :  { %784 = vrot.lane.b32.xlu0 %v2912_v25, %s3186_s3 }
 0x9ff   :  { %v2914_v26 = vpop.eup %2913 }
 0xa00   :  { %824 = vrot.lane.b32.xlu2 %v2914_v26, %s3186_s3 }
 0xa01   :  { %v2916_v32 = vpop.eup %2915 }
 0xa02   :  { %v802_v9 = vadd.f32 1.0, %v2916_v32 }
 0xa04   :  { %2917 = vrcp.f32 %v802_v9  ;;  %v814_v20 = vand.u32 2147483648, %v802_v9  ;;  %vm808_vm15 = vweird.f32 %v802_v9  ;;  %v812_v21 = vand.u32 2147483647, %v802_v9 }
 0xa05   :  { %2919 = vpow2.f32 %v2659_v10 }
 0xa06   :  { %v815_v23 = vor.u32 1.1754944e-38, %v814_v20  ;;  %vm813_vm2 = vcmp.eq.f32.partialorder %v812_v21, 8.507059e+37 }
 0xa0a   :  { %v2918_v11 = vpop.eup %2917 }
 0xa0b   :  { %v804_v12 = vmul.f32 %v2918_v11, %v802_v9  ;;  %v2920_v14 = vpop.eup %2919  ;;  %vm809_vm14 = vweird.f32 %v2918_v11 }
 0xa0c   :  { %v762_v15 = vadd.f32 1.0, %v2920_v14  ;;  %vm810_vm1 = vmor %vm808_vm15, %vm809_vm14 }
 0xa0d   :  { %v805_v13 = vsub.f32 1.0, %v804_v12 }
 0xa0e   :  { %2921 = vrcp.f32 %v762_v15  ;;  %v774_v39 = vand.u32 2147483648, %v762_v15  ;;  %vm768_vm5 = vweird.f32 %v762_v15  ;;  %v772_v41 = vand.u32 2147483647, %v762_v15 }
 0xa0f   :  { %v806_v18 = vmul.f32 %v2918_v11, %v805_v13 }
 0xa10   :  { %v775_v43 = vor.u32 1.1754944e-38, %v774_v39  ;;  %vm773_vm7 = vcmp.eq.f32.partialorder %v772_v41, 8.507059e+37 }
 0xa11   :  { %v807_v19 = vadd.f32 %v2918_v11, %v806_v18 }
 0xa13   :  { %v811_v22 = vsel %vm810_vm1, %v2918_v11, %v807_v19 }
 0xa14   :  { %v2922_v24 = vpop.eup %2921  ;;  %v816_v28 = vsel %vm813_vm2, %v815_v23, %v811_v22 }
 0xa15   :  { %v764_v34 = vmul.f32 %v2922_v24, %v762_v15  ;;  %vm769_vm3 = vweird.f32 %v2922_v24  ;;  %v822_v56 = vmul.f32 %v820_v52, %v816_v28 }
 0xa16   :  { %vm770_vm6 = vmor %vm768_vm5, %vm769_vm3 }
 0xa17   :  { %v765_v35 = vsub.f32 1.0, %v764_v34 }
 0xa19   :  { %v766_v36 = vmul.f32 %v2922_v24, %v765_v35 }
 0xa1b   :  { %v767_v38 = vadd.f32 %v2922_v24, %v766_v36 }
 0xa1d   :  { %v771_v42 = vsel %vm770_vm6, %v2922_v24, %v767_v38 }
 0xa1e   :  { %v776_v47 = vsel %vm773_vm7, %v775_v43, %v771_v42 }
 0xa1f   :  { %v782_v48 = vmul.f32 %v780_v30, %v776_v47 }
 0xa5a   :  { %v825_v27 = vpop.permute.xlu2 %824 }
 0xa5b   :  { %v827_v29 = vmul.f32 %v825_v27, %v816_v28 }
 0xa5d   :  { %829 = vrot.lane.b32.xlu1 %v827_v29, %s3187_s17 }
 0xa70   :  { %v785_v46 = vpop.permute.xlu0 %784 }
 0xa71   :  { %v787_v37 = vmul.f32 %v785_v46, %v776_v47 }
 0xa73   :  { %789 = vrot.lane.b32.xlu2 %v787_v37, %s3187_s17 }
 0xacd   :  { %v790_v53 = vpop.permute.xlu2 %789 }
 0xace   :  { %v3509_v54 = vadd.f32 %v790_v53, %v782_v48 }
 0xacf   :  { %v830_v57 = vpop.permute.xlu1 %829 }
 0xad0   :  { %2923 = vtanh.f32 %v3509_v54  ;;  %v3512_v55 = vadd.f32 %v830_v57, %v822_v56  ;;  %v915_v52 = vrot.slane %v3509_v54, 6 }
 0xad2   :  { %2925 = vtanh.f32 %v3512_v55 }
 0xad6   :  { %v2924_v60 = vpop.eup %2923 }
 0xad7   :  { %795 = vrot.lane.b32.xlu1 %v2924_v60, %s3186_s3 }
 0xad8   :  { %v2926_v45 = vpop.eup %2925 }
 0xad9   :  { %835 = vrot.lane.b32.xlu0 %v2926_v45, %s3186_s3  ;;  %v955_v45 = vrot.slane %v3512_v55, 2 }
 0xb49   :  { %v796_v44 = vpop.permute.xlu1 %795 }
 0xb4a   :  { %v798_v61 = vmul.f32 %v796_v44, %v776_v47 }
 0xb4b   :  { %v836_v51 = vpop.permute.xlu0 %835 }
 0xb4c   :  { %840 = vrot.lane.b32.xlu2 %v798_v61, %s3187_s17  ;;  %v3518_v50 = vmul.f32 %v836_v51, %v816_v28 }
 0xb4e   :  { %v849_v62 = vrot.slane %v3518_v50, 6 }
 0xb50   :  { %850 = vrot.lane.b32.xlu0 %v849_v62, %s3186_s3 }
 0xba6   :  { %v3522_v63 = vpop.permute.xlu2 %840 }
 0xbc2   :  { %v851_v0 = vpop.permute.xlu0 %850 }
 0xbc3   :  { %v853_v1 = vsel %vm306_vm10, %v3522_v63, %v851_v0 }
 0xbc4   :  { %v854_v2 = vpack.c.bf16 %v853_v1, %v853_v1 }
 0xbc6   :  { %2661 = vmatmul.msk.bf16.vlgmr.msrb.gmra.mxu0 %vm179_vm11, %v854_v2  ;;  %2662 = vmatmul.msk.bf16.vlgmr.msrb.gmra.mxu1 %vm179_vm11, %v854_v2 }
 0xc43   :  { %v867_v3 = vpop.f32.mrf.mxu0  ;;  %v880_v4 = vpop.f32.mrf.mxu1 }
 0xc44   :  { %v886_v5 = vrot.slane %v867_v3, 6  ;;  %v891_v7 = vrot.slane %v880_v4, 4 }
 0xc46   :  { %v888_v16 = vadd.f32 %v886_v5, %v884_v6  ;;  %v893_v17 = vadd.f32 %v891_v7, %v889_v8 }
 0xc48   :  { %2927 = vtanh.f32 %v888_v16  ;;  %v2663_v9 = vmul.f32 -1.442695, %v888_v16  ;;  %v2664_v13 = vmul.f32 -1.442695, %v893_v17 }
 0xc49   :  { %2929 = vtanh.f32 %v893_v17 }
 0xc4a   :  { %2931 = vpow2.f32 %v2663_v9 }
 0xc4b   :  { %v869_v25 = vpop.f32.mrf.mxu0  ;;  %v882_v26 = vpop.f32.mrf.mxu1 }
 0xc4c   :  { %v1021_v26 = vld [vmem:[#allocation4 + $0x18] sm:$0x30] }
 0xc4e   :  { %v2928_v31 = vpop.eup %2927 }
 0xc4f   :  { %v2930_v32 = vpop.eup %2929  ;;  %919 = vrot.lane.b32.xlu2 %v2928_v31, %s3186_s3  ;;  %v1026_v31 = vld [vmem:[#allocation4] sm:$0xc] }
 0xc50   :  { %959 = vrot.lane.b32.xlu1 %v2930_v32, %s3186_s3  ;;  %v2932_v10 = vpop.eup %2931 }
 0xc51   :  { %v897_v11 = vadd.f32 1.0, %v2932_v10 }
 0xc53   :  { %2933 = vrcp.f32 %v897_v11  ;;  %v909_v22 = vand.u32 2147483648, %v897_v11  ;;  %vm903_vm12 = vweird.f32 %v897_v11  ;;  %v907_v23 = vand.u32 2147483647, %v897_v11 }
 0xc54   :  { %2935 = vpow2.f32 %v2664_v13 }
 0xc55   :  { %v910_v27 = vor.u32 1.1754944e-38, %v909_v22  ;;  %vm908_vm15 = vcmp.eq.f32.partialorder %v907_v23, 8.507059e+37 }
 0xc59   :  { %v2934_v12 = vpop.eup %2933 }
 0xc5a   :  { %v899_v14 = vmul.f32 %v2934_v12, %v897_v11  ;;  %v2936_v19 = vpop.eup %2935  ;;  %vm904_vm8 = vweird.f32 %v2934_v12 }
 0xc5b   :  { %v937_v20 = vadd.f32 1.0, %v2936_v19  ;;  %vm905_vm14 = vmor %vm903_vm12, %vm904_vm8 }
 0xc5c   :  { %v900_v15 = vsub.f32 1.0, %v899_v14 }
 0xc5d   :  { %2937 = vrcp.f32 %v937_v20  ;;  %v949_v42 = vand.u32 2147483648, %v937_v20  ;;  %vm943_vm2 = vweird.f32 %v937_v20  ;;  %v947_v43 = vand.u32 2147483647, %v937_v20 }
 0xc5e   :  { %v901_v18 = vmul.f32 %v2934_v12, %v900_v15 }
 0xc5f   :  { %v950_v47 = vor.u32 1.1754944e-38, %v949_v42  ;;  %vm948_vm5 = vcmp.eq.f32.partialorder %v947_v43, 8.507059e+37 }
 0xc60   :  { %v902_v21 = vadd.f32 %v2934_v12, %v901_v18 }
 0xc62   :  { %v906_v24 = vsel %vm905_vm14, %v2934_v12, %v902_v21 }
 0xc63   :  { %v911_v29 = vsel %vm908_vm15, %v910_v27, %v906_v24  ;;  %v2938_v35 = vpop.eup %2937 }
 0xc64   :  { %v939_v36 = vmul.f32 %v2938_v35, %v937_v20  ;;  %vm944_vm1 = vweird.f32 %v2938_v35  ;;  %v917_v53 = vmul.f32 %v915_v52, %v911_v29 }
 0xc65   :  { %vm945_vm3 = vmor %vm943_vm2, %vm944_vm1 }
 0xc66   :  { %v940_v38 = vsub.f32 1.0, %v939_v36 }
 0xc68   :  { %v941_v39 = vmul.f32 %v2938_v35, %v940_v38 }
 0xc6a   :  { %v942_v41 = vadd.f32 %v2938_v35, %v941_v39 }
 0xc6c   :  { %v946_v46 = vsel %vm945_vm3, %v2938_v35, %v942_v41 }
 0xc6d   :  { %v951_v30 = vsel %vm948_vm5, %v950_v47, %v946_v46 }
 0xc6e   :  { %v957_v44 = vmul.f32 %v955_v45, %v951_v30 }
 0xca9   :  { %v920_v28 = vpop.permute.xlu2 %919 }
 0xcaa   :  { %v922_v34 = vmul.f32 %v920_v28, %v911_v29 }
 0xcac   :  { %924 = vrot.lane.b32.xlu1 %v922_v34, %s3187_s17 }
 0xcc2   :  { %v960_v37 = vpop.permute.xlu1 %959 }
 0xcc3   :  { %v962_v48 = vmul.f32 %v960_v37, %v951_v30 }
 0xcc5   :  { %964 = vrot.lane.b32.xlu0 %v962_v48, %s3187_s17 }
 0xd1e   :  { %v925_v56 = vpop.permute.xlu1 %924 }
 0xd1f   :  { %v3533_v57 = vadd.f32 %v925_v56, %v917_v53 }
 0xd21   :  { %2939 = vtanh.f32 %v3533_v57 }
 0xd27   :  { %v2940_v60 = vpop.eup %2939 }
 0xd28   :  { %930 = vrot.lane.b32.xlu0 %v2940_v60, %s3186_s3 }
 0xd37   :  { %v965_v61 = vpop.permute.xlu0 %964 }
 0xd38   :  { %v3538_v51 = vadd.f32 %v965_v61, %v957_v44 }
 0xd3a   :  { %2941 = vtanh.f32 %v3538_v51  ;;  %v1092_v44 = vrot.slane %v3538_v51, 2 }
 0xd40   :  { %v2942_v62 = vpop.eup %2941 }
 0xd41   :  { %970 = vrot.lane.b32.xlu2 %v2942_v62, %s3186_s3 }
 0xd9a   :  { %v931_v54 = vpop.permute.xlu0 %930 }
 0xd9b   :  { %v971_v0 = vpop.permute.xlu2 %970  ;;  %v933_v1 = vmul.f32 %v931_v54, %v911_v29 }
 0xd9c   :  { %v3542_v2 = vmul.f32 %v971_v0, %v951_v30 }
 0xd9d   :  { %975 = vrot.lane.b32.xlu1 %v933_v1, %s3187_s17  ;;  %v1052_v1 = vrot.slane %v3533_v57, 6 }
 0xd9e   :  { %v984_v3 = vrot.slane %v3542_v2, 2 }
 0xda0   :  { %985 = vrot.lane.b32.xlu2 %v984_v3, %s3186_s3 }
 0xdfa   :  { %v986_v55 = vpop.permute.xlu2 %985 }
 0xe0f   :  { %v3547_v4 = vpop.permute.xlu1 %975 }
 0xe10   :  { %v988_v5 = vsel %vm306_vm10, %v3547_v4, %v986_v55 }
 0xe11   :  { %v989_v7 = vpack.c.bf16 %v988_v5, %v988_v5 }
 0xe13   :  { %v991_v6 = vrot.slane %v989_v7, 1 }
 0xe15   :  { %2665 = vmatmul.msk.bf16.vlgmr.msrb.gmra.mxu2 %vm179_vm11, %v991_v6  ;;  %2666 = vmatmul.msk.bf16.vlgmr.msrb.gmra.mxu3 %vm179_vm11, %v991_v6 }
 0xe98   :  { %v1004_v8 = vpop.f32.mrf.mxu2  ;;  %v1017_v16 = vpop.f32.mrf.mxu3 }
 0xe99   :  { %v1023_v17 = vrot.slane %v1004_v8, 4  ;;  %v1028_v25 = vrot.slane %v1017_v16, 6 }
 0xe9b   :  { %v1025_v32 = vadd.f32 %v1023_v17, %v1021_v26  ;;  %v1030_v9 = vadd.f32 %v1028_v25, %v1026_v31 }
 0xe9d   :  { %2943 = vtanh.f32 %v1025_v32  ;;  %v2667_v14 = vmul.f32 -1.442695, %v1025_v32  ;;  %v2668_v15 = vmul.f32 -1.442695, %v1030_v9 }
 0xe9e   :  { %2945 = vtanh.f32 %v1030_v9 }
 0xe9f   :  { %2947 = vpow2.f32 %v2667_v14  ;;  %v1158_v14 = vld [vmem:[#allocation4 + $0x18] sm:$0xc0] }
 0xea0   :  { %v1006_v10 = vpop.f32.mrf.mxu2  ;;  %v1019_v11 = vpop.f32.mrf.mxu3  ;;  %2949 = vpow2.f32 %v2668_v15 }
 0xea1   :  { %v1163_v11 = vld [vmem:[#allocation4] sm:$0x3] }
 0xea3   :  { %v2944_v12 = vpop.eup %2943 }
 0xea4   :  { %v2946_v13 = vpop.eup %2945  ;;  %1056 = vrot.lane.b32.xlu1 %v2944_v12, %s3186_s3 }
 0xea5   :  { %1096 = vrot.lane.b32.xlu0 %v2946_v13, %s3186_s3  ;;  %v2948_v18 = vpop.eup %2947 }
 0xea6   :  { %v2950_v19 = vpop.eup %2949  ;;  %v1034_v20 = vadd.f32 1.0, %v2948_v18 }
 0xea7   :  { %v1074_v21 = vadd.f32 1.0, %v2950_v19 }
 0xea8   :  { %2951 = vrcp.f32 %v1034_v20  ;;  %v1046_v39 = vand.u32 2147483648, %v1034_v20  ;;  %vm1040_vm8 = vweird.f32 %v1034_v20  ;;  %v1044_v42 = vand.u32 2147483647, %v1034_v20 }
 0xea9   :  { %2953 = vrcp.f32 %v1074_v21  ;;  %v1086_v41 = vand.u32 2147483648, %v1074_v21  ;;  %vm1080_vm12 = vweird.f32 %v1074_v21  ;;  %v1084_v43 = vand.u32 2147483647, %v1074_v21 }
 0xeaa   :  { %v1047_v37 = vor.u32 1.1754944e-38, %v1046_v39  ;;  %vm1045_vm1 = vcmp.eq.f32.partialorder %v1044_v42, 8.507059e+37 }
 0xeab   :  { %v1087_v30 = vor.u32 1.1754944e-38, %v1086_v41  ;;  %vm1085_vm2 = vcmp.eq.f32.partialorder %v1084_v43, 8.507059e+37 }
 0xeae   :  { %v2952_v22 = vpop.eup %2951 }
 0xeaf   :  { %v2954_v23 = vpop.eup %2953  ;;  %v1036_v24 = vmul.f32 %v2952_v22, %v1034_v20  ;;  %vm1041_vm6 = vweird.f32 %v2952_v22 }
 0xeb0   :  { %v1076_v27 = vmul.f32 %v2954_v23, %v1074_v21  ;;  %vm1081_vm7 = vweird.f32 %v2954_v23  ;;  %vm1042_vm14 = vmor %vm1040_vm8, %vm1041_vm6 }
 0xeb1   :  { %v1037_v28 = vsub.f32 1.0, %v1036_v24  ;;  %vm1082_vm15 = vmor %vm1080_vm12, %vm1081_vm7 }
 0xeb2   :  { %v1077_v29 = vsub.f32 1.0, %v1076_v27 }
 0xeb3   :  { %v1038_v34 = vmul.f32 %v2952_v22, %v1037_v28 }
 0xeb4   :  { %v1078_v35 = vmul.f32 %v2954_v23, %v1077_v29 }
 0xeb5   :  { %v1039_v36 = vadd.f32 %v2952_v22, %v1038_v34 }
 0xeb6   :  { %v1079_v38 = vadd.f32 %v2954_v23, %v1078_v35 }
 0xeb7   :  { %v1043_v46 = vsel %vm1042_vm14, %v2952_v22, %v1039_v36 }
 0xeb8   :  { %v1083_v47 = vsel %vm1082_vm15, %v2954_v23, %v1079_v38  ;;  %v1048_v52 = vsel %vm1045_vm1, %v1047_v37, %v1043_v46  ;;  %vm300_vm1 = vcmask 523526  }
 0xeb9   :  { %v1088_v56 = vsel %vm1085_vm2, %v1087_v30, %v1083_v47  ;;  %v1054_v3 = vmul.f32 %v1052_v1, %v1048_v52  ;;  %vm713_vm2 = vcmask 517376  }
 0xeba   :  { %v1094_v61 = vmul.f32 %v1092_v44, %v1088_v56 }
 0xf16   :  { %v1057_v48 = vpop.permute.xlu1 %1056 }
 0xf17   :  { %v1097_v53 = vpop.permute.xlu0 %1096  ;;  %v1059_v60 = vmul.f32 %v1057_v48, %v1048_v52 }
 0xf18   :  { %v1099_v45 = vmul.f32 %v1097_v53, %v1088_v56 }
 0xf19   :  { %1061 = vrot.lane.b32.xlu0 %v1059_v60, %s3187_s17 }
 0xf1a   :  { %1101 = vrot.lane.b32.xlu2 %v1099_v45, %s3187_s17 }
 0xf74   :  { %v1102_v62 = vpop.permute.xlu2 %1101 }
 0xf75   :  { %v3558_v54 = vadd.f32 %v1102_v62, %v1094_v61 }
 0xf77   :  { %2955 = vtanh.f32 %v3558_v54 }
 0xf7d   :  { %v2956_v0 = vpop.eup %2955 }
 0xf7e   :  { %1107 = vrot.lane.b32.xlu1 %v2956_v0, %s3186_s3 }
 0xf8b   :  { %v1062_v55 = vpop.permute.xlu0 %1061 }
 0xf8c   :  { %v3563_v5 = vadd.f32 %v1062_v55, %v1054_v3  ;;  %v1226_v55 = vrot.slane %v3558_v54, 2 }
 0xf8e   :  { %2957 = vtanh.f32 %v3563_v5 }
 0xf94   :  { %v2958_v7 = vpop.eup %2957 }
 0xf95   :  { %1067 = vrot.lane.b32.xlu2 %v2958_v7, %s3186_s3  ;;  %v1186_v7 = vrot.slane %v3563_v5, 6 }
 0xfef   :  { %v1068_v51 = vpop.permute.xlu2 %1067 }
 0xff0   :  { %v1108_v6 = vpop.permute.xlu1 %1107  ;;  %v1070_v8 = vmul.f32 %v1068_v51, %v1048_v52 }
 0xff1   :  { %v3567_v16 = vmul.f32 %v1108_v6, %v1088_v56 }
 0xff2   :  { %1112 = vrot.lane.b32.xlu0 %v1070_v8, %s3187_s17 }
 0xff3   :  { %v1121_v17 = vrot.slane %v3567_v16, 6 }
 0xff5   :  { %1122 = vrot.lane.b32.xlu1 %v1121_v17, %s3186_s3 }
0x1064   :  { %v3572_v57 = vpop.permute.xlu0 %1112 }
0x1067   :  { %v1123_v25 = vpop.permute.xlu1 %1122 }
0x1068   :  { %v1125_v26 = vsel %vm306_vm10, %v3572_v57, %v1123_v25 }
0x1069   :  { %v1126_v31 = vpack.c.bf16 %v1125_v26, %v1125_v26 }
0x106b   :  { %v1128_v32 = vrot.slane %v1126_v31, 2 }
0x106d   :  { %2669 = vmatmul.msk.bf16.vlgmr.msra.gmra.mxu0 %vm179_vm11, %v1128_v32  ;;  %2670 = vmatmul.msk.bf16.vlgmr.msra.gmra.mxu1 %vm179_vm11, %v1128_v32  ;;  %v2701_v32 = vld [vmem:[#allocation5 + $0x38] sm:$0xf0] }
0x10ea   :  { %v1141_v9 = vpop.f32.mrf.mxu0  ;;  %v1154_v10 = vpop.f32.mrf.mxu1 }
0x10eb   :  { %v1160_v12 = vrot.slane %v1141_v9, 2  ;;  %v1164_v13 = vadd.f32 %v1163_v11, %v1154_v10  ;;  %v2699_v9 = vld [vmem:[#allocation5 + $0x30] sm:$0xf]  ;;  %v2820_v10 = vld [vmem:[#allocation5 + $0x34] sm:$0xf0] }
0x10ec   :  { %v2700_v11 = vor.u32 %v2820_v10, %v2699_v9 }
0x10ed   :  { %v1162_v15 = vadd.f32 %v1160_v12, %v1158_v14  ;;  %2959 = vtanh.f32 %v1164_v13  ;;  %v2672_v27 = vmul.f32 -1.442695, %v1164_v13 }
0x10ee   :  { %1319 = vmatpush.bf16.msra.mxu2 %v2700_v11 }
0x10ef   :  { %2961 = vtanh.f32 %v1162_v15  ;;  %v2671_v22 = vmul.f32 -1.442695, %v1162_v15 }
0x10f1   :  { %2963 = vpow2.f32 %v2671_v22  ;;  %v2818_v22 = vld [vmem:[#allocation5 + $0x24] sm:$0xf0] }
0x10f2   :  { %v1143_v18 = vpop.f32.mrf.mxu0  ;;  %v1156_v19 = vpop.f32.mrf.mxu1 }
0x10f3   :  { %v2960_v20 = vpop.eup %2959  ;;  %v2817_v18 = vld [vmem:[#allocation5 + $0x24] sm:$0xf]  ;;  %v2693_v19 = vld [vmem:[#allocation5 + $0x28] sm:$0xf0] }
0x10f4   :  { %1230 = vrot.lane.b32.xlu0 %v2960_v20, %s3186_s3  ;;  %v2691_v20 = vld [vmem:[#allocation5 + $0x20] sm:$0xf] }
0x10f5   :  { %v2962_v21 = vpop.eup %2961 }
0x10f6   :  { %1190 = vrot.lane.b32.xlu2 %v2962_v21, %s3186_s3  ;;  %v2696_v21 = vor.u32 %v2817_v18, %v2693_v19 }
0x10f7   :  { %v2964_v23 = vpop.eup %2963 }
0x10f8   :  { %v1168_v24 = vadd.f32 1.0, %v2964_v23  ;;  %v2692_v23 = vor.u32 %v2818_v22, %v2691_v20 }
0x10fa   :  { %2965 = vrcp.f32 %v1168_v24  ;;  %v1180_v41 = vand.u32 2147483648, %v1168_v24  ;;  %vm1174_vm5 = vweird.f32 %v1168_v24  ;;  %v1178_v42 = vand.u32 2147483647, %v1168_v24  ;;  %1320 = vmatpush.bf16.msra.mxu2 %v2692_v23 }
0x10fb   :  { %2967 = vpow2.f32 %v2672_v27  ;;  %v2683_v27 = vld [vmem:[#allocation5 + $0x10] sm:$0xf] }
0x10fc   :  { %v1181_v46 = vor.u32 1.1754944e-38, %v1180_v41  ;;  %vm1179_vm7 = vcmp.eq.f32.partialorder %v1178_v42, 8.507059e+37  ;;  %v2735_v41 = vld [vmem:[#allocation8 + $0x38] sm:$0xf0] }
0x1100   :  { %v2966_v28 = vpop.eup %2965 }
0x1101   :  { %v1170_v29 = vmul.f32 %v2966_v28, %v1168_v24  ;;  %v2968_v35 = vpop.eup %2967  ;;  %vm1175_vm3 = vweird.f32 %v2966_v28  ;;  %v2685_v24 = vld [vmem:[#allocation5 + $0x18] sm:$0xf0] }
0x1102   :  { %v1208_v38 = vadd.f32 1.0, %v2968_v35  ;;  %vm1176_vm6 = vmor %vm1174_vm5, %vm1175_vm3  ;;  %vm577_vm3 = vcmask 519426   ;;  %vm3964_vm5 = vcmask 521476  }
0x1103   :  { %v1171_v34 = vsub.f32 1.0, %v1170_v29  ;;  %v2816_v29 = vld [vmem:[#allocation5 + $0x14] sm:$0xf0] }
0x1104   :  { %2969 = vrcp.f32 %v1208_v38  ;;  %v1220_v45 = vand.u32 2147483648, %v1208_v38  ;;  %vm1214_vm12 = vweird.f32 %v1208_v38  ;;  %v1218_v44 = vand.u32 2147483647, %v1208_v38 }
0x1105   :  { %v1172_v36 = vmul.f32 %v2966_v28, %v1171_v34  ;;  %v2677_v34 = vld [vmem:[#allocation5 + $0x8] sm:$0xf0]  ;;  %v2684_v35 = vor.u32 %v2816_v29, %v2683_v27 }
0x1106   :  { %v1221_v62 = vor.u32 1.1754944e-38, %v1220_v45  ;;  %vm1219_vm15 = vcmp.eq.f32.partialorder %v1218_v44, 8.507059e+37  ;;  %v2823_v45 = vld [vmem:[#allocation8 + $0x14] sm:$0xf]  ;;  %v2719_v44 = vld [vmem:[#allocation8 + $0x18] sm:$0xf0] }
0x1107   :  { %v1173_v39 = vadd.f32 %v2966_v28, %v1172_v36  ;;  %v2675_v36 = vld [vmem:[#allocation5] sm:$0xf]  ;;  %1321 = vmatpush.bf16.msra.mxu2 %v2684_v35 }
0x1109   :  { %v1177_v43 = vsel %vm1176_vm6, %v2966_v28, %v1173_v39  ;;  %v2827_v39 = vld [vmem:[#allocation8 + $0x34] sm:$0xf] }
0x110a   :  { %v2970_v47 = vpop.eup %2969  ;;  %v1182_v30 = vsel %vm1179_vm7, %v1181_v46, %v1177_v43  ;;  %v3615_v43 = vor.u32 %v2827_v39, %v2735_v41 }
0x110b   :  { %v1210_v52 = vmul.f32 %v2970_v47, %v1208_v38  ;;  %vm1215_vm8 = vweird.f32 %v2970_v47  ;;  %v1188_v17 = vmul.f32 %v1186_v7, %v1182_v30  ;;  %v2814_v38 = vld [vmem:[#allocation5 + $0x4] sm:$0xf0] }
0x110c   :  { %vm1216_vm14 = vmor %vm1214_vm12, %vm1215_vm8  ;;  %v2676_v46 = vor.u32 %v2814_v38, %v2675_v36  ;;  %1412 = vmatpush.bf16.msrb.mxu1 %v3615_v43 }
0x110d   :  { %v1211_v53 = vsub.f32 1.0, %v1210_v52  ;;  %v2727_v52 = vld [vmem:[#allocation8 + $0x28] sm:$0xf0] }
0x110e   :  { %1322 = vmatpush.bf16.msra.mxu2 %v2676_v46 }
0x110f   :  { %v1212_v56 = vmul.f32 %v2970_v47, %v1211_v53  ;;  %v2725_v53 = vld [vmem:[#allocation8 + $0x20] sm:$0xf] }
0x1111   :  { %v1213_v60 = vadd.f32 %v2970_v47, %v1212_v56 }
0x1113   :  { %v1217_v61 = vsel %vm1216_vm14, %v2970_v47, %v1213_v60  ;;  %v2733_v47 = vld [vmem:[#allocation8 + $0x30] sm:$0xf]  ;;  %v2826_v60 = vld [vmem:[#allocation8 + $0x24] sm:$0xf0] }
0x1114   :  { %v1222_v1 = vsel %vm1219_vm15, %v1221_v62, %v1217_v61  ;;  %v3624_v61 = vor.u32 %v2826_v60, %v2725_v53  ;;  %v3628_v62 = vor.u32 %v2823_v45, %v2719_v44 }
0x1115   :  { %v1228_v51 = vmul.f32 %v1226_v55, %v1222_v1  ;;  %v2711_v55 = vld [vmem:[#allocation8 + $0x8] sm:$0xf0] }
0x1150   :  { %v1191_v37 = vpop.permute.xlu2 %1190 }
0x1151   :  { %v1193_v48 = vmul.f32 %v1191_v37, %v1182_v30  ;;  %v2828_v37 = vld [vmem:[#allocation8 + $0x34] sm:$0xf0] }
0x1153   :  { %1195 = vrot.lane.b32.xlu1 %v1193_v48, %s3187_s17  ;;  %v2825_v48 = vld [vmem:[#allocation8 + $0x24] sm:$0xf] }
0x1154   :  { %v3621_v56 = vor.u32 %v2825_v48, %v2727_v52 }
0x1156   :  { %1413 = vmatpush.bf16.msrb.mxu1 %v3621_v56 }
0x115a   :  { %1414 = vmatpush.bf16.msrb.mxu1 %v3628_v62 }
0x1166   :  { %v1231_v0 = vpop.permute.xlu0 %1230 }
0x1167   :  { %v1233_v3 = vmul.f32 %v1231_v0, %v1222_v1  ;;  %v2717_v0 = vld [vmem:[#allocation8 + $0x10] sm:$0xf] }
0x1169   :  { %1235 = vrot.lane.b32.xlu2 %v1233_v3, %s3187_s17  ;;  %v2821_v3 = vld [vmem:[#allocation8 + $0x4] sm:$0xf] }
0x1171   :  { %297 = vrot.lane.b32.xlu2 %v3401_v40, %s3186_s3 }
0x1179   :  { %710 = vrot.lane.b32.xlu2 %v3494_v58, %s3186_s3 }
0x1181   :  { %1117 = vrot.lane.b32.xlu2 %v3567_v16, %s3186_s3  ;;  %v2819_v16 = vld [vmem:[#allocation5 + $0x34] sm:$0xf] }
0x11c3   :  { %v1236_v6 = vpop.permute.xlu2 %1235 }
0x11c4   :  { %v1238_v8 = vadd.f32 %v1236_v6, %v1228_v51  ;;  %v3636_v51 = vor.u32 %v2821_v3, %v2711_v55  ;;  %v2709_v6 = vld [vmem:[#allocation8] sm:$0xf] }
0x11c5   :  { %v1196_v25 = vpop.permute.xlu1 %1195 }
0x11c6   :  { %2971 = vtanh.f32 %v1238_v8  ;;  %v1198_v26 = vadd.f32 %v1196_v25, %v1188_v17  ;;  %v2822_v8 = vld [vmem:[#allocation8 + $0x4] sm:$0xf0]  ;;  %1415 = vmatpush.bf16.msrb.mxu1 %v3636_v51 }
0x11c7   :  { %v3640_v17 = vor.u32 %v2822_v8, %v2709_v6 }
0x11c8   :  { %2973 = vtanh.f32 %v1198_v26 }
0x11c9   :  { %1416 = vmatmul.bf16.vlgmr.msrb.gmra.mxu1 %v3185_v33 }
0x11ca   :  { %1675 = vmatpush.bf16.msra.mxu1 %v3615_v43 }
0x11cb   :  { %v298_v40 = vpop.permute.xlu2 %297 }
0x11cc   :  { %v2972_v31 = vpop.eup %2971  ;;  %301 = vst.msk [vmem:[#allocation2 + $0x8] sm:$0xc0] %vm300_vm1, %v298_v40 }
0x11cd   :  { %1241 = vrot.lane.b32.xlu1 %v2972_v31, %s3186_s3 }
0x11ce   :  { %v2974_v58 = vpop.eup %2973  ;;  %1676 = vmatpush.bf16.msra.mxu1 %v3621_v56 }
0x11cf   :  { %1201 = vrot.lane.b32.xlu0 %v2974_v58, %s3186_s3 }
0x11d2   :  { %1677 = vmatpush.bf16.msra.mxu1 %v3628_v62 }
0x11d3   :  { %v711_v54 = vpop.permute.xlu2 %710 }
0x11d4   :  { %714 = vst.msk [vmem:[#allocation2 + $0x8] sm:$0x3] %vm713_vm2, %v711_v54 }
0x11d5   :  { %843 = vst.msk [vmem:[#allocation2 + $0x8] sm:$0x3] %vm294_vm9, %v3522_v63  ;;  %574 = vrot.lane.b32.xlu1 %v3463_v59, %s3186_s3  ;;  %v2704_v63 = vor.u32 %v2819_v16, %v2701_v32  ;;  %v1266_v32 = vld [vmem:[%s3957_s6] sm:$0x3] }
0x11d6   :  { %1678 = vmatpush.bf16.msra.mxu1 %v3636_v51  ;;  %v1268_v9 = vperm.slane %v1266_v32, 0 }
0x11d7   :  { %435 = vrot.lane.b32.xlu0 %v3432_v49, %s3186_s3  ;;  %1333 = vmatpush.bf16.msra.mxu3 %v2704_v63  ;;  %v1269_v63 = vperm.slane %v1266_v32, 1 }
0x11da   :  { %1946 = vmatpush.bf16.msrb.mxu1 %v3615_v43 }
0x11db   :  { %v1118_v5 = vpop.permute.xlu2 %1117  ;;  %1334 = vmatpush.bf16.msra.mxu3 %v2696_v21 }
0x11dc   :  { %1120 = vst.msk [vmem:[#allocation2] sm:$0xc] %vm577_vm3, %v1118_v5 }
0x11dd   :  { %980 = vrot.lane.b32.xlu1 %v3542_v2, %s3186_s3 }
0x11de   :  { %1947 = vmatpush.bf16.msrb.mxu1 %v3621_v56 }
0x11df   :  { %845 = vrot.lane.b32.xlu0 %v3518_v50, %s3186_s3 }
0x11e2   :  { %1948 = vmatpush.bf16.msrb.mxu1 %v3628_v62 }
0x11e6   :  { %1949 = vmatpush.bf16.msrb.mxu1 %v3636_v51 }
0x123f   :  { %v1242_v59 = vpop.permute.xlu1 %1241 }
0x1240   :  { %v1244_v49 = vmul.f32 %v1242_v59, %v1222_v1  ;;  %v2824_v1 = vld [vmem:[#allocation8 + $0x14] sm:$0xf0] }
0x1241   :  { %v1202_v12 = vpop.permute.xlu0 %1201  ;;  %v3632_v7 = vor.u32 %v2824_v1, %v2717_v0 }
0x1242   :  { %v1204_v13 = vmul.f32 %v1202_v12, %v1182_v30  ;;  %1251 = vrot.lane.b32.xlu1 %v1244_v49, %s3186_s3  ;;  %v3619_v30 = vor.u32 %v2828_v37, %v2733_v47 }
0x1244   :  { %1246 = vrot.lane.b32.xlu0 %v1204_v13, %s3187_s17  ;;  %1399 = vmatpush.bf16.msrb.mxu0 %v3619_v30 }
0x1245   :  { %1525 = vmatpush.bf16.msrb.mxu2 %v3619_v30 }
0x1246   :  { %v1417_v58 = vpop.f32.mrf.mxu1 }
0x1247   :  { %v575_v2 = vpop.permute.xlu1 %574  ;;  %v1425_v18 = vrot.slane %v1417_v58, 2 }
0x1248   :  { %578 = vst.msk [vmem:[#allocation2 + $0x8] sm:$0xc] %vm577_vm3, %v575_v2  ;;  %1400 = vmatpush.bf16.msrb.mxu0 %v3624_v61 }
0x1249   :  { %978 = vst.msk [vmem:[#allocation2 + $0x8] sm:$0xc] %vm3965_vm4, %v3547_v4  ;;  %v436_v50 = vpop.permute.xlu0 %435  ;;  %v2815_v4 = vld [vmem:[#allocation5 + $0x14] sm:$0xf]  ;;  %1526 = vmatpush.bf16.msrb.mxu2 %v3624_v61 }
0x124a   :  { %439 = vst.msk [vmem:[#allocation2 + $0x8] sm:$0x30] %vm3964_vm5, %v436_v50  ;;  %v2688_v28 = vor.u32 %v2815_v4, %v2685_v24 }
0x124b   :  { %1115 = vst.msk [vmem:[#allocation2 + $0x8] sm:$0x30] %vm571_vm0, %v3572_v57  ;;  %v2813_v57 = vld [vmem:[#allocation5 + $0x4] sm:$0xf] }
0x124c   :  { %1335 = vmatpush.bf16.msra.mxu3 %v2688_v28  ;;  %v2680_v42 = vor.u32 %v2813_v57, %v2677_v34  ;;  %1401 = vmatpush.bf16.msrb.mxu0 %v3632_v7 }
0x124d   :  { %1527 = vmatpush.bf16.msrb.mxu2 %v3632_v7 }
0x124e   :  { %v1419_v5 = vpop.f32.mrf.mxu1 }
0x124f   :  { %v981_v14 = vpop.permute.xlu1 %980 }
0x1250   :  { %983 = vst.msk [vmem:[#allocation2] sm:$0x30] %vm3964_vm5, %v981_v14  ;;  %1336 = vmatpush.bf16.msra.mxu3 %v2680_v42  ;;  %1402 = vmatpush.bf16.msrb.mxu0 %v3640_v17 }
0x1251   :  { %v846_v15 = vpop.permute.xlu0 %845  ;;  %1528 = vmatpush.bf16.msrb.mxu2 %v3640_v17 }
0x1252   :  { %848 = vst.msk [vmem:[#allocation2] sm:$0xc0] %vm300_vm1, %v846_v15 }
0x1253   :  { %1403 = vmatmul.bf16.vlgmr.msrb.gmra.mxu0 %v3185_v33 }
0x1254   :  { %1538 = vmatpush.bf16.msrb.mxu3 %v3615_v43  ;;  %1662 = vmatpush.bf16.msra.mxu0 %v3619_v30 }
0x1258   :  { %1539 = vmatpush.bf16.msrb.mxu3 %v3621_v56  ;;  %1663 = vmatpush.bf16.msra.mxu0 %v3624_v61 }
0x125c   :  { %1540 = vmatpush.bf16.msrb.mxu3 %v3628_v62  ;;  %1664 = vmatpush.bf16.msra.mxu0 %v3632_v7 }
0x1260   :  { %1541 = vmatpush.bf16.msrb.mxu3 %v3636_v51  ;;  %1665 = vmatpush.bf16.msra.mxu0 %v3640_v17 }
0x1264   :  { %1933 = vmatpush.bf16.msrb.mxu0 %v3619_v30 }
0x1268   :  { %1934 = vmatpush.bf16.msrb.mxu0 %v3624_v61 }
0x126c   :  { %1935 = vmatpush.bf16.msrb.mxu0 %v3632_v7 }
0x1270   :  { %1936 = vmatpush.bf16.msrb.mxu0 %v3640_v17 }
0x12b4   :  { %v1252_v25 = vpop.permute.xlu1 %1251 }
0x12b5   :  { %1254 = vst.msk [vmem:[#allocation2] sm:$0x3] %vm713_vm2, %v1252_v25 }
0x12b6   :  { %v1247_v26 = vpop.permute.xlu0 %1246 }
0x12b7   :  { %1249 = vst.msk [vmem:[#allocation2 + $0x8] sm:$0xc0] %vm707_vm13, %v1247_v26 }
0x12bc   :  { %v1255_v33 = vld [vmem:[#allocation2] sm:$0xff] }
0x12be   :  { %v1256_v40 = vld [vmem:[#allocation2 + $0x8] sm:$0xff] }
0x12bf   :  { %v1257_v31 = vpack.c.bf16 %v1256_v40, %v1255_v33 }
0x12c1   :  { %2705 = vmatmul.msk.bf16.vlgmr.msra.gmra.mxu2 %vm179_vm11, %v1257_v31  ;;  %2706 = vmatmul.msk.bf16.vlgmr.msra.gmra.mxu3 %vm179_vm11, %v1257_v31 }
0x12c2   :  { %1812 = vmatpush.bf16.msra.mxu3 %v3615_v43  ;;  %1799 = vmatpush.bf16.msra.mxu2 %v3619_v30 }
0x12c6   :  { %1813 = vmatpush.bf16.msra.mxu3 %v3621_v56  ;;  %1800 = vmatpush.bf16.msra.mxu2 %v3624_v61 }
0x12ca   :  { %1814 = vmatpush.bf16.msra.mxu3 %v3628_v62  ;;  %1801 = vmatpush.bf16.msra.mxu2 %v3632_v7 }
0x12ce   :  { %1815 = vmatpush.bf16.msra.mxu3 %v3636_v51  ;;  %1802 = vmatpush.bf16.msra.mxu2 %v3640_v17 }
0x12d0   :  { %v1404_v54 = vpop.f32.mrf.mxu0 }
0x12d8   :  { %v1406_v16 = vpop.f32.mrf.mxu0 }
0x1344   :  { %v1324_v10 = vpop.f32.mrf.mxu2  ;;  %v1338_v11 = vpop.f32.mrf.mxu3 }
0x1345   :  { %v1325_v59 = vadd.f32 %v1324_v10, %v1268_v9  ;;  %v1339_v49 = vadd.f32 %v1338_v11, %v1269_v63 }
0x1347   :  { %1343 = vst [vmem:[#allocation4 + $0x10] sm:$0xff] %v1325_v59 }
0x1348   :  { %1344 = vst [vmem:[#allocation4] sm:$0xff] %v1339_v49 }
0x134c   :  { %v1326_v12 = vpop.f32.mrf.mxu2  ;;  %v1340_v13 = vpop.f32.mrf.mxu3 }
0x134d   :  { %v1327_v2 = vadd.f32 %v1326_v12, %v1268_v9  ;;  %v1341_v50 = vadd.f32 %v1340_v13, %v1269_v63 }
0x134e   :  { %v1421_v14 = vld [vmem:[#allocation4 + $0x10] sm:$0x3] }
0x134f   :  { %1345 = vst [vmem:[#allocation4 + $0x18] sm:$0xff] %v1327_v2  ;;  %v1422_v15 = vadd.f32 %v1421_v14, %v1404_v54 }
0x1350   :  { %1346 = vst [vmem:[#allocation4 + $0x8] sm:$0xff] %v1341_v50 }
0x1351   :  { %2975 = vtanh.f32 %v1422_v15  ;;  %v2739_v27 = vmul.f32 -1.442695, %v1422_v15 }
0x1357   :  { %v2976_v19 = vpop.eup %2975  ;;  %v1423_v20 = vld [vmem:[#allocation4 + $0x8] sm:$0xc0] }
0x1358   :  { %v1427_v21 = vadd.f32 %v1425_v18, %v1423_v20  ;;  %1450 = vrot.lane.b32.xlu0 %v2976_v19, %s3186_s3  ;;  %v1547_v18 = vld [vmem:[#allocation4 + $0x10] sm:$0xc]  ;;  %v1552_v19 = vld [vmem:[#allocation4 + $0x8] sm:$0x30] }
0x135a   :  { %2977 = vtanh.f32 %v1427_v21  ;;  %v2740_v23 = vmul.f32 -1.442695, %v1427_v21 }
0x135c   :  { %2979 = vpow2.f32 %v2740_v23 }
0x1360   :  { %v2978_v22 = vpop.eup %2977 }
0x1361   :  { %1487 = vrot.lane.b32.xlu2 %v2978_v22, %s3186_s3 }
0x1362   :  { %v2980_v4 = vpop.eup %2979 }
0x1363   :  { %v1468_v24 = vadd.f32 1.0, %v2980_v4 }
0x1365   :  { %2981 = vrcp.f32 %v1468_v24  ;;  %v1480_v41 = vand.u32 2147483648, %v1468_v24  ;;  %vm1474_vm7 = vweird.f32 %v1468_v24  ;;  %v1478_v42 = vand.u32 2147483647, %v1468_v24 }
0x1366   :  { %2983 = vpow2.f32 %v2739_v27 }
0x1367   :  { %v1481_v37 = vor.u32 1.1754944e-38, %v1480_v41  ;;  %vm1479_vm12 = vcmp.eq.f32.partialorder %v1478_v42, 8.507059e+37 }
0x136b   :  { %v2982_v28 = vpop.eup %2981 }
0x136c   :  { %v2984_v29 = vpop.eup %2983  ;;  %v1470_v57 = vmul.f32 %v2982_v28, %v1468_v24  ;;  %vm1475_vm6 = vweird.f32 %v2982_v28 }
0x136d   :  { %v1431_v34 = vadd.f32 1.0, %v2984_v29  ;;  %vm1476_vm8 = vmor %vm1474_vm7, %vm1475_vm6 }
0x136e   :  { %v1471_v35 = vsub.f32 1.0, %v1470_v57 }
0x136f   :  { %2985 = vrcp.f32 %v1431_v34  ;;  %v1443_v0 = vand.u32 2147483648, %v1431_v34  ;;  %vm1437_vm15 = vweird.f32 %v1431_v34  ;;  %v1441_v1 = vand.u32 2147483647, %v1431_v34 }
0x1370   :  { %v1472_v36 = vmul.f32 %v2982_v28, %v1471_v35 }
0x1371   :  { %v1444_v55 = vor.u32 1.1754944e-38, %v1443_v0  ;;  %vm1442_vm6 = vcmp.eq.f32.partialorder %v1441_v1, 8.507059e+37 }
0x1372   :  { %v1473_v39 = vadd.f32 %v2982_v28, %v1472_v36 }
0x1374   :  { %v1477_v47 = vsel %vm1476_vm8, %v2982_v28, %v1473_v39 }
0x1375   :  { %v2986_v38 = vpop.eup %2985  ;;  %v1482_v52 = vsel %vm1479_vm12, %v1481_v37, %v1477_v47 }
0x1376   :  { %v1433_v46 = vmul.f32 %v2986_v38, %v1431_v34  ;;  %vm1438_vm14 = vweird.f32 %v2986_v38  ;;  %v1485_v31 = vmul.f32 0.0, %v1482_v52 }
0x1377   :  { %vm1439_vm5 = vmor %vm1437_vm15, %vm1438_vm14 }
0x1378   :  { %v1434_v53 = vsub.f32 1.0, %v1433_v46 }
0x137a   :  { %v1435_v45 = vmul.f32 %v2986_v38, %v1434_v53 }
0x137c   :  { %v1436_v44 = vadd.f32 %v2986_v38, %v1435_v45 }
0x137e   :  { %v1440_v3 = vsel %vm1439_vm5, %v2986_v38, %v1436_v44 }
0x137f   :  { %v1445_v8 = vsel %vm1442_vm6, %v1444_v55, %v1440_v3 }
0x1380   :  { %v1448_v26 = vmul.f32 0.0, %v1445_v8 }
0x13bb   :  { %v1488_v48 = vpop.permute.xlu2 %1487 }
0x13bc   :  { %v1490_v60 = vmul.f32 %v1488_v48, %v1482_v52 }
0x13be   :  { %1492 = vrot.lane.b32.xlu1 %v1490_v60, %s3187_s17 }
0x13ca   :  { %v1451_v6 = vpop.permute.xlu0 %1450 }
0x13cb   :  { %v1453_v25 = vmul.f32 %v1451_v6, %v1445_v8 }
0x13cd   :  { %1455 = vrot.lane.b32.xlu2 %v1453_v25, %s3187_s17 }
0x1427   :  { %v1456_v33 = vpop.permute.xlu2 %1455 }
0x1428   :  { %v3684_v40 = vadd.f32 %v1456_v33, %v1448_v26 }
0x142a   :  { %2987 = vtanh.f32 %v3684_v40 }
0x1430   :  { %v2988_v58 = vpop.eup %2987  ;;  %v1493_v54 = vpop.permute.xlu1 %1492 }
0x1431   :  { %v3687_v5 = vadd.f32 %v1493_v54, %v1485_v31  ;;  %1461 = vrot.lane.b32.xlu1 %v2988_v58, %s3186_s3  ;;  %v1578_v58 = vrot.slane %v3684_v40, 6 }
0x1433   :  { %2989 = vtanh.f32 %v3687_v5 }
0x1439   :  { %v2990_v16 = vpop.eup %2989 }
0x143a   :  { %1498 = vrot.lane.b32.xlu0 %v2990_v16, %s3186_s3 }
0x14a3   :  { %v1462_v32 = vpop.permute.xlu1 %1461 }
0x14a4   :  { %v1464_v9 = vmul.f32 %v1462_v32, %v1445_v8 }
0x14a6   :  { %1503 = vrot.lane.b32.xlu2 %v1464_v9, %s3187_s17 }
0x14ac   :  { %v1499_v63 = vpop.permute.xlu0 %1498 }
0x14ad   :  { %v3693_v10 = vmul.f32 %v1499_v63, %v1482_v52  ;;  %v1618_v63 = vrot.slane %v3687_v5, 2 }
0x14af   :  { %v1512_v11 = vrot.slane %v3693_v10, 6 }
0x14b1   :  { %1513 = vrot.lane.b32.xlu0 %v1512_v11, %s3186_s3 }
0x1500   :  { %v1504_v59 = vpop.permute.xlu2 %1503 }
0x1501   :  { %1506 = vst.msk [vmem:[#allocation3] sm:$0x3] %vm294_vm9, %v1504_v59 }
0x1523   :  { %v1514_v49 = vpop.permute.xlu0 %1513 }
0x1524   :  { %v1516_v12 = vsel %vm306_vm10, %v1504_v59, %v1514_v49 }
0x1525   :  { %v1517_v13 = vpack.c.bf16 %v1516_v12, %v1516_v12 }
0x1527   :  { %2741 = vmatmul.msk.bf16.vlgmr.msrb.gmra.mxu2 %vm179_vm11, %v1517_v13  ;;  %2742 = vmatmul.msk.bf16.vlgmr.msrb.gmra.mxu3 %vm179_vm11, %v1517_v13 }
0x1528   :  { %2078 = vmatpush.bf16.msrb.mxu3 %v3615_v43  ;;  %2065 = vmatpush.bf16.msrb.mxu2 %v3619_v30 }
0x152c   :  { %2079 = vmatpush.bf16.msrb.mxu3 %v3621_v56  ;;  %2066 = vmatpush.bf16.msrb.mxu2 %v3624_v61 }
0x1530   :  { %2080 = vmatpush.bf16.msrb.mxu3 %v3628_v62  ;;  %2067 = vmatpush.bf16.msrb.mxu2 %v3632_v7 }
0x1534   :  { %2081 = vmatpush.bf16.msrb.mxu3 %v3636_v51  ;;  %2068 = vmatpush.bf16.msrb.mxu2 %v3640_v17 }
0x15aa   :  { %v1530_v2 = vpop.f32.mrf.mxu2  ;;  %v1543_v50 = vpop.f32.mrf.mxu3 }
0x15ab   :  { %v1549_v14 = vrot.slane %v1530_v2, 6  ;;  %v1554_v15 = vrot.slane %v1543_v50, 4 }
0x15ad   :  { %v1551_v20 = vadd.f32 %v1549_v14, %v1547_v18  ;;  %v1556_v21 = vadd.f32 %v1554_v15, %v1552_v19 }
0x15af   :  { %2991 = vtanh.f32 %v1551_v20  ;;  %v2743_v27 = vmul.f32 -1.442695, %v1551_v20  ;;  %v2744_v34 = vmul.f32 -1.442695, %v1556_v21 }
0x15b0   :  { %2993 = vtanh.f32 %v1556_v21 }
0x15b1   :  { %2995 = vpow2.f32 %v2743_v27  ;;  %v1689_v27 = vld [vmem:[#allocation4 + $0x8] sm:$0xc] }
0x15b2   :  { %v1532_v22 = vpop.f32.mrf.mxu2  ;;  %v1545_v23 = vpop.f32.mrf.mxu3 }
0x15b5   :  { %v2992_v4 = vpop.eup %2991 }
0x15b6   :  { %v2994_v24 = vpop.eup %2993  ;;  %1582 = vrot.lane.b32.xlu2 %v2992_v4, %s3186_s3 }
0x15b7   :  { %1622 = vrot.lane.b32.xlu1 %v2994_v24, %s3186_s3  ;;  %v2996_v28 = vpop.eup %2995  ;;  %v1684_v24 = vld [vmem:[#allocation4 + $0x10] sm:$0x30] }
0x15b8   :  { %v1560_v29 = vadd.f32 1.0, %v2996_v28 }
0x15ba   :  { %2997 = vrcp.f32 %v1560_v29  ;;  %v1572_v46 = vand.u32 2147483648, %v1560_v29  ;;  %vm1566_vm7 = vweird.f32 %v1560_v29  ;;  %v1570_v47 = vand.u32 2147483647, %v1560_v29 }
0x15bb   :  { %2999 = vpow2.f32 %v2744_v34 }
0x15bc   :  { %v1573_v48 = vor.u32 1.1754944e-38, %v1572_v46  ;;  %vm1571_vm12 = vcmp.eq.f32.partialorder %v1570_v47, 8.507059e+37 }
0x15c0   :  { %v2998_v57 = vpop.eup %2997 }
0x15c1   :  { %v1562_v35 = vmul.f32 %v2998_v57, %v1560_v29  ;;  %v3000_v39 = vpop.eup %2999  ;;  %vm1567_vm5 = vweird.f32 %v2998_v57 }
0x15c2   :  { %v1600_v41 = vadd.f32 1.0, %v3000_v39  ;;  %vm1568_vm8 = vmor %vm1566_vm7, %vm1567_vm5 }
0x15c3   :  { %v1563_v36 = vsub.f32 1.0, %v1562_v35 }
0x15c4   :  { %3001 = vrcp.f32 %v1600_v41  ;;  %v1612_v55 = vand.u32 2147483648, %v1600_v41  ;;  %vm1606_vm15 = vweird.f32 %v1600_v41  ;;  %v1610_v6 = vand.u32 2147483647, %v1600_v41 }
0x15c5   :  { %v1564_v38 = vmul.f32 %v2998_v57, %v1563_v36 }
0x15c6   :  { %v1613_v25 = vor.u32 1.1754944e-38, %v1612_v55  ;;  %vm1611_vm5 = vcmp.eq.f32.partialorder %v1610_v6, 8.507059e+37 }
0x15c7   :  { %v1565_v42 = vadd.f32 %v2998_v57, %v1564_v38 }
0x15c9   :  { %v1569_v37 = vsel %vm1568_vm8, %v2998_v57, %v1565_v42 }
0x15ca   :  { %v1574_v53 = vsel %vm1571_vm12, %v1573_v48, %v1569_v37  ;;  %v3002_v45 = vpop.eup %3001 }
0x15cb   :  { %v1602_v44 = vmul.f32 %v3002_v45, %v1600_v41  ;;  %vm1607_vm14 = vweird.f32 %v3002_v45  ;;  %v1580_v54 = vmul.f32 %v1578_v58, %v1574_v53 }
0x15cc   :  { %vm1608_vm6 = vmor %vm1606_vm15, %vm1607_vm14 }
0x15cd   :  { %v1603_v0 = vsub.f32 1.0, %v1602_v44 }
0x15cf   :  { %v1604_v1 = vmul.f32 %v3002_v45, %v1603_v0 }
0x15d1   :  { %v1605_v3 = vadd.f32 %v3002_v45, %v1604_v1 }
0x15d3   :  { %v1609_v8 = vsel %vm1608_vm6, %v3002_v45, %v1605_v3 }
0x15d4   :  { %v1614_v33 = vsel %vm1611_vm5, %v1613_v25, %v1609_v8 }
0x15d5   :  { %v1620_v11 = vmul.f32 %v1618_v63, %v1614_v33 }
0x1610   :  { %v1583_v52 = vpop.permute.xlu2 %1582 }
0x1611   :  { %v1585_v60 = vmul.f32 %v1583_v52, %v1574_v53 }
0x1613   :  { %1587 = vrot.lane.b32.xlu1 %v1585_v60, %s3187_s17 }
0x1629   :  { %v1623_v26 = vpop.permute.xlu1 %1622 }
0x162a   :  { %v1625_v31 = vmul.f32 %v1623_v26, %v1614_v33 }
0x162c   :  { %1627 = vrot.lane.b32.xlu0 %v1625_v31, %s3187_s17 }
0x1685   :  { %v1588_v16 = vpop.permute.xlu1 %1587 }
0x1686   :  { %v3714_v32 = vadd.f32 %v1588_v16, %v1580_v54 }
0x1688   :  { %3003 = vtanh.f32 %v3714_v32 }
0x168e   :  { %v3004_v9 = vpop.eup %3003 }
0x168f   :  { %1593 = vrot.lane.b32.xlu0 %v3004_v9, %s3186_s3 }
0x169e   :  { %v1628_v59 = vpop.permute.xlu0 %1627 }
0x169f   :  { %v3719_v49 = vadd.f32 %v1628_v59, %v1620_v11 }
0x16a1   :  { %3005 = vtanh.f32 %v3719_v49 }
0x16a7   :  { %v3006_v12 = vpop.eup %3005 }
0x16a8   :  { %1633 = vrot.lane.b32.xlu2 %v3006_v12, %s3186_s3  ;;  %v1755_v12 = vrot.slane %v3719_v49, 2 }
0x1701   :  { %v1594_v40 = vpop.permute.xlu0 %1593 }
0x1702   :  { %v1634_v13 = vpop.permute.xlu2 %1633  ;;  %v1596_v2 = vmul.f32 %v1594_v40, %v1574_v53 }
0x1703   :  { %v3723_v50 = vmul.f32 %v1634_v13, %v1614_v33 }
0x1704   :  { %1638 = vrot.lane.b32.xlu1 %v1596_v2, %s3187_s17 }
0x1705   :  { %v1647_v14 = vrot.slane %v3723_v50, 2 }
0x1707   :  { %1648 = vrot.lane.b32.xlu2 %v1647_v14, %s3186_s3 }
0x1761   :  { %v1649_v5 = vpop.permute.xlu2 %1648 }
0x1776   :  { %v1639_v15 = vpop.permute.xlu1 %1638 }
0x1777   :  { %1641 = vst.msk [vmem:[#allocation3] sm:$0xc] %vm3965_vm4, %v1639_v15  ;;  %v1651_v18 = vsel %vm306_vm10, %v1639_v15, %v1649_v5  ;;  %v1715_v5 = vrot.slane %v3714_v32, 6 }
0x1778   :  { %v1652_v19 = vpack.c.bf16 %v1651_v18, %v1651_v18 }
0x177a   :  { %v1654_v20 = vrot.slane %v1652_v19, 1 }
0x177c   :  { %2745 = vmatmul.msk.bf16.vlgmr.msra.gmra.mxu0 %vm179_vm11, %v1654_v20  ;;  %2746 = vmatmul.msk.bf16.vlgmr.msra.gmra.mxu1 %vm179_vm11, %v1654_v20 }
0x177d   :  { %2215 = vmatpush.bf16.msra.mxu1 %v3615_v43  ;;  %2202 = vmatpush.bf16.msra.mxu0 %v3619_v30 }
0x1781   :  { %2216 = vmatpush.bf16.msra.mxu1 %v3621_v56  ;;  %2203 = vmatpush.bf16.msra.mxu0 %v3624_v61 }
0x1785   :  { %2217 = vmatpush.bf16.msra.mxu1 %v3628_v62  ;;  %2204 = vmatpush.bf16.msra.mxu0 %v3632_v7 }
0x1789   :  { %2218 = vmatpush.bf16.msra.mxu1 %v3636_v51  ;;  %2205 = vmatpush.bf16.msra.mxu0 %v3640_v17 }
0x17f9   :  { %v1667_v21 = vpop.f32.mrf.mxu0  ;;  %v1680_v22 = vpop.f32.mrf.mxu1 }
0x17fa   :  { %v1686_v23 = vrot.slane %v1667_v21, 4  ;;  %v1691_v4 = vrot.slane %v1680_v22, 6 }
0x17fc   :  { %v1688_v28 = vadd.f32 %v1686_v23, %v1684_v24  ;;  %v1693_v29 = vadd.f32 %v1691_v4, %v1689_v27 }
0x17fe   :  { %3007 = vtanh.f32 %v1688_v28  ;;  %v2747_v38 = vmul.f32 -1.442695, %v1688_v28  ;;  %v2748_v39 = vmul.f32 -1.442695, %v1693_v29 }
0x17ff   :  { %3009 = vtanh.f32 %v1693_v29 }
0x1800   :  { %3011 = vpow2.f32 %v2747_v38 }
0x1801   :  { %v1669_v57 = vpop.f32.mrf.mxu0  ;;  %v1682_v34 = vpop.f32.mrf.mxu1  ;;  %3013 = vpow2.f32 %v2748_v39 }
0x1804   :  { %v3008_v35 = vpop.eup %3007 }
0x1805   :  { %v3010_v36 = vpop.eup %3009  ;;  %1719 = vrot.lane.b32.xlu1 %v3008_v35, %s3186_s3  ;;  %v1826_v35 = vld [vmem:[#allocation4 + $0x8] sm:$0x3] }
0x1806   :  { %1759 = vrot.lane.b32.xlu0 %v3010_v36, %s3186_s3  ;;  %v3012_v41 = vpop.eup %3011 }
0x1807   :  { %v3014_v42 = vpop.eup %3013  ;;  %v1697_v46 = vadd.f32 1.0, %v3012_v41 }
0x1808   :  { %v1737_v47 = vadd.f32 1.0, %v3014_v42 }
0x1809   :  { %3015 = vrcp.f32 %v1697_v46  ;;  %v1709_v55 = vand.u32 2147483648, %v1697_v46  ;;  %vm1703_vm12 = vweird.f32 %v1697_v46  ;;  %v1707_v8 = vand.u32 2147483647, %v1697_v46 }
0x180a   :  { %3017 = vrcp.f32 %v1737_v47  ;;  %v1749_v6 = vand.u32 2147483648, %v1737_v47  ;;  %vm1743_vm14 = vweird.f32 %v1737_v47  ;;  %v1747_v25 = vand.u32 2147483647, %v1737_v47 }
0x180b   :  { %v1710_v31 = vor.u32 1.1754944e-38, %v1709_v55  ;;  %vm1708_vm5 = vcmp.eq.f32.partialorder %v1707_v8, 8.507059e+37 }
0x180c   :  { %v1750_v58 = vor.u32 1.1754944e-38, %v1749_v6  ;;  %vm1748_vm4 = vcmp.eq.f32.partialorder %v1747_v25, 8.507059e+37 }
0x180f   :  { %v3016_v37 = vpop.eup %3015 }
0x1810   :  { %v3018_v48 = vpop.eup %3017  ;;  %v1699_v52 = vmul.f32 %v3016_v37, %v1697_v46  ;;  %vm1704_vm7 = vweird.f32 %v3016_v37 }
0x1811   :  { %v1739_v53 = vmul.f32 %v3018_v48, %v1737_v47  ;;  %vm1744_vm8 = vweird.f32 %v3018_v48  ;;  %vm1705_vm15 = vmor %vm1703_vm12, %vm1704_vm7 }
0x1812   :  { %v1700_v60 = vsub.f32 1.0, %v1699_v52  ;;  %vm1745_vm6 = vmor %vm1743_vm14, %vm1744_vm8 }
0x1813   :  { %v1740_v45 = vsub.f32 1.0, %v1739_v53 }
0x1814   :  { %v1701_v44 = vmul.f32 %v3016_v37, %v1700_v60 }
0x1815   :  { %v1741_v0 = vmul.f32 %v3018_v48, %v1740_v45 }
0x1816   :  { %v1702_v1 = vadd.f32 %v3016_v37, %v1701_v44 }
0x1817   :  { %v1742_v3 = vadd.f32 %v3018_v48, %v1741_v0 }
0x1818   :  { %v1706_v26 = vsel %vm1705_vm15, %v3016_v37, %v1702_v1 }
0x1819   :  { %v1746_v33 = vsel %vm1745_vm6, %v3018_v48, %v1742_v3  ;;  %v1711_v16 = vsel %vm1708_vm5, %v1710_v31, %v1706_v26 }
0x181a   :  { %v1751_v63 = vsel %vm1748_vm4, %v1750_v58, %v1746_v33  ;;  %v1717_v15 = vmul.f32 %v1715_v5, %v1711_v16 }
0x181b   :  { %v1757_v40 = vmul.f32 %v1755_v12, %v1751_v63 }
0x1877   :  { %v1720_v54 = vpop.permute.xlu1 %1719 }
0x1878   :  { %v1760_v9 = vpop.permute.xlu0 %1759  ;;  %v1722_v11 = vmul.f32 %v1720_v54, %v1711_v16 }
0x1879   :  { %v1762_v59 = vmul.f32 %v1760_v9, %v1751_v63 }
0x187a   :  { %1724 = vrot.lane.b32.xlu0 %v1722_v11, %s3187_s17 }
0x187b   :  { %1764 = vrot.lane.b32.xlu2 %v1762_v59, %s3187_s17 }
0x18d5   :  { %v1765_v13 = vpop.permute.xlu2 %1764 }
0x18d6   :  { %v3745_v2 = vadd.f32 %v1765_v13, %v1757_v40 }
0x18d8   :  { %3019 = vtanh.f32 %v3745_v2  ;;  %v1889_v59 = vrot.slane %v3745_v2, 2 }
0x18de   :  { %v3020_v14 = vpop.eup %3019 }
0x18df   :  { %1770 = vrot.lane.b32.xlu1 %v3020_v14, %s3186_s3 }
0x18ec   :  { %v1725_v18 = vpop.permute.xlu0 %1724 }
0x18ed   :  { %v3750_v19 = vadd.f32 %v1725_v18, %v1717_v15 }
0x18ef   :  { %3021 = vtanh.f32 %v3750_v19  ;;  %v1849_v12 = vrot.slane %v3750_v19, 6 }
0x18f5   :  { %v3022_v20 = vpop.eup %3021 }
0x18f6   :  { %1730 = vrot.lane.b32.xlu2 %v3022_v20, %s3186_s3 }
0x1950   :  { %v1731_v49 = vpop.permute.xlu2 %1730 }
0x1951   :  { %v1771_v21 = vpop.permute.xlu1 %1770  ;;  %v1733_v22 = vmul.f32 %v1731_v49, %v1711_v16 }
0x1952   :  { %v3754_v23 = vmul.f32 %v1771_v21, %v1751_v63 }
0x1953   :  { %1775 = vrot.lane.b32.xlu0 %v1733_v22, %s3187_s17 }
0x1954   :  { %v1784_v4 = vrot.slane %v3754_v23, 6 }
0x1956   :  { %1785 = vrot.lane.b32.xlu1 %v1784_v4, %s3186_s3 }
0x19c5   :  { %v1776_v32 = vpop.permute.xlu0 %1775 }
0x19c6   :  { %1778 = vst.msk [vmem:[#allocation3] sm:$0x30] %vm571_vm0, %v1776_v32 }
0x19c8   :  { %v1786_v24 = vpop.permute.xlu1 %1785 }
0x19c9   :  { %v1788_v27 = vsel %vm306_vm10, %v1776_v32, %v1786_v24 }
0x19ca   :  { %v1789_v28 = vpack.c.bf16 %v1788_v27, %v1788_v27 }
0x19cc   :  { %v1791_v29 = vrot.slane %v1789_v28, 2 }
0x19ce   :  { %2749 = vmatmul.msk.bf16.vlgmr.msra.gmra.mxu2 %vm179_vm11, %v1791_v29  ;;  %2750 = vmatmul.msk.bf16.vlgmr.msra.gmra.mxu3 %vm179_vm11, %v1791_v29 }
0x19cf   :  { %2352 = vmatpush.bf16.msra.mxu3 %v3615_v43  ;;  %2339 = vmatpush.bf16.msra.mxu2 %v3619_v30  ;;  %v1821_v43 = vld [vmem:[#allocation4 + $0x10] sm:$0xc0] }
0x19d3   :  { %2353 = vmatpush.bf16.msra.mxu3 %v3621_v56  ;;  %2340 = vmatpush.bf16.msra.mxu2 %v3624_v61 }
0x19d7   :  { %2354 = vmatpush.bf16.msra.mxu3 %v3628_v62  ;;  %2341 = vmatpush.bf16.msra.mxu2 %v3632_v7 }
0x19db   :  { %2355 = vmatpush.bf16.msra.mxu3 %v3636_v51  ;;  %2342 = vmatpush.bf16.msra.mxu2 %v3640_v17 }
0x1a51   :  { %v1804_v57 = vpop.f32.mrf.mxu2  ;;  %v1817_v34 = vpop.f32.mrf.mxu3 }
0x1a52   :  { %v1823_v36 = vrot.slane %v1804_v57, 2  ;;  %v1827_v38 = vadd.f32 %v1826_v35, %v1817_v34  ;;  %v1955_v34 = vld [vmem:[#allocation4 + $0x18] sm:$0x3] }
0x1a54   :  { %v1825_v39 = vadd.f32 %v1823_v36, %v1821_v43  ;;  %3023 = vtanh.f32 %v1827_v38  ;;  %v2752_v7 = vmul.f32 -1.442695, %v1827_v38  ;;  %v1957_v43 = vld [vmem:[#allocation4] sm:$0xc0] }
0x1a56   :  { %3025 = vtanh.f32 %v1825_v39  ;;  %v2751_v42 = vmul.f32 -1.442695, %v1825_v39 }
0x1a57   :  { %3027 = vpow2.f32 %v2752_v7 }
0x1a59   :  { %v1806_v30 = vpop.f32.mrf.mxu2  ;;  %v1819_v56 = vpop.f32.mrf.mxu3 }
0x1a5a   :  { %v3024_v61 = vpop.eup %3023 }
0x1a5b   :  { %1893 = vrot.lane.b32.xlu2 %v3024_v61, %s3186_s3 }
0x1a5c   :  { %v3026_v62 = vpop.eup %3025 }
0x1a5d   :  { %1853 = vrot.lane.b32.xlu0 %v3026_v62, %s3186_s3  ;;  %v3028_v51 = vpop.eup %3027 }
0x1a5e   :  { %v1871_v17 = vadd.f32 1.0, %v3028_v51 }
0x1a60   :  { %3029 = vrcp.f32 %v1871_v17  ;;  %v1883_v60 = vand.u32 2147483648, %v1871_v17  ;;  %vm1877_vm7 = vweird.f32 %v1871_v17  ;;  %v1881_v45 = vand.u32 2147483647, %v1871_v17 }
0x1a61   :  { %3031 = vpow2.f32 %v2751_v42 }
0x1a62   :  { %v1884_v0 = vor.u32 1.1754944e-38, %v1883_v60  ;;  %vm1882_vm12 = vcmp.eq.f32.partialorder %v1881_v45, 8.507059e+37 }
0x1a66   :  { %v3030_v41 = vpop.eup %3029 }
0x1a67   :  { %v1873_v46 = vmul.f32 %v3030_v41, %v1871_v17  ;;  %v3032_v48 = vpop.eup %3031  ;;  %vm1878_vm4 = vweird.f32 %v3030_v41 }
0x1a68   :  { %v1831_v53 = vadd.f32 1.0, %v3032_v48  ;;  %vm1879_vm8 = vmor %vm1877_vm7, %vm1878_vm4 }
0x1a69   :  { %v1874_v47 = vsub.f32 1.0, %v1873_v46 }
0x1a6a   :  { %3033 = vrcp.f32 %v1831_v53  ;;  %v1843_v31 = vand.u32 2147483648, %v1831_v53  ;;  %vm1837_vm15 = vweird.f32 %v1831_v53  ;;  %v1841_v58 = vand.u32 2147483647, %v1831_v53 }
0x1a6b   :  { %v1875_v37 = vmul.f32 %v3030_v41, %v1874_v47 }
0x1a6c   :  { %v1844_v16 = vor.u32 1.1754944e-38, %v1843_v31  ;;  %vm1842_vm5 = vcmp.eq.f32.partialorder %v1841_v58, 8.507059e+37 }
0x1a6d   :  { %v1876_v52 = vadd.f32 %v3030_v41, %v1875_v37 }
0x1a6f   :  { %v1880_v44 = vsel %vm1879_vm8, %v3030_v41, %v1876_v52 }
0x1a70   :  { %v1885_v3 = vsel %vm1882_vm12, %v1884_v0, %v1880_v44  ;;  %v3034_v6 = vpop.eup %3033 }
0x1a71   :  { %v1833_v8 = vmul.f32 %v3034_v6, %v1831_v53  ;;  %vm1838_vm14 = vweird.f32 %v3034_v6  ;;  %v1891_v40 = vmul.f32 %v1889_v59, %v1885_v3 }
0x1a72   :  { %vm1839_vm6 = vmor %vm1837_vm15, %vm1838_vm14 }
0x1a73   :  { %v1834_v25 = vsub.f32 1.0, %v1833_v8 }
0x1a75   :  { %v1835_v26 = vmul.f32 %v3034_v6, %v1834_v25 }
0x1a77   :  { %v1836_v33 = vadd.f32 %v3034_v6, %v1835_v26 }
0x1a79   :  { %v1840_v54 = vsel %vm1839_vm6, %v3034_v6, %v1836_v33 }
0x1a7a   :  { %v1845_v63 = vsel %vm1842_vm5, %v1844_v16, %v1840_v54 }
0x1a7b   :  { %v1851_v5 = vmul.f32 %v1849_v12, %v1845_v63 }
0x1ab5   :  { %v1894_v1 = vpop.permute.xlu2 %1893 }
0x1ab6   :  { %v1896_v55 = vmul.f32 %v1894_v1, %v1885_v3 }
0x1ab8   :  { %1898 = vrot.lane.b32.xlu1 %v1896_v55, %s3187_s17 }
0x1acf   :  { %v1854_v9 = vpop.permute.xlu0 %1853 }
0x1ad0   :  { %v1856_v11 = vmul.f32 %v1854_v9, %v1845_v63 }
0x1ad2   :  { %1858 = vrot.lane.b32.xlu2 %v1856_v11, %s3187_s17 }
0x1b2a   :  { %v1899_v13 = vpop.permute.xlu1 %1898 }
0x1b2b   :  { %v3777_v14 = vadd.f32 %v1899_v13, %v1891_v40 }
0x1b2c   :  { %v1859_v15 = vpop.permute.xlu2 %1858 }
0x1b2d   :  { %3035 = vtanh.f32 %v3777_v14  ;;  %v3780_v18 = vadd.f32 %v1859_v15, %v1851_v5  ;;  %v2023_v15 = vrot.slane %v3777_v14, 2 }
0x1b2f   :  { %3037 = vtanh.f32 %v3780_v18  ;;  %v1983_v59 = vrot.slane %v3780_v18, 6 }
0x1b33   :  { %v3036_v20 = vpop.eup %3035 }
0x1b34   :  { %1904 = vrot.lane.b32.xlu0 %v3036_v20, %s3186_s3 }
0x1b35   :  { %v3038_v49 = vpop.eup %3037 }
0x1b36   :  { %1864 = vrot.lane.b32.xlu1 %v3038_v49, %s3186_s3 }
0x1ba6   :  { %v1905_v2 = vpop.permute.xlu0 %1904 }
0x1ba7   :  { %v3785_v19 = vmul.f32 %v1905_v2, %v1885_v3 }
0x1ba8   :  { %v1865_v21 = vpop.permute.xlu1 %1864 }
0x1ba9   :  { %v1918_v22 = vrot.slane %v3785_v19, 2  ;;  %v1867_v4 = vmul.f32 %v1865_v21, %v1845_v63 }
0x1bab   :  { %1919 = vrot.lane.b32.xlu0 %v1918_v22, %s3186_s3  ;;  %1909 = vrot.lane.b32.xlu2 %v1867_v4, %s3187_s17 }
0x1c05   :  { %v1910_v32 = vpop.permute.xlu2 %1909 }
0x1c06   :  { %1912 = vst.msk [vmem:[#allocation3] sm:$0xc0] %vm707_vm13, %v1910_v32 }
0x1c1d   :  { %v1920_v24 = vpop.permute.xlu0 %1919 }
0x1c1e   :  { %v1922_v27 = vsel %vm306_vm10, %v1910_v32, %v1920_v24 }
0x1c1f   :  { %v1923_v28 = vpack.c.bf16 %v1922_v27, %v1922_v27 }
0x1c21   :  { %v1925_v29 = vrot.slane %v1923_v28, 3 }
0x1c23   :  { %2753 = vmatmul.msk.bf16.vlgmr.msrb.gmra.mxu0 %vm179_vm11, %v1925_v29  ;;  %2754 = vmatmul.msk.bf16.vlgmr.msrb.gmra.mxu1 %vm179_vm11, %v1925_v29 }
0x1ca0   :  { %v1938_v57 = vpop.f32.mrf.mxu0  ;;  %v1951_v35 = vpop.f32.mrf.mxu1 }
0x1ca1   :  { %v1956_v36 = vadd.f32 %v1955_v34, %v1938_v57  ;;  %v1959_v38 = vrot.slane %v1951_v35, 2 }
0x1ca3   :  { %3039 = vtanh.f32 %v1956_v36  ;;  %v1961_v39 = vadd.f32 %v1959_v38, %v1957_v43  ;;  %v2755_v7 = vmul.f32 -1.442695, %v1956_v36  ;;  %v2087_v38 = vld [vmem:[#allocation4 + $0x18] sm:$0xc]  ;;  %v2092_v43 = vld [vmem:[#allocation4] sm:$0x30] }
0x1ca5   :  { %3041 = vtanh.f32 %v1961_v39  ;;  %v2756_v46 = vmul.f32 -1.442695, %v1961_v39 }
0x1ca6   :  { %3043 = vpow2.f32 %v2755_v7 }
0x1ca8   :  { %v1940_v30 = vpop.f32.mrf.mxu0  ;;  %v1953_v56 = vpop.f32.mrf.mxu1 }
0x1ca9   :  { %v3040_v61 = vpop.eup %3039 }
0x1caa   :  { %1987 = vrot.lane.b32.xlu2 %v3040_v61, %s3186_s3 }
0x1cab   :  { %v3042_v62 = vpop.eup %3041 }
0x1cac   :  { %2027 = vrot.lane.b32.xlu1 %v3042_v62, %s3186_s3  ;;  %v3044_v51 = vpop.eup %3043 }
0x1cad   :  { %v1965_v17 = vadd.f32 1.0, %v3044_v51 }
0x1caf   :  { %3045 = vrcp.f32 %v1965_v17  ;;  %v1977_v53 = vand.u32 2147483648, %v1965_v17  ;;  %vm1971_vm7 = vweird.f32 %v1965_v17  ;;  %v1975_v45 = vand.u32 2147483647, %v1965_v17 }
0x1cb0   :  { %3047 = vpow2.f32 %v2756_v46 }
0x1cb1   :  { %v1978_v0 = vor.u32 1.1754944e-38, %v1977_v53  ;;  %vm1976_vm12 = vcmp.eq.f32.partialorder %v1975_v45, 8.507059e+37 }
0x1cb5   :  { %v3046_v41 = vpop.eup %3045 }
0x1cb6   :  { %v1967_v42 = vmul.f32 %v3046_v41, %v1965_v17  ;;  %v3048_v48 = vpop.eup %3047  ;;  %vm1972_vm4 = vweird.f32 %v3046_v41 }
0x1cb7   :  { %v2005_v60 = vadd.f32 1.0, %v3048_v48  ;;  %vm1973_vm8 = vmor %vm1971_vm7, %vm1972_vm4 }
0x1cb8   :  { %v1968_v47 = vsub.f32 1.0, %v1967_v42 }
0x1cb9   :  { %3049 = vrcp.f32 %v2005_v60  ;;  %v2017_v31 = vand.u32 2147483648, %v2005_v60  ;;  %vm2011_vm15 = vweird.f32 %v2005_v60  ;;  %v2015_v58 = vand.u32 2147483647, %v2005_v60 }
0x1cba   :  { %v1969_v37 = vmul.f32 %v3046_v41, %v1968_v47 }
0x1cbb   :  { %v2018_v16 = vor.u32 1.1754944e-38, %v2017_v31  ;;  %vm2016_vm5 = vcmp.eq.f32.partialorder %v2015_v58, 8.507059e+37 }
0x1cbc   :  { %v1970_v52 = vadd.f32 %v3046_v41, %v1969_v37 }
0x1cbe   :  { %v1974_v44 = vsel %vm1973_vm8, %v3046_v41, %v1970_v52 }
0x1cbf   :  { %v1979_v3 = vsel %vm1976_vm12, %v1978_v0, %v1974_v44  ;;  %v3050_v6 = vpop.eup %3049 }
0x1cc0   :  { %v2007_v8 = vmul.f32 %v3050_v6, %v2005_v60  ;;  %vm2012_vm14 = vweird.f32 %v3050_v6  ;;  %v1985_v12 = vmul.f32 %v1983_v59, %v1979_v3 }
0x1cc1   :  { %vm2013_vm6 = vmor %vm2011_vm15, %vm2012_vm14 }
0x1cc2   :  { %v2008_v25 = vsub.f32 1.0, %v2007_v8 }
0x1cc4   :  { %v2009_v26 = vmul.f32 %v3050_v6, %v2008_v25 }
0x1cc6   :  { %v2010_v33 = vadd.f32 %v3050_v6, %v2009_v26 }
0x1cc8   :  { %v2014_v54 = vsel %vm2013_vm6, %v3050_v6, %v2010_v33 }
0x1cc9   :  { %v2019_v63 = vsel %vm2016_vm5, %v2018_v16, %v2014_v54 }
0x1cca   :  { %v2025_v20 = vmul.f32 %v2023_v15, %v2019_v63 }
0x1d04   :  { %v1988_v1 = vpop.permute.xlu2 %1987 }
0x1d05   :  { %v1990_v55 = vmul.f32 %v1988_v1, %v1979_v3 }
0x1d07   :  { %1992 = vrot.lane.b32.xlu1 %v1990_v55, %s3187_s17 }
0x1d1e   :  { %v2028_v9 = vpop.permute.xlu1 %2027 }
0x1d1f   :  { %v2030_v11 = vmul.f32 %v2028_v9, %v2019_v63 }
0x1d21   :  { %2032 = vrot.lane.b32.xlu0 %v2030_v11, %s3187_s17 }
0x1d79   :  { %v1993_v40 = vpop.permute.xlu1 %1992 }
0x1d7a   :  { %v3799_v13 = vadd.f32 %v1993_v40, %v1985_v12 }
0x1d7c   :  { %3051 = vtanh.f32 %v3799_v13 }
0x1d82   :  { %v3052_v5 = vpop.eup %3051 }
0x1d83   :  { %1998 = vrot.lane.b32.xlu0 %v3052_v5, %s3186_s3 }
0x1d93   :  { %v2033_v49 = vpop.permute.xlu0 %2032 }
0x1d94   :  { %v3804_v2 = vadd.f32 %v2033_v49, %v2025_v20  ;;  %v2118_v49 = vrot.slane %v3799_v13, 6 }
0x1d96   :  { %3053 = vtanh.f32 %v3804_v2  ;;  %v2158_v12 = vrot.slane %v3804_v2, 2 }
0x1d9c   :  { %v3054_v21 = vpop.eup %3053 }
0x1d9d   :  { %2038 = vrot.lane.b32.xlu2 %v3054_v21, %s3186_s3 }
0x1df5   :  { %v1999_v18 = vpop.permute.xlu0 %1998 }
0x1df6   :  { %v2001_v22 = vmul.f32 %v1999_v18, %v1979_v3 }
0x1df7   :  { %v2039_v4 = vpop.permute.xlu2 %2038 }
0x1df8   :  { %2043 = vrot.lane.b32.xlu1 %v2001_v22, %s3187_s17  ;;  %v3809_v32 = vmul.f32 %v2039_v4, %v2019_v63 }
0x1dfa   :  { %v2052_v24 = vrot.slane %v3809_v32, 6 }
0x1dfc   :  { %2053 = vrot.lane.b32.xlu2 %v2052_v24, %s3186_s3 }
0x1e56   :  { %v2054_v14 = vpop.permute.xlu2 %2053 }
0x1e6a   :  { %v3813_v27 = vpop.permute.xlu1 %2043 }
0x1e6b   :  { %v2056_v28 = vsel %vm306_vm10, %v3813_v27, %v2054_v14 }
0x1e6c   :  { %v2057_v29 = vpack.c.bf16 %v2056_v28, %v2056_v28 }
0x1e6e   :  { %2757 = vmatmul.msk.bf16.vlgmr.msrb.gmra.mxu2 %vm179_vm11, %v2057_v29  ;;  %2758 = vmatmul.msk.bf16.vlgmr.msrb.gmra.mxu3 %vm179_vm11, %v2057_v29 }
0x1ef1   :  { %v2070_v57 = vpop.f32.mrf.mxu2  ;;  %v2083_v34 = vpop.f32.mrf.mxu3 }
0x1ef2   :  { %v2089_v35 = vrot.slane %v2070_v57, 6  ;;  %v2094_v36 = vrot.slane %v2083_v34, 4 }
0x1ef4   :  { %v2091_v39 = vadd.f32 %v2089_v35, %v2087_v38  ;;  %v2096_v30 = vadd.f32 %v2094_v36, %v2092_v43 }
0x1ef6   :  { %3055 = vtanh.f32 %v2091_v39  ;;  %v2759_v51 = vmul.f32 -1.442695, %v2091_v39  ;;  %v2760_v17 = vmul.f32 -1.442695, %v2096_v30 }
0x1ef7   :  { %3057 = vtanh.f32 %v2096_v30 }
0x1ef8   :  { %3059 = vpow2.f32 %v2759_v51 }
0x1ef9   :  { %v2072_v56 = vpop.f32.mrf.mxu2  ;;  %v2085_v61 = vpop.f32.mrf.mxu3  ;;  %3061 = vpow2.f32 %v2760_v17 }
0x1efa   :  { %v2224_v56 = vld [vmem:[#allocation4 + $0x18] sm:$0x30]  ;;  %v2229_v61 = vld [vmem:[#allocation4] sm:$0xc] }
0x1efc   :  { %v3056_v62 = vpop.eup %3055 }
0x1efd   :  { %v3058_v7 = vpop.eup %3057  ;;  %2122 = vrot.lane.b32.xlu1 %v3056_v62, %s3186_s3 }
0x1efe   :  { %2162 = vrot.lane.b32.xlu0 %v3058_v7, %s3186_s3  ;;  %v3060_v41 = vpop.eup %3059 }
0x1eff   :  { %v3062_v42 = vpop.eup %3061  ;;  %v2100_v46 = vadd.f32 1.0, %v3060_v41 }
0x1f00   :  { %v2140_v47 = vadd.f32 1.0, %v3062_v42 }
0x1f01   :  { %3063 = vrcp.f32 %v2100_v46  ;;  %v2112_v55 = vand.u32 2147483648, %v2100_v46  ;;  %vm2106_vm8 = vweird.f32 %v2100_v46  ;;  %v2110_v8 = vand.u32 2147483647, %v2100_v46 }
0x1f02   :  { %3065 = vrcp.f32 %v2140_v47  ;;  %v2152_v6 = vand.u32 2147483648, %v2140_v47  ;;  %vm2146_vm12 = vweird.f32 %v2140_v47  ;;  %v2150_v25 = vand.u32 2147483647, %v2140_v47 }
0x1f03   :  { %v2113_v31 = vor.u32 1.1754944e-38, %v2112_v55  ;;  %vm2111_vm6 = vcmp.eq.f32.partialorder %v2110_v8, 8.507059e+37 }
0x1f04   :  { %v2153_v58 = vor.u32 1.1754944e-38, %v2152_v6  ;;  %vm2151_vm5 = vcmp.eq.f32.partialorder %v2150_v25, 8.507059e+37 }
0x1f07   :  { %v3064_v37 = vpop.eup %3063 }
0x1f08   :  { %v3066_v48 = vpop.eup %3065  ;;  %v2102_v52 = vmul.f32 %v3064_v37, %v2100_v46  ;;  %vm2107_vm4 = vweird.f32 %v3064_v37 }
0x1f09   :  { %v2142_v53 = vmul.f32 %v3066_v48, %v2140_v47  ;;  %vm2147_vm7 = vweird.f32 %v3066_v48  ;;  %vm2108_vm14 = vmor %vm2106_vm8, %vm2107_vm4 }
0x1f0a   :  { %v2103_v60 = vsub.f32 1.0, %v2102_v52  ;;  %vm2148_vm15 = vmor %vm2146_vm12, %vm2147_vm7 }
0x1f0b   :  { %v2143_v45 = vsub.f32 1.0, %v2142_v53 }
0x1f0c   :  { %v2104_v44 = vmul.f32 %v3064_v37, %v2103_v60 }
0x1f0d   :  { %v2144_v0 = vmul.f32 %v3066_v48, %v2143_v45 }
0x1f0e   :  { %v2105_v1 = vadd.f32 %v3064_v37, %v2104_v44 }
0x1f0f   :  { %v2145_v3 = vadd.f32 %v3066_v48, %v2144_v0 }
0x1f10   :  { %v2109_v26 = vsel %vm2108_vm14, %v3064_v37, %v2105_v1 }
0x1f11   :  { %v2149_v33 = vsel %vm2148_vm15, %v3066_v48, %v2145_v3  ;;  %v2114_v16 = vsel %vm2111_vm6, %v2113_v31, %v2109_v26 }
0x1f12   :  { %v2154_v63 = vsel %vm2151_vm5, %v2153_v58, %v2149_v33  ;;  %v2120_v21 = vmul.f32 %v2118_v49, %v2114_v16 }
0x1f13   :  { %v2160_v40 = vmul.f32 %v2158_v12, %v2154_v63 }
0x1f6f   :  { %v2123_v54 = vpop.permute.xlu1 %2122 }
0x1f70   :  { %v2163_v9 = vpop.permute.xlu0 %2162  ;;  %v2125_v11 = vmul.f32 %v2123_v54, %v2114_v16 }
0x1f71   :  { %v2165_v59 = vmul.f32 %v2163_v9, %v2154_v63 }
0x1f72   :  { %2127 = vrot.lane.b32.xlu0 %v2125_v11, %s3187_s17 }
0x1f73   :  { %2167 = vrot.lane.b32.xlu2 %v2165_v59, %s3187_s17 }
0x1fcd   :  { %v2168_v5 = vpop.permute.xlu2 %2167 }
0x1fce   :  { %v3824_v15 = vadd.f32 %v2168_v5, %v2160_v40 }
0x1fd0   :  { %3067 = vtanh.f32 %v3824_v15 }
0x1fd6   :  { %v3068_v20 = vpop.eup %3067 }
0x1fd7   :  { %2173 = vrot.lane.b32.xlu1 %v3068_v20, %s3186_s3 }
0x1fe4   :  { %v2128_v18 = vpop.permute.xlu0 %2127 }
0x1fe5   :  { %v3829_v22 = vadd.f32 %v2128_v18, %v2120_v21  ;;  %v2295_v21 = vrot.slane %v3824_v15, 2 }
0x1fe7   :  { %3069 = vtanh.f32 %v3829_v22  ;;  %v2255_v49 = vrot.slane %v3829_v22, 6 }
0x1fed   :  { %v3070_v4 = vpop.eup %3069 }
0x1fee   :  { %2133 = vrot.lane.b32.xlu2 %v3070_v4, %s3186_s3 }
0x2048   :  { %v2134_v2 = vpop.permute.xlu2 %2133 }
0x2049   :  { %v2174_v24 = vpop.permute.xlu1 %2173  ;;  %v2136_v14 = vmul.f32 %v2134_v2, %v2114_v16 }
0x204a   :  { %v3833_v28 = vmul.f32 %v2174_v24, %v2154_v63 }
0x204b   :  { %2178 = vrot.lane.b32.xlu0 %v2136_v14, %s3187_s17 }
0x204c   :  { %v2187_v29 = vrot.slane %v3833_v28, 2 }
0x204e   :  { %2188 = vrot.lane.b32.xlu1 %v2187_v29, %s3186_s3 }
0x20bd   :  { %v3838_v13 = vpop.permute.xlu0 %2178 }
0x20c0   :  { %v2189_v57 = vpop.permute.xlu1 %2188 }
0x20c1   :  { %v2191_v34 = vsel %vm306_vm10, %v3838_v13, %v2189_v57 }
0x20c2   :  { %v2192_v35 = vpack.c.bf16 %v2191_v34, %v2191_v34 }
0x20c4   :  { %v2194_v36 = vrot.slane %v2192_v35, 1 }
0x20c6   :  { %2761 = vmatmul.msk.bf16.vlgmr.msra.gmra.mxu0 %vm179_vm11, %v2194_v36  ;;  %2762 = vmatmul.msk.bf16.vlgmr.msra.gmra.mxu1 %vm179_vm11, %v2194_v36 }
0x2143   :  { %v2207_v38 = vpop.f32.mrf.mxu0  ;;  %v2220_v43 = vpop.f32.mrf.mxu1 }
0x2144   :  { %v2226_v39 = vrot.slane %v2207_v38, 4  ;;  %v2231_v30 = vrot.slane %v2220_v43, 6 }
0x2146   :  { %v2228_v62 = vadd.f32 %v2226_v39, %v2224_v56  ;;  %v2233_v7 = vadd.f32 %v2231_v30, %v2229_v61 }
0x2148   :  { %3071 = vtanh.f32 %v2228_v62  ;;  %v2764_v46 = vmul.f32 -1.442695, %v2233_v7  ;;  %v2763_v52 = vmul.f32 -1.442695, %v2228_v62 }
0x2149   :  { %3073 = vtanh.f32 %v2233_v7 }
0x214a   :  { %3075 = vpow2.f32 %v2764_v46 }
0x214b   :  { %v2209_v51 = vpop.f32.mrf.mxu0  ;;  %v2222_v17 = vpop.f32.mrf.mxu1 }
0x214c   :  { %v2366_v51 = vld [vmem:[#allocation4] sm:$0x3] }
0x214e   :  { %v3072_v41 = vpop.eup %3071 }
0x214f   :  { %v3074_v42 = vpop.eup %3073  ;;  %2259 = vrot.lane.b32.xlu0 %v3072_v41, %s3186_s3 }
0x2150   :  { %2299 = vrot.lane.b32.xlu2 %v3074_v42, %s3186_s3  ;;  %v3076_v47 = vpop.eup %3075  ;;  %v2361_v42 = vld [vmem:[#allocation4 + $0x18] sm:$0xc0] }
0x2151   :  { %v2277_v37 = vadd.f32 1.0, %v3076_v47 }
0x2153   :  { %3077 = vrcp.f32 %v2277_v37  ;;  %v2289_v3 = vand.u32 2147483648, %v2277_v37  ;;  %vm2283_vm7 = vweird.f32 %v2277_v37  ;;  %v2287_v55 = vand.u32 2147483647, %v2277_v37 }
0x2154   :  { %3079 = vpow2.f32 %v2763_v52 }
0x2155   :  { %v2290_v8 = vor.u32 1.1754944e-38, %v2289_v3  ;;  %vm2288_vm12 = vcmp.eq.f32.partialorder %v2287_v55, 8.507059e+37 }
0x2159   :  { %v3078_v48 = vpop.eup %3077 }
0x215a   :  { %v2279_v53 = vmul.f32 %v3078_v48, %v2277_v37  ;;  %v3080_v45 = vpop.eup %3079  ;;  %vm2284_vm4 = vweird.f32 %v3078_v48 }
0x215b   :  { %v2237_v0 = vadd.f32 1.0, %v3080_v45  ;;  %vm2285_vm8 = vmor %vm2283_vm7, %vm2284_vm4 }
0x215c   :  { %v2280_v60 = vsub.f32 1.0, %v2279_v53 }
0x215d   :  { %3081 = vrcp.f32 %v2237_v0  ;;  %v2249_v63 = vand.u32 2147483648, %v2237_v0  ;;  %vm2243_vm15 = vweird.f32 %v2237_v0  ;;  %v2247_v11 = vand.u32 2147483647, %v2237_v0 }
0x215e   :  { %v2281_v44 = vmul.f32 %v3078_v48, %v2280_v60 }
0x215f   :  { %v2250_v12 = vor.u32 1.1754944e-38, %v2249_v63  ;;  %vm2248_vm5 = vcmp.eq.f32.partialorder %v2247_v11, 8.507059e+37 }
0x2160   :  { %v2282_v1 = vadd.f32 %v3078_v48, %v2281_v44 }
0x2162   :  { %v2286_v6 = vsel %vm2285_vm8, %v3078_v48, %v2282_v1 }
0x2163   :  { %v2291_v26 = vsel %vm2288_vm12, %v2290_v8, %v2286_v6  ;;  %v3082_v33 = vpop.eup %3081 }
0x2164   :  { %v2239_v58 = vmul.f32 %v3082_v33, %v2237_v0  ;;  %vm2244_vm14 = vweird.f32 %v3082_v33  ;;  %v2297_v4 = vmul.f32 %v2295_v21, %v2291_v26 }
0x2165   :  { %vm2245_vm6 = vmor %vm2243_vm15, %vm2244_vm14 }
0x2166   :  { %v2240_v54 = vsub.f32 1.0, %v2239_v58 }
0x2168   :  { %v2241_v16 = vmul.f32 %v3082_v33, %v2240_v54 }
0x216a   :  { %v2242_v9 = vadd.f32 %v3082_v33, %v2241_v16 }
0x216c   :  { %v2246_v59 = vsel %vm2245_vm6, %v3082_v33, %v2242_v9 }
0x216d   :  { %v2251_v5 = vsel %vm2248_vm5, %v2250_v12, %v2246_v59 }
0x216e   :  { %v2257_v18 = vmul.f32 %v2255_v49, %v2251_v5 }
0x21aa   :  { %v2300_v25 = vpop.permute.xlu2 %2299 }
0x21ab   :  { %v2302_v31 = vmul.f32 %v2300_v25, %v2291_v26 }
0x21ad   :  { %2304 = vrot.lane.b32.xlu1 %v2302_v31, %s3187_s17 }
0x21c1   :  { %v2260_v40 = vpop.permute.xlu0 %2259 }
0x21c2   :  { %v2262_v20 = vmul.f32 %v2260_v40, %v2251_v5 }
0x21c4   :  { %2264 = vrot.lane.b32.xlu2 %v2262_v20, %s3187_s17 }
0x221e   :  { %v2265_v2 = vpop.permute.xlu2 %2264 }
0x221f   :  { %v2305_v24 = vpop.permute.xlu1 %2304  ;;  %v3850_v14 = vadd.f32 %v2265_v2, %v2257_v18 }
0x2220   :  { %v3852_v29 = vadd.f32 %v2305_v24, %v2297_v4 }
0x2221   :  { %3083 = vtanh.f32 %v3850_v14 }
0x2222   :  { %3085 = vtanh.f32 %v3852_v29 }
0x2227   :  { %v3084_v57 = vpop.eup %3083 }
0x2228   :  { %v3086_v34 = vpop.eup %3085  ;;  %2270 = vrot.lane.b32.xlu1 %v3084_v57, %s3186_s3 }
0x2229   :  { %2310 = vrot.lane.b32.xlu0 %v3086_v34, %s3186_s3 }
0x229a   :  { %v2271_v22 = vpop.permute.xlu1 %2270 }
0x229b   :  { %v2311_v15 = vpop.permute.xlu0 %2310  ;;  %v2273_v35 = vmul.f32 %v2271_v22, %v2251_v5 }
0x229c   :  { %v3858_v36 = vmul.f32 %v2311_v15, %v2291_v26 }
0x229d   :  { %2315 = vrot.lane.b32.xlu2 %v2273_v35, %s3187_s17 }
0x229e   :  { %v2324_v38 = vrot.slane %v3858_v36, 6 }
0x22a0   :  { %2325 = vrot.lane.b32.xlu0 %v2324_v38, %s3186_s3 }
0x22f7   :  { %v3863_v43 = vpop.permute.xlu2 %2315 }
0x2312   :  { %v2326_v39 = vpop.permute.xlu0 %2325 }
0x2313   :  { %v2328_v30 = vsel %vm306_vm10, %v3863_v43, %v2326_v39 }
0x2314   :  { %v2329_v56 = vpack.c.bf16 %v2328_v30, %v2328_v30 }
0x2316   :  { %v2331_v61 = vrot.slane %v2329_v56, 2 }
0x2318   :  { %2765 = vmatmul.msk.bf16.vlgmr.msra.gmra.mxu2 %vm179_vm11, %v2331_v61  ;;  %2766 = vmatmul.msk.bf16.vlgmr.msra.gmra.mxu3 %vm179_vm11, %v2331_v61 }
0x239b   :  { %v2344_v62 = vpop.f32.mrf.mxu2  ;;  %v2357_v7 = vpop.f32.mrf.mxu3 }
0x239c   :  { %v2363_v17 = vrot.slane %v2344_v62, 2  ;;  %v2367_v41 = vadd.f32 %v2366_v51, %v2357_v7  ;;  %v2836_v7 = vld [vmem:[%s3960_s9 + $0x18] sm:$0xff]  ;;  %v2831_v51 = vld [vmem:[%s3958_s7 + $0x10] sm:$0xff] }
0x239d   :  { %2568 = vmatpush.bf16.msrb.mxu1 %v2836_v7 }
0x239e   :  { %v2365_v46 = vadd.f32 %v2363_v17, %v2361_v42  ;;  %3087 = vtanh.f32 %v2367_v41  ;;  %v2768_v53 = vmul.f32 -1.442695, %v2367_v41  ;;  %v2834_v17 = vld [vmem:[%s3960_s9 + $0x8] sm:$0xff]  ;;  %v2833_v42 = vld [vmem:[%s3960_s9] sm:$0xff] }
0x239f   :  { %v2830_v41 = vld [vmem:[%s3958_s7 + $0x8] sm:$0xff] }
0x23a0   :  { %3089 = vtanh.f32 %v2365_v46  ;;  %v2767_v0 = vmul.f32 -1.442695, %v2365_v46  ;;  %v2829_v46 = vld [vmem:[%s3958_s7] sm:$0xff] }
0x23a1   :  { %3091 = vpow2.f32 %v2768_v53 }
0x23a3   :  { %v2346_v47 = vpop.f32.mrf.mxu2  ;;  %v2359_v37 = vpop.f32.mrf.mxu3 }
0x23a4   :  { %v3088_v48 = vpop.eup %3087 }
0x23a5   :  { %2433 = vrot.lane.b32.xlu2 %v3088_v48, %s3186_s3 }
0x23a6   :  { %v3090_v52 = vpop.eup %3089 }
0x23a7   :  { %2393 = vrot.lane.b32.xlu1 %v3090_v52, %s3186_s3  ;;  %v3092_v60 = vpop.eup %3091 }
0x23a8   :  { %v2411_v45 = vadd.f32 1.0, %v3092_v60 }
0x23aa   :  { %3093 = vrcp.f32 %v2411_v45  ;;  %v2423_v26 = vand.u32 2147483648, %v2411_v45  ;;  %vm2417_vm7 = vweird.f32 %v2411_v45  ;;  %v2421_v33 = vand.u32 2147483647, %v2411_v45 }
0x23ab   :  { %3095 = vpow2.f32 %v2767_v0 }
0x23ac   :  { %v2424_v58 = vor.u32 1.1754944e-38, %v2423_v26  ;;  %vm2422_vm12 = vcmp.eq.f32.partialorder %v2421_v33, 8.507059e+37 }
0x23b0   :  { %v3094_v44 = vpop.eup %3093 }
0x23b1   :  { %v2413_v1 = vmul.f32 %v3094_v44, %v2411_v45  ;;  %v3096_v6 = vpop.eup %3095  ;;  %vm2418_vm4 = vweird.f32 %v3094_v44 }
0x23b2   :  { %v2371_v25 = vadd.f32 1.0, %v3096_v6  ;;  %vm2419_vm8 = vmor %vm2417_vm7, %vm2418_vm4  ;;  %vm3967_vm4 = vcmask 521476  }
0x23b3   :  { %v2414_v3 = vsub.f32 1.0, %v2413_v1  ;;  %vm3968_vm7 = vmmov %vm3967_vm4  ;;  %v2845_v1 = vld [vmem:[%s3961_s10] ss:$0 sm:$0xff] }
0x23b4   :  { %3097 = vrcp.f32 %v2371_v25  ;;  %v2383_v5 = vand.u32 2147483648, %v2371_v25  ;;  %vm2377_vm15 = vweird.f32 %v2371_v25  ;;  %v2381_v20 = vand.u32 2147483647, %v2371_v25 }
0x23b5   :  { %v2415_v55 = vmul.f32 %v3094_v44, %v2414_v3 }
0x23b6   :  { %v2384_v21 = vor.u32 1.1754944e-38, %v2383_v5  ;;  %vm2382_vm5 = vcmp.eq.f32.partialorder %v2381_v20, 8.507059e+37 }
0x23b7   :  { %v2416_v8 = vadd.f32 %v3094_v44, %v2415_v55  ;;  %v2846_v55 = vld [vmem:[%s3959_s8] ss:$0 sm:$0xff] }
0x23b9   :  { %v2420_v31 = vsel %vm2419_vm8, %v3094_v44, %v2416_v8 }
0x23ba   :  { %v2425_v16 = vsel %vm2422_vm12, %v2424_v58, %v2420_v31  ;;  %v3098_v63 = vpop.eup %3097 }
0x23bb   :  { %v2373_v11 = vmul.f32 %v3098_v63, %v2371_v25  ;;  %vm2378_vm14 = vweird.f32 %v3098_v63 }
0x23bc   :  { %vm2379_vm6 = vmor %vm2377_vm15, %vm2378_vm14 }
0x23bd   :  { %v2374_v59 = vsub.f32 1.0, %v2373_v11 }
0x23bf   :  { %v2375_v12 = vmul.f32 %v3098_v63, %v2374_v59 }
0x23c1   :  { %v2376_v40 = vadd.f32 %v3098_v63, %v2375_v12 }
0x23c3   :  { %v2380_v49 = vsel %vm2379_vm6, %v3098_v63, %v2376_v40 }
0x23c4   :  { %v2385_v4 = vsel %vm2382_vm5, %v2384_v21, %v2380_v49 }
0x23ff   :  { %v2434_v54 = vpop.permute.xlu2 %2433 }
0x2400   :  { %v2436_v9 = vmul.f32 %v2434_v54, %v2425_v16 }
0x2402   :  { %2438 = vrot.lane.b32.xlu1 %v2436_v9, %s3187_s17 }
0x240a   :  { %1508 = vrot.lane.b32.xlu1 %v3693_v10, %s3186_s3  ;;  %v2429_v10 = vrot.slane %v3852_v29, 2  ;;  %v2389_v29 = vrot.slane %v3850_v14, 6 }
0x2412   :  { %1914 = vrot.lane.b32.xlu1 %v3785_v19, %s3186_s3  ;;  %v2431_v19 = vmul.f32 %v2429_v10, %v2425_v16 }
0x2419   :  { %v2394_v18 = vpop.permute.xlu1 %2393 }
0x241a   :  { %v2396_v2 = vmul.f32 %v2394_v18, %v2385_v4  ;;  %2320 = vrot.lane.b32.xlu1 %v3858_v36, %s3186_s3  ;;  %v2391_v36 = vmul.f32 %v2389_v29, %v2385_v4 }
0x241c   :  { %2398 = vrot.lane.b32.xlu0 %v2396_v2, %s3187_s17 }
0x2474   :  { %v2439_v24 = vpop.permute.xlu1 %2438 }
0x2475   :  { %v2441_v57 = vadd.f32 %v2439_v24, %v2431_v19 }
0x2477   :  { %3099 = vtanh.f32 %v2441_v57 }
0x247c   :  { %v1509_v34 = vpop.permute.xlu1 %1508 }
0x247d   :  { %v3100_v22 = vpop.eup %3099  ;;  %1511 = vst.msk [vmem:[#allocation3 + $0x8] sm:$0xc0] %vm300_vm1, %v1509_v34 }
0x247e   :  { %2444 = vrot.lane.b32.xlu0 %v3100_v22, %s3186_s3 }
0x2484   :  { %v1915_v15 = vpop.permute.xlu1 %1914 }
0x2485   :  { %1917 = vst.msk [vmem:[#allocation3 + $0x8] sm:$0x3] %vm713_vm2, %v1915_v15 }
0x2486   :  { %2046 = vst.msk [vmem:[#allocation3 + $0x8] sm:$0x3] %vm294_vm9, %v3813_v27  ;;  %1780 = vrot.lane.b32.xlu0 %v3754_v23, %s3186_s3  ;;  %vm3966_vm9 = vcmask 257026  }
0x248c   :  { %v2321_v35 = vpop.permute.xlu1 %2320 }
0x248d   :  { %2323 = vst.msk [vmem:[#allocation3] sm:$0xc] %vm577_vm3, %v2321_v35 }
0x248e   :  { %2183 = vrot.lane.b32.xlu0 %v3833_v28, %s3186_s3  ;;  %v2399_v38 = vpop.permute.xlu0 %2398 }
0x248f   :  { %v2401_v39 = vadd.f32 %v2399_v38, %v2391_v36 }
0x2491   :  { %3101 = vtanh.f32 %v2401_v39 }
0x2497   :  { %v3102_v30 = vpop.eup %3101 }
0x2498   :  { %2404 = vrot.lane.b32.xlu2 %v3102_v30, %s3186_s3 }
0x24a0   :  { %1643 = vrot.lane.b32.xlu2 %v3723_v50, %s3186_s3 }
0x24a8   :  { %2048 = vrot.lane.b32.xlu2 %v3809_v32, %s3186_s3 }
0x24f0   :  { %v2445_v23 = vpop.permute.xlu0 %2444 }
0x24f1   :  { %v2447_v27 = vmul.f32 %v2445_v23, %v2425_v16 }
0x24f2   :  { %v2405_v14 = vpop.permute.xlu2 %2404 }
0x24f3   :  { %v2458_v56 = vrot.slane %v2447_v27, 2  ;;  %v2407_v61 = vmul.f32 %v2405_v14, %v2385_v4  ;;  %2454 = vrot.lane.b32.xlu0 %v2447_v27, %s3186_s3 }
0x24f5   :  { %2459 = vrot.lane.b32.xlu1 %v2458_v56, %s3186_s3  ;;  %2449 = vrot.lane.b32.xlu2 %v2407_v61, %s3187_s17 }
0x24f8   :  { %v1781_v28 = vpop.permute.xlu0 %1780 }
0x24f9   :  { %1783 = vst.msk [vmem:[#allocation3 + $0x8] sm:$0xc] %vm577_vm3, %v1781_v28 }
0x24fa   :  { %2181 = vst.msk [vmem:[#allocation3 + $0x8] sm:$0xc] %vm3966_vm9, %v3838_v13  ;;  %v1644_v50 = vpop.permute.xlu2 %1643  ;;  %v2832_v13 = vld [vmem:[%s3958_s7 + $0x18] sm:$0xff] }
0x24fb   :  { %1646 = vst.msk [vmem:[#allocation3 + $0x8] sm:$0x30] %vm3967_vm4, %v1644_v50  ;;  %2509 = vmatpush.bf16.msrb.mxu0 %v2832_v13 }
0x24fc   :  { %2318 = vst.msk [vmem:[#allocation3 + $0x8] sm:$0x30] %vm571_vm0, %v3863_v43  ;;  %v2835_v43 = vld [vmem:[%s3960_s9 + $0x10] sm:$0xff] }
0x24fd   :  { %2569 = vmatpush.bf16.msrb.mxu1 %v2835_v43 }
0x24ff   :  { %2510 = vmatpush.bf16.msrb.mxu0 %v2831_v51 }
0x2500   :  { %v2184_v32 = vpop.permute.xlu0 %2183 }
0x2501   :  { %2186 = vst.msk [vmem:[#allocation3] sm:$0x30] %vm3968_vm7, %v2184_v32  ;;  %2570 = vmatpush.bf16.msrb.mxu1 %v2834_v17 }
0x2502   :  { %v2049_v62 = vpop.permute.xlu2 %2048 }
0x2503   :  { %2051 = vst.msk [vmem:[#allocation3] sm:$0xc0] %vm300_vm1, %v2049_v62  ;;  %2511 = vmatpush.bf16.msrb.mxu0 %v2830_v41 }
0x2505   :  { %2571 = vmatpush.bf16.msrb.mxu1 %v2833_v42 }
0x2507   :  { %2512 = vmatpush.bf16.msrb.mxu0 %v2829_v46 }
0x254f   :  { %v2450_v47 = vpop.permute.xlu2 %2449 }
0x2550   :  { %2452 = vst.msk [vmem:[#allocation3 + $0x8] sm:$0xc0] %vm707_vm13, %v2450_v47 }
0x2557   :  { %v2464_v44 = vld [vmem:[#allocation3 + $0x8] sm:$0xff] }
0x2565   :  { %v2455_v37 = vpop.permute.xlu0 %2454 }
0x2566   :  { %2457 = vst.msk [vmem:[#allocation3] sm:$0x3] %vm713_vm2, %v2455_v37 }
0x2567   :  { %v2460_v48 = vpop.permute.xlu1 %2459 }
0x2568   :  { %v2462_v52 = vsel %vm306_vm10, %v2450_v47, %v2460_v48  ;;  %vm2577_vm10 = vcmask 17408  }
0x2569   :  { %v2522_v53 = vpack.c.bf16 %v2462_v52, %v2462_v52 }
0x256b   :  { %v2536_v60 = vrot.slane %v2522_v53, 3 }
0x256d   :  { %2802 = vmatmul.msk.bf16.vlgmr.msrb.gmra.mxu1 %vm179_vm11, %v2536_v60  ;;  %v2463_v45 = vld [vmem:[#allocation3] sm:$0xff] }
0x256e   :  { %v2465_v0 = vpack.c.bf16 %v2464_v44, %v2463_v45 }
0x2570   :  { %2785 = vmatmul.msk.bf16.vlgmr.msrb.gmra.mxu0 %vm179_vm11, %v2465_v0  ;;  %vm2519_vm11 = vcmask 39936  }
0x25ea   :  { %v2573_v3 = vpop.f32.mrf.mxu1 }
0x25eb   :  { %v2574_v6 = vadd.f32 %v2845_v1, %v2573_v3 }
0x25ed   :  { %v2514_v8 = vpop.f32.mrf.mxu0  ;;  %2578 = vst.msk [vmem:[#allocation10] sm:$0x3] %vm2577_vm10, %v2574_v6 }
0x25ee   :  { %v2515_v25 = vadd.f32 %v2846_v55, %v2514_v8  ;;  %2591 = dma.vmem_to_hbm [thread:$0]  %s2587_s4, 32, %s2589_s16, [#allocation7]  }
0x25f0   :  { %2520 = vst.msk [vmem:[%s3962_s11] sm:$0xff] %vm2519_vm11, %v2515_v25 }
0x25f2   :  { %v2575_v26 = vpop.f32.mrf.mxu1 }
0x25f5   :  { %v2516_v33 = vpop.f32.mrf.mxu0 }
0x25f6   :  { %v2517_v31 = vadd.f32 %v2846_v55, %v2516_v33 }
0x25f8   :  { %2521 = vst.msk [vmem:[%s3962_s11 + $0x8] sm:$0xff] %vm2519_vm11, %v2517_v31 }
0x25f9   :  { %3179 = dma.done.wait [#allocation7], 32  }
0x25fa   :  { %3180 = vsyncadd [#allocation7], 4294967264 }
0x25fb   :  { %2598 = vsyncpa [#allocation6], 1 }
0x25fc   :  { %2599 = vsyncpa [#allocation9], 1 }
0x25fd   :  { %2600 = vsyncpa [#allocation7], 1 }

</bundles_post_ra>
